<compile_context>
chip_gen: v7x
topology: tpu7x:2x2x1
jax: 0.10.0
libtpu: 0.0.40
codegen_flags: <defaults>
</compile_context>

<pallas_src>
import jax
import jax.numpy as jnp
import numpy as np
from jax import lax
from jax.experimental import pallas as pl
from jax.experimental.pallas import tpu as pltpu

EPS = 1e-5
VMEM_LIMIT = 48 * 1024 * 1024  # <= v7x 64 MiB/TC, plenty of headroom on v5e/v6e


def _compiler_params(n_axes=1):
    return pltpu.CompilerParams(
        dimension_semantics=("parallel",) * n_axes,
        vmem_limit_bytes=VMEM_LIMIT,
    )


def _pick_row_tile(M, target=1024, align=16):
    """Largest divisor of M that is <= target and a multiple of `align`."""
    tm = min(target, M)
    tm -= tm % align
    while tm >= align:
        if M % tm == 0:
            return tm
        tm -= align
    raise ValueError(f"M={M} has no row tile aligned to {align}")


def _bn_affine(total, totalsq, count, gamma, beta):
    """Fold training-mode BatchNorm (batch mean, biased var) into scale/shift."""
    mean = total / count                    # (1, C)
    var = totalsq / count - mean * mean
    scale = gamma * lax.rsqrt(var + EPS)
    shift = beta - mean * scale
    return scale, shift


# ---------------- pass 1: h1 = conv1x1(relu(bn1(x))) + partial stats(h1) -----
def _make_stage1_kernel(compute_dtype):
    def kernel(x_ref, scale_ref, shift_ref, w_ref, b_ref,
               h1_ref, sum_ref, ssq_ref):
        h = jnp.maximum(x_ref[...] * scale_ref[...] + shift_ref[...], 0.0)
        h1 = jnp.dot(h.astype(compute_dtype), w_ref[...],
                     preferred_element_type=jnp.float32) + b_ref[...]
        h1_ref[...] = h1.astype(h1_ref.dtype)          # bf16 storage
        sum_ref[0] = jnp.sum(h1, axis=0, keepdims=True)    # f32 stats pre-cast
        ssq_ref[0] = jnp.sum(h1 * h1, axis=0, keepdims=True)
    return kernel


# ---------------- pass 2: c2 = conv3x3(relu(bn2(h1))) + per-image stats ------
def _make_stage2_kernel(H, W, C_mid, pad_rows, compute_dtype):
    Mimg = H * W
    P = pad_rows

    def kernel(h1_ref, scale_ref, shift_ref, w2_ref, b_ref,
               c2_ref, sum_ref, ssq_ref, h2pad_ref):
        # Column position of every flattened pixel (built once per image).
        r = lax.broadcasted_iota(jnp.int32, (Mimg, 1), 0)
        if W & (W - 1) == 0:                       # power-of-two width: exact ints
            col = (r & (W - 1)).astype(jnp.float32)
        else:                                      # exact while Mimg << 2**24
            rf = r.astype(jnp.float32)
            col = rf - jnp.floor(rf / float(W)) * float(W)
        not_first = (col >= 0.5).astype(compute_dtype)            # out col != 0
        not_last = (col <= float(W) - 1.5).astype(compute_dtype)  # out col != W-1

        # relu(bn2(h1)) staged once into a zero-padded VMEM buffer: vertical
        # padding comes from the zero strips, horizontal padding from the
        # per-tap column masks applied at point of use.
        h2 = jnp.maximum(h1_ref[...] * scale_ref[...] + shift_ref[...], 0.0)
        h2pad_ref[0:P, :] = jnp.zeros((P, C_mid), compute_dtype)
        h2pad_ref[P:P + Mimg, :] = h2.astype(compute_dtype)
        h2pad_ref[P + Mimg:P + Mimg + P, :] = jnp.zeros((P, C_mid), compute_dtype)

        # conv2 = 9 accumulating MXU dots on full-size row-shifted loads.
        acc = jnp.zeros((Mimg, C_mid), jnp.float32)
        for tap in range(9):
            dy, dx = tap // 3 - 1, tap % 3 - 1
            s = dy * W + dx                         # flat-row shift of this tap
            tap_in = h2pad_ref[P + s:P + s + Mimg, :]
            if dx == 1:                             # input col x+1 invalid at x=W-1
                tap_in = tap_in * not_last
            elif dx == -1:                          # input col x-1 invalid at x=0
                tap_in = tap_in * not_first
            acc = acc + jnp.dot(tap_in, w2_ref[tap],
                                preferred_element_type=jnp.float32)

        c2 = acc + b_ref[...]
        c2_ref[...] = c2.astype(c2_ref.dtype)           # bf16 storage
        sum_ref[0] = jnp.sum(c2, axis=0, keepdims=True)  # f32 stats pre-cast
        ssq_ref[0] = jnp.sum(c2 * c2, axis=0, keepdims=True)
    return kernel


# ---------------- pass 3: out = conv1x1(relu(bn3(c2))) + x -------------------
def _make_stage3_kernel(compute_dtype):
    def kernel(c2_ref, x_ref, scale_ref, shift_ref, w_ref, b_ref, out_ref):
        h3 = jnp.maximum(c2_ref[...] * scale_ref[...] + shift_ref[...], 0.0)
        y = jnp.dot(h3.astype(compute_dtype), w_ref[...],
                    preferred_element_type=jnp.float32) + b_ref[...]
        out_ref[...] = (y + x_ref[...]).astype(out_ref.dtype)
    return kernel


def bottleneck_forward(x_nchw, params, compute_dtype=jnp.bfloat16):
    """Bottleneck with stride=1, downsample=None (requires c_in == 4*c_out)."""
    N, C_in, H, W = x_nchw.shape
    Mimg = H * W
    M = N * Mimg
    assert Mimg % 16 == 0, "H*W must be a multiple of 16 for aligned bf16 tiles"
    assert Mimg < (1 << 22), "mask arithmetic assumes H*W << 2^24"
    (g1, be1, w1, b1, g2, be2, w2t, b2, g3, be3, w3, b3) = params
    C_mid = w1.shape[1]
    C_out = w3.shape[1]
    assert C_out == C_in, "identity residual requires c_in == 4*c_out"

    cd = compute_dtype
    cdb = jnp.dtype(cd).itemsize

    # NCHW -> (N*H*W, C) rows; bn1 batch statistics as a plain XLA reduction so
    # it fuses with the relayout (x is read once for layout + stats).
    xf = jnp.transpose(x_nchw, (0, 2, 3, 1)).reshape(M, C_in)
    xsum = jnp.sum(xf, axis=0, keepdims=True)
    xssq = jnp.sum(xf * xf, axis=0, keepdims=True)
    scale1, shift1 = _bn_affine(xsum, xssq, M, g1, be1)

    w1c = w1.astype(cd)                              # (C_in, C_mid)
    w2c = w2t.astype(cd)                             # (9, C_mid, C_mid)
    w3c = w3.astype(cd)                              # (C_mid, C_out)

    TM = _pick_row_tile(M)                           # row tile for passes 1 & 3
    T = M // TM

    # ---- pass 1: conv1 (1x1) + per-tile statistics of its output ----
    h1, s1, q1 = pl.pallas_call(
        _make_stage1_kernel(cd),
        grid=(T,),
        in_specs=[pl.BlockSpec((TM, C_in), lambda t: (t, 0)),
                  pl.BlockSpec((1, C_in), lambda t: (0, 0)),
                  pl.BlockSpec((1, C_in), lambda t: (0, 0)),
                  pl.BlockSpec((C_in, C_mid), lambda t: (0, 0)),
                  pl.BlockSpec((1, C_mid), lambda t: (0, 0))],
        out_specs=(pl.BlockSpec((TM, C_mid), lambda t: (t, 0)),
                   pl.BlockSpec((1, 1, C_mid), lambda t: (t, 0, 0)),
                   pl.BlockSpec((1, 1, C_mid), lambda t: (t, 0, 0))),
        out_shape=(jax.ShapeDtypeStruct((M, C_mid), cd),
                   jax.ShapeDtypeStruct((T, 1, C_mid), jnp.float32),
                   jax.ShapeDtypeStruct((T, 1, C_mid), jnp.float32)),
        compiler_params=_compiler_params(1),
        cost_estimate=pl.CostEstimate(
            flops=2 * M * C_in * C_mid, transcendentals=0,
            bytes_accessed=4 * M * C_in + cdb * M * C_mid
                           + cdb * C_in * C_mid + 8 * T * C_mid),
    )(xf, scale1, shift1, w1c, b1)
    scale2, shift2 = _bn_affine(jnp.sum(s1, axis=0), jnp.sum(q1, axis=0),
                                M, g2, be2)

    # ---- pass 2: conv2 (3x3, pad=1) as 9 accumulating dots + per-image stats ----
    P = (W + 1 + 15) // 16 * 16                      # aligned halo pad rows
    c2, s2, q2 = pl.pallas_call(
        _make_stage2_kernel(H, W, C_mid, P, cd),
        grid=(N,),
        in_specs=[pl.BlockSpec((Mimg, C_mid), lambda i: (i, 0)),
                  pl.BlockSpec((1, C_mid), lambda i: (0, 0)),
                  pl.BlockSpec((1, C_mid), lambda i: (0, 0)),
                  pl.BlockSpec((9, C_mid, C_mid), lambda i: (0, 0, 0)),
                  pl.BlockSpec((1, C_mid), lambda i: (0, 0))],
        out_specs=(pl.BlockSpec((Mimg, C_mid), lambda i: (i, 0)),
                   pl.BlockSpec((1, 1, C_mid), lambda i: (i, 0, 0)),
                   pl.BlockSpec((1, 1, C_mid), lambda i: (i, 0, 0))),
        out_shape=(jax.ShapeDtypeStruct((M, C_mid), cd),
                   jax.ShapeDtypeStruct((N, 1, C_mid), jnp.float32),
                   jax.ShapeDtypeStruct((N, 1, C_mid), jnp.float32)),
        scratch_shapes=[pltpu.VMEM((Mimg + 2 * P, C_mid), cd)],
        compiler_params=_compiler_params(1),
        cost_estimate=pl.CostEstimate(
            flops=2 * M * 9 * C_mid * C_mid, transcendentals=0,
            bytes_accessed=2 * cdb * M * C_mid
                           + cdb * 9 * C_mid * C_mid + 8 * N * C_mid),
    )(h1, scale2, shift2, w2c, b2)
    scale3, shift3 = _bn_affine(jnp.sum(s2, axis=0), jnp.sum(q2, axis=0),
                                M, g3, be3)

    # ---- pass 3: conv3 (1x1) + identity residual (f32) ----
    out_flat = pl.pallas_call(
        _make_stage3_kernel(cd),
        grid=(T,),
        in_specs=[pl.BlockSpec((TM, C_mid), lambda t: (t, 0)),
                  pl.BlockSpec((TM, C_in), lambda t: (t, 0)),
                  pl.BlockSpec((1, C_mid), lambda t: (0, 0)),
                  pl.BlockSpec((1, C_mid), lambda t: (0, 0)),
                  pl.BlockSpec((C_mid, C_out), lambda t: (0, 0)),
                  pl.BlockSpec((1, C_out), lambda t: (0, 0))],
        out_specs=pl.BlockSpec((TM, C_out), lambda t: (t, 0)),
        out_shape=jax.ShapeDtypeStruct((M, C_out), jnp.float32),
        compiler_params=_compiler_params(1),
        cost_estimate=pl.CostEstimate(
            flops=2 * M * C_mid * C_out, transcendentals=0,
            bytes_accessed=cdb * M * C_mid + 4 * M * C_in + 4 * M * C_out
                           + cdb * C_mid * C_out),
    )(c2, xf, scale3, shift3, w3c, b3)

    return out_flat.reshape(N, H, W, C_out).transpose(0, 3, 1, 2)


def reference_forward(x, params, C_mid):
    """Plain-JAX NCHW reference mirroring the PyTorch module (training-mode BN)."""
    (g1, be1, w1, b1, g2, be2, w2t, b2, g3, be3, w3, b3) = params

    def bn(v, g, b):
        mean = v.mean(axis=(0, 2, 3), keepdims=True)
        var = ((v - mean) ** 2).mean(axis=(0, 2, 3), keepdims=True)
        return (v - mean) / jnp.sqrt(var + EPS) * g.reshape(1, -1, 1, 1) + b.reshape(1, -1, 1, 1)

    def conv(v, w_oihw, b, pad):
        y = lax.conv_general_dilated(v, w_oihw, (1, 1), [(pad, pad), (pad, pad)],
                                     dimension_numbers=("NCHW", "OIHW", "NCHW"))
        return y + b.reshape(1, -1, 1, 1)

    w1_oihw = jnp.transpose(w1, (1, 0))[:, :, None, None]
    w2_oihw = jnp.transpose(w2t.reshape(3, 3, C_mid, C_mid), (3, 2, 0, 1))
    w3_oihw = jnp.transpose(w3, (1, 0))[:, :, None, None]

    out = conv(jax.nn.relu(bn(x, g1, be1)), w1_oihw, b1, 0)
    out = conv(jax.nn.relu(bn(out, g2, be2)), w2_oihw, b2, 1)
    out = conv(jax.nn.relu(bn(out, g3, be3)), w3_oihw, b3, 0)
    return out + x


if __name__ == "__main__":
    key = jax.random.PRNGKey(0)
    N, C_in, H, W = 2, 16, 16, 16
    C_mid = 4                      # c_out of the module; expansion=4 -> 16 == C_in
    C_out = 4 * C_mid

    keys = jax.random.split(key, 10)
    x = jax.random.normal(keys[0], (N, C_in, H, W), jnp.float32)

    def bn_params(k, c):
        ka, kb = jax.random.split(k)
        gamma = 1.0 + 0.1 * jax.random.normal(ka, (1, c), jnp.float32)
        beta = 0.1 * jax.random.normal(kb, (1, c), jnp.float32)
        return gamma, beta

    g1, be1 = bn_params(keys[1], C_in)
    g2, be2 = bn_params(keys[2], C_mid)
    g3, be3 = bn_params(keys[3], C_mid)
    w1 = 0.2 * jax.random.normal(keys[4], (C_in, C_mid), jnp.float32)       # conv1 1x1: (in, out)
    b1 = 0.05 * jax.random.normal(keys[5], (1, C_mid), jnp.float32)
    w2t = 0.2 * jax.random.normal(keys[6], (9, C_mid, C_mid), jnp.float32)  # conv2 taps: (ky*3+kx, in, out)
    b2 = 0.05 * jax.random.normal(keys[7], (1, C_mid), jnp.float32)
    w3 = 0.2 * jax.random.normal(keys[8], (C_mid, C_out), jnp.float32)      # conv3 1x1: (in, out)
    b3 = 0.05 * jax.random.normal(keys[9], (1, C_out), jnp.float32)

    params = (g1, be1, w1, b1, g2, be2, w2t, b2, g3, be3, w3, b3)

    fwd = jax.jit(bottleneck_forward, static_argnames=("compute_dtype",))
    ref = np.asarray(reference_forward(x, params, C_mid))

    # strict check with f32 MXU operands and f32 intermediates
    out_f32 = jax.block_until_ready(fwd(x, params, compute_dtype=jnp.float32))
    np.testing.assert_allclose(np.asarray(out_f32), ref, atol=2e-3, rtol=2e-3)

    # default path: bf16 MXU operands + bf16 h1/c2 storage, f32 accumulation,
    # f32 BN statistics, f32 residual add (tolerance loosened accordingly)
    out_bf16 = jax.block_until_ready(fwd(x, params, compute_dtype=jnp.bfloat16))
    np.testing.assert_allclose(np.asarray(out_bf16), ref, atol=1e-1, rtol=1e-1)

    print("KERNEL_OK")
</pallas_src>

<mosaic_0001>
module attributes {stable_mosaic.version = 11 : i64} {
  func.func @kernel(%arg0: i32, %arg1: memref<256x4xf32, #tpu.memory_space<vmem>>, %arg2: memref<1x4xf32, #tpu.memory_space<vmem>>, %arg3: memref<1x4xf32, #tpu.memory_space<vmem>>, %arg4: memref<9x4x4xf32, #tpu.memory_space<vmem>>, %arg5: memref<1x4xf32, #tpu.memory_space<vmem>>, %arg6: memref<256x4xf32, #tpu.memory_space<vmem>>, %arg7: memref<1x1x4xf32, #tpu.memory_space<vmem>>, %arg8: memref<1x1x4xf32, #tpu.memory_space<vmem>>, %arg9: memref<320x4xf32, #tpu.memory_space<vmem>>) attributes {dimension_semantics = [#tpu.dimension_semantics<parallel>], iteration_bounds = array<i64: 2>, scalar_prefetch = 0 : i64, scratch_operands = 1 : i64, tpu.core_type = #tpu.core_type<tc>, window_params = [{transform_indices = @transform_0, window_bounds = array<i64: 256, 4>}, {pipeline_mode = #tpu.pipeline_mode<synchronous>, transform_indices = @transform_1, window_bounds = array<i64: 1, 4>}, {pipeline_mode = #tpu.pipeline_mode<synchronous>, transform_indices = @transform_2, window_bounds = array<i64: 1, 4>}, {pipeline_mode = #tpu.pipeline_mode<synchronous>, transform_indices = @transform_3, window_bounds = array<i64: 9, 4, 4>}, {pipeline_mode = #tpu.pipeline_mode<synchronous>, transform_indices = @transform_4, window_bounds = array<i64: 1, 4>}, {transform_indices = @transform_5, window_bounds = array<i64: 256, 4>}, {transform_indices = @transform_6, window_bounds = array<i64: 1, 1, 4>}, {transform_indices = @transform_7, window_bounds = array<i64: 1, 1, 4>}]} {
    %0 = tpu.iota {dimensions = array<i32: 0>} : vector<256x1xi32>
    %c15_i32 = arith.constant 15 : i32
    %1 = vector.broadcast %c15_i32 : i32 to vector<256x1xi32>
    %2 = arith.andi %0, %1 : vector<256x1xi32>
    %3 = arith.sitofp %2 : vector<256x1xi32> to vector<256x1xf32>
    %cst = arith.constant 5.000000e-01 : f32
    %4 = vector.broadcast %cst : f32 to vector<256x1xf32>
    %5 = arith.cmpf oge, %3, %4 : vector<256x1xf32>
    %6 = arith.extui %5 : vector<256x1xi1> to vector<256x1xi32>
    %7 = arith.sitofp %6 : vector<256x1xi32> to vector<256x1xf32>
    %cst_0 = arith.constant 1.450000e+01 : f32
    %8 = vector.broadcast %cst_0 : f32 to vector<256x1xf32>
    %9 = arith.cmpf ole, %3, %8 : vector<256x1xf32>
    %10 = arith.extui %9 : vector<256x1xi1> to vector<256x1xi32>
    %11 = arith.sitofp %10 : vector<256x1xi32> to vector<256x1xf32>
    %c0 = arith.constant 0 : index
    %c0_1 = arith.constant 0 : index
    %12 = vector.load %arg1[%c0, %c0_1] : memref<256x4xf32, #tpu.memory_space<vmem>>, vector<256x4xf32>
    %c0_2 = arith.constant 0 : index
    %c0_3 = arith.constant 0 : index
    %13 = vector.load %arg2[%c0_2, %c0_3] : memref<1x4xf32, #tpu.memory_space<vmem>>, vector<1x4xf32>
    %14 = vector.broadcast %13 : vector<1x4xf32> to vector<256x4xf32>
    %15 = arith.mulf %12, %14 : vector<256x4xf32>
    %c0_4 = arith.constant 0 : index
    %c0_5 = arith.constant 0 : index
    %16 = vector.load %arg3[%c0_4, %c0_5] : memref<1x4xf32, #tpu.memory_space<vmem>>, vector<1x4xf32>
    %17 = vector.broadcast %16 : vector<1x4xf32> to vector<256x4xf32>
    %18 = arith.addf %15, %17 : vector<256x4xf32>
    %cst_6 = arith.constant 0.000000e+00 : f32
    %19 = vector.broadcast %cst_6 : f32 to vector<256x4xf32>
    %20 = arith.maximumf %18, %19 : vector<256x4xf32>
    %cst_7 = arith.constant 0.000000e+00 : f32
    %21 = vector.broadcast %cst_7 : f32 to vector<32x4xf32>
    %c0_8 = arith.constant 0 : index
    %c0_9 = arith.constant 0 : index
    %22 = vector.load %arg9[%c0_8, %c0_9] : memref<320x4xf32, #tpu.memory_space<vmem>>, vector<32x4xf32>
    tpu.vector_store %arg9[%c0_8, %c0_9], %21 {strides = array<i32>} : memref<320x4xf32, #tpu.memory_space<vmem>>, vector<32x4xf32>,
    %c32 = arith.constant 32 : index
    %c0_10 = arith.constant 0 : index
    %23 = vector.load %arg9[%c32, %c0_10] : memref<320x4xf32, #tpu.memory_space<vmem>>, vector<256x4xf32>
    tpu.vector_store %arg9[%c32, %c0_10], %20 {strides = array<i32>} : memref<320x4xf32, #tpu.memory_space<vmem>>, vector<256x4xf32>,
    %cst_11 = arith.constant 0.000000e+00 : f32
    %24 = vector.broadcast %cst_11 : f32 to vector<32x4xf32>
    %c288 = arith.constant 288 : index
    %c0_12 = arith.constant 0 : index
    %25 = vector.load %arg9[%c288, %c0_12] : memref<320x4xf32, #tpu.memory_space<vmem>>, vector<32x4xf32>
    tpu.vector_store %arg9[%c288, %c0_12], %24 {strides = array<i32>} : memref<320x4xf32, #tpu.memory_space<vmem>>, vector<32x4xf32>,
    %cst_13 = arith.constant 0.000000e+00 : f32
    %26 = vector.broadcast %cst_13 : f32 to vector<256x4xf32>
    %c15 = arith.constant 15 : index
    %c0_14 = arith.constant 0 : index
    %27 = vector.load %arg9[%c15, %c0_14] : memref<320x4xf32, #tpu.memory_space<vmem>>, vector<256x4xf32>
    %28 = vector.broadcast %7 : vector<256x1xf32> to vector<256x4xf32>
    %29 = arith.mulf %27, %28 : vector<256x4xf32>
    %c0_15 = arith.constant 0 : index
    %c0_16 = arith.constant 0 : index
    %c0_17 = arith.constant 0 : index
    %30 = vector.load %arg4[%c0_15, %c0_16, %c0_17] : memref<9x4x4xf32, #tpu.memory_space<vmem>>, vector<1x4x4xf32>
    %31 = vector.shape_cast %30 : vector<1x4x4xf32> to vector<4x4xf32>
    %cst_18 = arith.constant dense<0.000000e+00> : vector<256x4xf32>
    %32 = tpu.matmul %29, %31, %cst_18 {dimension_numbers = #tpu.dot_dimension_numbers<[1], [0], [0], [1], [0, 0, 1, 1], [], []>} : vector<256x4xf32>, vector<4x4xf32>, vector<256x4xf32> -> vector<256x4xf32>
    %33 = arith.addf %26, %32 : vector<256x4xf32>
    %c16 = arith.constant 16 : index
    %c0_19 = arith.constant 0 : index
    %34 = vector.load %arg9[%c16, %c0_19] : memref<320x4xf32, #tpu.memory_space<vmem>>, vector<256x4xf32>
    %c1 = arith.constant 1 : index
    %c0_20 = arith.constant 0 : index
    %c0_21 = arith.constant 0 : index
    %35 = vector.load %arg4[%c1, %c0_20, %c0_21] : memref<9x4x4xf32, #tpu.memory_space<vmem>>, vector<1x4x4xf32>
    %36 = vector.shape_cast %35 : vector<1x4x4xf32> to vector<4x4xf32>
    %cst_22 = arith.constant dense<0.000000e+00> : vector<256x4xf32>
    %37 = tpu.matmul %34, %36, %cst_22 {dimension_numbers = #tpu.dot_dimension_numbers<[1], [0], [0], [1], [0, 0, 1, 1], [], []>} : vector<256x4xf32>, vector<4x4xf32>, vector<256x4xf32> -> vector<256x4xf32>
    %38 = arith.addf %33, %37 : vector<256x4xf32>
    %c17 = arith.constant 17 : index
    %c0_23 = arith.constant 0 : index
    %39 = vector.load %arg9[%c17, %c0_23] : memref<320x4xf32, #tpu.memory_space<vmem>>, vector<256x4xf32>
    %40 = vector.broadcast %11 : vector<256x1xf32> to vector<256x4xf32>
    %41 = arith.mulf %39, %40 : vector<256x4xf32>
    %c2 = arith.constant 2 : index
    %c0_24 = arith.constant 0 : index
    %c0_25 = arith.constant 0 : index
    %42 = vector.load %arg4[%c2, %c0_24, %c0_25] : memref<9x4x4xf32, #tpu.memory_space<vmem>>, vector<1x4x4xf32>
    %43 = vector.shape_cast %42 : vector<1x4x4xf32> to vector<4x4xf32>
    %cst_26 = arith.constant dense<0.000000e+00> : vector<256x4xf32>
    %44 = tpu.matmul %41, %43, %cst_26 {dimension_numbers = #tpu.dot_dimension_numbers<[1], [0], [0], [1], [0, 0, 1, 1], [], []>} : vector<256x4xf32>, vector<4x4xf32>, vector<256x4xf32> -> vector<256x4xf32>
    %45 = arith.addf %38, %44 : vector<256x4xf32>
    %c31 = arith.constant 31 : index
    %c0_27 = arith.constant 0 : index
    %46 = vector.load %arg9[%c31, %c0_27] : memref<320x4xf32, #tpu.memory_space<vmem>>, vector<256x4xf32>
    %47 = vector.broadcast %7 : vector<256x1xf32> to vector<256x4xf32>
    %48 = arith.mulf %46, %47 : vector<256x4xf32>
    %c3 = arith.constant 3 : index
    %c0_28 = arith.constant 0 : index
    %c0_29 = arith.constant 0 : index
    %49 = vector.load %arg4[%c3, %c0_28, %c0_29] : memref<9x4x4xf32, #tpu.memory_space<vmem>>, vector<1x4x4xf32>
    %50 = vector.shape_cast %49 : vector<1x4x4xf32> to vector<4x4xf32>
    %cst_30 = arith.constant dense<0.000000e+00> : vector<256x4xf32>
    %51 = tpu.matmul %48, %50, %cst_30 {dimension_numbers = #tpu.dot_dimension_numbers<[1], [0], [0], [1], [0, 0, 1, 1], [], []>} : vector<256x4xf32>, vector<4x4xf32>, vector<256x4xf32> -> vector<256x4xf32>
    %52 = arith.addf %45, %51 : vector<256x4xf32>
    %c32_31 = arith.constant 32 : index
    %c0_32 = arith.constant 0 : index
    %53 = vector.load %arg9[%c32_31, %c0_32] : memref<320x4xf32, #tpu.memory_space<vmem>>, vector<256x4xf32>
    %c4 = arith.constant 4 : index
    %c0_33 = arith.constant 0 : index
    %c0_34 = arith.constant 0 : index
    %54 = vector.load %arg4[%c4, %c0_33, %c0_34] : memref<9x4x4xf32, #tpu.memory_space<vmem>>, vector<1x4x4xf32>
    %55 = vector.shape_cast %54 : vector<1x4x4xf32> to vector<4x4xf32>
    %cst_35 = arith.constant dense<0.000000e+00> : vector<256x4xf32>
    %56 = tpu.matmul %53, %55, %cst_35 {dimension_numbers = #tpu.dot_dimension_numbers<[1], [0], [0], [1], [0, 0, 1, 1], [], []>} : vector<256x4xf32>, vector<4x4xf32>, vector<256x4xf32> -> vector<256x4xf32>
    %57 = arith.addf %52, %56 : vector<256x4xf32>
    %c33 = arith.constant 33 : index
    %c0_36 = arith.constant 0 : index
    %58 = vector.load %arg9[%c33, %c0_36] : memref<320x4xf32, #tpu.memory_space<vmem>>, vector<256x4xf32>
    %59 = vector.broadcast %11 : vector<256x1xf32> to vector<256x4xf32>
    %60 = arith.mulf %58, %59 : vector<256x4xf32>
    %c5 = arith.constant 5 : index
    %c0_37 = arith.constant 0 : index
    %c0_38 = arith.constant 0 : index
    %61 = vector.load %arg4[%c5, %c0_37, %c0_38] : memref<9x4x4xf32, #tpu.memory_space<vmem>>, vector<1x4x4xf32>
    %62 = vector.shape_cast %61 : vector<1x4x4xf32> to vector<4x4xf32>
    %cst_39 = arith.constant dense<0.000000e+00> : vector<256x4xf32>
    %63 = tpu.matmul %60, %62, %cst_39 {dimension_numbers = #tpu.dot_dimension_numbers<[1], [0], [0], [1], [0, 0, 1, 1], [], []>} : vector<256x4xf32>, vector<4x4xf32>, vector<256x4xf32> -> vector<256x4xf32>
    %64 = arith.addf %57, %63 : vector<256x4xf32>
    %c47 = arith.constant 47 : index
    %c0_40 = arith.constant 0 : index
    %65 = vector.load %arg9[%c47, %c0_40] : memref<320x4xf32, #tpu.memory_space<vmem>>, vector<256x4xf32>
    %66 = vector.broadcast %7 : vector<256x1xf32> to vector<256x4xf32>
    %67 = arith.mulf %65, %66 : vector<256x4xf32>
    %c6 = arith.constant 6 : index
    %c0_41 = arith.constant 0 : index
    %c0_42 = arith.constant 0 : index
    %68 = vector.load %arg4[%c6, %c0_41, %c0_42] : memref<9x4x4xf32, #tpu.memory_space<vmem>>, vector<1x4x4xf32>
    %69 = vector.shape_cast %68 : vector<1x4x4xf32> to vector<4x4xf32>
    %cst_43 = arith.constant dense<0.000000e+00> : vector<256x4xf32>
    %70 = tpu.matmul %67, %69, %cst_43 {dimension_numbers = #tpu.dot_dimension_numbers<[1], [0], [0], [1], [0, 0, 1, 1], [], []>} : vector<256x4xf32>, vector<4x4xf32>, vector<256x4xf32> -> vector<256x4xf32>
    %71 = arith.addf %64, %70 : vector<256x4xf32>
    %c48 = arith.constant 48 : index
    %c0_44 = arith.constant 0 : index
    %72 = vector.load %arg9[%c48, %c0_44] : memref<320x4xf32, #tpu.memory_space<vmem>>, vector<256x4xf32>
    %c7 = arith.constant 7 : index
    %c0_45 = arith.constant 0 : index
    %c0_46 = arith.constant 0 : index
    %73 = vector.load %arg4[%c7, %c0_45, %c0_46] : memref<9x4x4xf32, #tpu.memory_space<vmem>>, vector<1x4x4xf32>
    %74 = vector.shape_cast %73 : vector<1x4x4xf32> to vector<4x4xf32>
    %cst_47 = arith.constant dense<0.000000e+00> : vector<256x4xf32>
    %75 = tpu.matmul %72, %74, %cst_47 {dimension_numbers = #tpu.dot_dimension_numbers<[1], [0], [0], [1], [0, 0, 1, 1], [], []>} : vector<256x4xf32>, vector<4x4xf32>, vector<256x4xf32> -> vector<256x4xf32>
    %76 = arith.addf %71, %75 : vector<256x4xf32>
    %c49 = arith.constant 49 : index
    %c0_48 = arith.constant 0 : index
    %77 = vector.load %arg9[%c49, %c0_48] : memref<320x4xf32, #tpu.memory_space<vmem>>, vector<256x4xf32>
    %78 = vector.broadcast %11 : vector<256x1xf32> to vector<256x4xf32>
    %79 = arith.mulf %77, %78 : vector<256x4xf32>
    %c8 = arith.constant 8 : index
    %c0_49 = arith.constant 0 : index
    %c0_50 = arith.constant 0 : index
    %80 = vector.load %arg4[%c8, %c0_49, %c0_50] : memref<9x4x4xf32, #tpu.memory_space<vmem>>, vector<1x4x4xf32>
    %81 = vector.shape_cast %80 : vector<1x4x4xf32> to vector<4x4xf32>
    %cst_51 = arith.constant dense<0.000000e+00> : vector<256x4xf32>
    %82 = tpu.matmul %79, %81, %cst_51 {dimension_numbers = #tpu.dot_dimension_numbers<[1], [0], [0], [1], [0, 0, 1, 1], [], []>} : vector<256x4xf32>, vector<4x4xf32>, vector<256x4xf32> -> vector<256x4xf32>
    %83 = arith.addf %76, %82 : vector<256x4xf32>
    %c0_52 = arith.constant 0 : index
    %c0_53 = arith.constant 0 : index
    %84 = vector.load %arg5[%c0_52, %c0_53] : memref<1x4xf32, #tpu.memory_space<vmem>>, vector<1x4xf32>
    %85 = vector.broadcast %84 : vector<1x4xf32> to vector<256x4xf32>
    %86 = arith.addf %83, %85 : vector<256x4xf32>
    %c0_54 = arith.constant 0 : index
    %c0_55 = arith.constant 0 : index
    %87 = vector.load %arg6[%c0_54, %c0_55] : memref<256x4xf32, #tpu.memory_space<vmem>>, vector<256x4xf32>
    tpu.vector_store %arg6[%c0_54, %c0_55], %86 {strides = array<i32>} : memref<256x4xf32, #tpu.memory_space<vmem>>, vector<256x4xf32>,
    %cst_56 = arith.constant dense<0.000000e+00> : vector<4xf32>
    %88 = vector.multi_reduction <add>, %86, %cst_56 [0] : vector<256x4xf32> to vector<4xf32>
    %89 = vector.shape_cast %88 : vector<4xf32> to vector<1x4xf32>
    %c0_57 = arith.constant 0 : index
    %c0_58 = arith.constant 0 : index
    %c0_59 = arith.constant 0 : index
    %90 = vector.load %arg7[%c0_57, %c0_58, %c0_59] : memref<1x1x4xf32, #tpu.memory_space<vmem>>, vector<1x1x4xf32>
    %91 = vector.shape_cast %90 : vector<1x1x4xf32> to vector<1x4xf32>
    %92 = vector.shape_cast %89 : vector<1x4xf32> to vector<1x1x4xf32>
    tpu.vector_store %arg7[%c0_57, %c0_58, %c0_59], %92 {strides = array<i32>} : memref<1x1x4xf32, #tpu.memory_space<vmem>>, vector<1x1x4xf32>,
    %93 = arith.mulf %86, %86 : vector<256x4xf32>
    %cst_60 = arith.constant dense<0.000000e+00> : vector<4xf32>
    %94 = vector.multi_reduction <add>, %93, %cst_60 [0] : vector<256x4xf32> to vector<4xf32>
    %95 = vector.shape_cast %94 : vector<4xf32> to vector<1x4xf32>
    %c0_61 = arith.constant 0 : index
    %c0_62 = arith.constant 0 : index
    %c0_63 = arith.constant 0 : index
    %96 = vector.load %arg8[%c0_61, %c0_62, %c0_63] : memref<1x1x4xf32, #tpu.memory_space<vmem>>, vector<1x1x4xf32>
    %97 = vector.shape_cast %96 : vector<1x1x4xf32> to vector<1x4xf32>
    %98 = vector.shape_cast %95 : vector<1x4xf32> to vector<1x1x4xf32>
    tpu.vector_store %arg8[%c0_61, %c0_62, %c0_63], %98 {strides = array<i32>} : memref<1x1x4xf32, #tpu.memory_space<vmem>>, vector<1x1x4xf32>,
    return
  }
  func.func @transform_0(%arg0: i32) -> (i32, i32) {
    %c0_i32 = arith.constant 0 : i32
    %c0_i32_0 = arith.constant 0 : i32
    return %arg0, %c0_i32 : i32, i32
  }
  func.func @transform_1(%arg0: i32) -> (i32, i32) {
    %c0_i32 = arith.constant 0 : i32
    %c0_i32_0 = arith.constant 0 : i32
    %c0_i32_1 = arith.constant 0 : i32
    return %c0_i32, %c0_i32_0 : i32, i32
  }
  func.func @transform_2(%arg0: i32) -> (i32, i32) {
    %c0_i32 = arith.constant 0 : i32
    %c0_i32_0 = arith.constant 0 : i32
    %c0_i32_1 = arith.constant 0 : i32
    return %c0_i32, %c0_i32_0 : i32, i32
  }
  func.func @transform_3(%arg0: i32) -> (i32, i32, i32) {
    %c0_i32 = arith.constant 0 : i32
    %c0_i32_0 = arith.constant 0 : i32
    %c0_i32_1 = arith.constant 0 : i32
    %c0_i32_2 = arith.constant 0 : i32
    return %c0_i32, %c0_i32_0, %c0_i32_1 : i32, i32, i32
  }
  func.func @transform_4(%arg0: i32) -> (i32, i32) {
    %c0_i32 = arith.constant 0 : i32
    %c0_i32_0 = arith.constant 0 : i32
    %c0_i32_1 = arith.constant 0 : i32
    return %c0_i32, %c0_i32_0 : i32, i32
  }
  func.func @transform_5(%arg0: i32) -> (i32, i32) {
    %c0_i32 = arith.constant 0 : i32
    %c0_i32_0 = arith.constant 0 : i32
    return %arg0, %c0_i32 : i32, i32
  }
  func.func @transform_6(%arg0: i32) -> (i32, i32, i32) {
    %c0_i32 = arith.constant 0 : i32
    %c0_i32_0 = arith.constant 0 : i32
    %c0_i32_1 = arith.constant 0 : i32
    return %arg0, %c0_i32, %c0_i32_0 : i32, i32, i32
  }
  func.func @transform_7(%arg0: i32) -> (i32, i32, i32) {
    %c0_i32 = arith.constant 0 : i32
    %c0_i32_0 = arith.constant 0 : i32
    %c0_i32_1 = arith.constant 0 : i32
    return %arg0, %c0_i32, %c0_i32_0 : i32, i32, i32
  }
}

module attributes {stable_mosaic.version = 11 : i64} {
  func.func @kernel(%arg0: i32, %arg1: memref<512x16xf32, #tpu.memory_space<vmem>>, %arg2: memref<1x16xf32, #tpu.memory_space<vmem>>, %arg3: memref<1x16xf32, #tpu.memory_space<vmem>>, %arg4: memref<16x4xf32, #tpu.memory_space<vmem>>, %arg5: memref<1x4xf32, #tpu.memory_space<vmem>>, %arg6: memref<512x4xf32, #tpu.memory_space<vmem>>, %arg7: memref<1x1x4xf32, #tpu.memory_space<vmem>>, %arg8: memref<1x1x4xf32, #tpu.memory_space<vmem>>) attributes {dimension_semantics = [#tpu.dimension_semantics<parallel>], iteration_bounds = array<i64: 1>, scalar_prefetch = 0 : i64, scratch_operands = 0 : i64, tpu.core_type = #tpu.core_type<tc>, window_params = [{transform_indices = @transform_0, window_bounds = array<i64: 512, 16>}, {pipeline_mode = #tpu.pipeline_mode<synchronous>, transform_indices = @transform_1, window_bounds = array<i64: 1, 16>}, {pipeline_mode = #tpu.pipeline_mode<synchronous>, transform_indices = @transform_2, window_bounds = array<i64: 1, 16>}, {pipeline_mode = #tpu.pipeline_mode<synchronous>, transform_indices = @transform_3, window_bounds = array<i64: 16, 4>}, {pipeline_mode = #tpu.pipeline_mode<synchronous>, transform_indices = @transform_4, window_bounds = array<i64: 1, 4>}, {transform_indices = @transform_5, window_bounds = array<i64: 512, 4>}, {transform_indices = @transform_6, window_bounds = array<i64: 1, 1, 4>}, {transform_indices = @transform_7, window_bounds = array<i64: 1, 1, 4>}]} {
    %c0 = arith.constant 0 : index
    %c0_0 = arith.constant 0 : index
    %0 = vector.load %arg1[%c0, %c0_0] : memref<512x16xf32, #tpu.memory_space<vmem>>, vector<512x16xf32>
    %c0_1 = arith.constant 0 : index
    %c0_2 = arith.constant 0 : index
    %1 = vector.load %arg2[%c0_1, %c0_2] : memref<1x16xf32, #tpu.memory_space<vmem>>, vector<1x16xf32>
    %2 = vector.broadcast %1 : vector<1x16xf32> to vector<512x16xf32>
    %3 = arith.mulf %0, %2 : vector<512x16xf32>
    %c0_3 = arith.constant 0 : index
    %c0_4 = arith.constant 0 : index
    %4 = vector.load %arg3[%c0_3, %c0_4] : memref<1x16xf32, #tpu.memory_space<vmem>>, vector<1x16xf32>
    %5 = vector.broadcast %4 : vector<1x16xf32> to vector<512x16xf32>
    %6 = arith.addf %3, %5 : vector<512x16xf32>
    %cst = arith.constant 0.000000e+00 : f32
    %7 = vector.broadcast %cst : f32 to vector<512x16xf32>
    %8 = arith.maximumf %6, %7 : vector<512x16xf32>
    %c0_5 = arith.constant 0 : index
    %c0_6 = arith.constant 0 : index
    %9 = vector.load %arg4[%c0_5, %c0_6] : memref<16x4xf32, #tpu.memory_space<vmem>>, vector<16x4xf32>
    %cst_7 = arith.constant dense<0.000000e+00> : vector<512x4xf32>
    %10 = tpu.matmul %8, %9, %cst_7 {dimension_numbers = #tpu.dot_dimension_numbers<[1], [0], [0], [1], [0, 0, 1, 1], [], []>} : vector<512x16xf32>, vector<16x4xf32>, vector<512x4xf32> -> vector<512x4xf32>
    %c0_8 = arith.constant 0 : index
    %c0_9 = arith.constant 0 : index
    %11 = vector.load %arg5[%c0_8, %c0_9] : memref<1x4xf32, #tpu.memory_space<vmem>>, vector<1x4xf32>
    %12 = vector.broadcast %11 : vector<1x4xf32> to vector<512x4xf32>
    %13 = arith.addf %10, %12 : vector<512x4xf32>
    %c0_10 = arith.constant 0 : index
    %c0_11 = arith.constant 0 : index
    %14 = vector.load %arg6[%c0_10, %c0_11] : memref<512x4xf32, #tpu.memory_space<vmem>>, vector<512x4xf32>
    tpu.vector_store %arg6[%c0_10, %c0_11], %13 {strides = array<i32>} : memref<512x4xf32, #tpu.memory_space<vmem>>, vector<512x4xf32>,
    %cst_12 = arith.constant dense<0.000000e+00> : vector<4xf32>
    %15 = vector.multi_reduction <add>, %13, %cst_12 [0] : vector<512x4xf32> to vector<4xf32>
    %16 = vector.shape_cast %15 : vector<4xf32> to vector<1x4xf32>
    %c0_13 = arith.constant 0 : index
    %c0_14 = arith.constant 0 : index
    %c0_15 = arith.constant 0 : index
    %17 = vector.load %arg7[%c0_13, %c0_14, %c0_15] : memref<1x1x4xf32, #tpu.memory_space<vmem>>, vector<1x1x4xf32>
    %18 = vector.shape_cast %17 : vector<1x1x4xf32> to vector<1x4xf32>
    %19 = vector.shape_cast %16 : vector<1x4xf32> to vector<1x1x4xf32>
    tpu.vector_store %arg7[%c0_13, %c0_14, %c0_15], %19 {strides = array<i32>} : memref<1x1x4xf32, #tpu.memory_space<vmem>>, vector<1x1x4xf32>,
    %20 = arith.mulf %13, %13 : vector<512x4xf32>
    %cst_16 = arith.constant dense<0.000000e+00> : vector<4xf32>
    %21 = vector.multi_reduction <add>, %20, %cst_16 [0] : vector<512x4xf32> to vector<4xf32>
    %22 = vector.shape_cast %21 : vector<4xf32> to vector<1x4xf32>
    %c0_17 = arith.constant 0 : index
    %c0_18 = arith.constant 0 : index
    %c0_19 = arith.constant 0 : index
    %23 = vector.load %arg8[%c0_17, %c0_18, %c0_19] : memref<1x1x4xf32, #tpu.memory_space<vmem>>, vector<1x1x4xf32>
    %24 = vector.shape_cast %23 : vector<1x1x4xf32> to vector<1x4xf32>
    %25 = vector.shape_cast %22 : vector<1x4xf32> to vector<1x1x4xf32>
    tpu.vector_store %arg8[%c0_17, %c0_18, %c0_19], %25 {strides = array<i32>} : memref<1x1x4xf32, #tpu.memory_space<vmem>>, vector<1x1x4xf32>,
    return
  }
  func.func @transform_0(%arg0: i32) -> (i32, i32) {
    %c0_i32 = arith.constant 0 : i32
    %c0_i32_0 = arith.constant 0 : i32
    return %arg0, %c0_i32 : i32, i32
  }
  func.func @transform_1(%arg0: i32) -> (i32, i32) {
    %c0_i32 = arith.constant 0 : i32
    %c0_i32_0 = arith.constant 0 : i32
    %c0_i32_1 = arith.constant 0 : i32
    return %c0_i32, %c0_i32_0 : i32, i32
  }
  func.func @transform_2(%arg0: i32) -> (i32, i32) {
    %c0_i32 = arith.constant 0 : i32
    %c0_i32_0 = arith.constant 0 : i32
    %c0_i32_1 = arith.constant 0 : i32
    return %c0_i32, %c0_i32_0 : i32, i32
  }
  func.func @transform_3(%arg0: i32) -> (i32, i32) {
    %c0_i32 = arith.constant 0 : i32
    %c0_i32_0 = arith.constant 0 : i32
    %c0_i32_1 = arith.constant 0 : i32
    return %c0_i32, %c0_i32_0 : i32, i32
  }
  func.func @transform_4(%arg0: i32) -> (i32, i32) {
    %c0_i32 = arith.constant 0 : i32
    %c0_i32_0 = arith.constant 0 : i32
    %c0_i32_1 = arith.constant 0 : i32
    return %c0_i32, %c0_i32_0 : i32, i32
  }
  func.func @transform_5(%arg0: i32) -> (i32, i32) {
    %c0_i32 = arith.constant 0 : i32
    %c0_i32_0 = arith.constant 0 : i32
    return %arg0, %c0_i32 : i32, i32
  }
  func.func @transform_6(%arg0: i32) -> (i32, i32, i32) {
    %c0_i32 = arith.constant 0 : i32
    %c0_i32_0 = arith.constant 0 : i32
    %c0_i32_1 = arith.constant 0 : i32
    return %arg0, %c0_i32, %c0_i32_0 : i32, i32, i32
  }
  func.func @transform_7(%arg0: i32) -> (i32, i32, i32) {
    %c0_i32 = arith.constant 0 : i32
    %c0_i32_0 = arith.constant 0 : i32
    %c0_i32_1 = arith.constant 0 : i32
    return %arg0, %c0_i32, %c0_i32_0 : i32, i32, i32
  }
}

module attributes {stable_mosaic.version = 11 : i64} {
  func.func @kernel(%arg0: i32, %arg1: memref<512x4xf32, #tpu.memory_space<vmem>>, %arg2: memref<512x16xf32, #tpu.memory_space<vmem>>, %arg3: memref<1x4xf32, #tpu.memory_space<vmem>>, %arg4: memref<1x4xf32, #tpu.memory_space<vmem>>, %arg5: memref<4x16xf32, #tpu.memory_space<vmem>>, %arg6: memref<1x16xf32, #tpu.memory_space<vmem>>, %arg7: memref<512x16xf32, #tpu.memory_space<vmem>>) attributes {dimension_semantics = [#tpu.dimension_semantics<parallel>], iteration_bounds = array<i64: 1>, scalar_prefetch = 0 : i64, scratch_operands = 0 : i64, tpu.core_type = #tpu.core_type<tc>, window_params = [{transform_indices = @transform_0, window_bounds = array<i64: 512, 4>}, {transform_indices = @transform_1, window_bounds = array<i64: 512, 16>}, {pipeline_mode = #tpu.pipeline_mode<synchronous>, transform_indices = @transform_2, window_bounds = array<i64: 1, 4>}, {pipeline_mode = #tpu.pipeline_mode<synchronous>, transform_indices = @transform_3, window_bounds = array<i64: 1, 4>}, {pipeline_mode = #tpu.pipeline_mode<synchronous>, transform_indices = @transform_4, window_bounds = array<i64: 4, 16>}, {pipeline_mode = #tpu.pipeline_mode<synchronous>, transform_indices = @transform_5, window_bounds = array<i64: 1, 16>}, {transform_indices = @transform_6, window_bounds = array<i64: 512, 16>}]} {
    %c0 = arith.constant 0 : index
    %c0_0 = arith.constant 0 : index
    %0 = vector.load %arg1[%c0, %c0_0] : memref<512x4xf32, #tpu.memory_space<vmem>>, vector<512x4xf32>
    %c0_1 = arith.constant 0 : index
    %c0_2 = arith.constant 0 : index
    %1 = vector.load %arg3[%c0_1, %c0_2] : memref<1x4xf32, #tpu.memory_space<vmem>>, vector<1x4xf32>
    %2 = vector.broadcast %1 : vector<1x4xf32> to vector<512x4xf32>
    %3 = arith.mulf %0, %2 : vector<512x4xf32>
    %c0_3 = arith.constant 0 : index
    %c0_4 = arith.constant 0 : index
    %4 = vector.load %arg4[%c0_3, %c0_4] : memref<1x4xf32, #tpu.memory_space<vmem>>, vector<1x4xf32>
    %5 = vector.broadcast %4 : vector<1x4xf32> to vector<512x4xf32>
    %6 = arith.addf %3, %5 : vector<512x4xf32>
    %cst = arith.constant 0.000000e+00 : f32
    %7 = vector.broadcast %cst : f32 to vector<512x4xf32>
    %8 = arith.maximumf %6, %7 : vector<512x4xf32>
    %c0_5 = arith.constant 0 : index
    %c0_6 = arith.constant 0 : index
    %9 = vector.load %arg5[%c0_5, %c0_6] : memref<4x16xf32, #tpu.memory_space<vmem>>, vector<4x16xf32>
    %cst_7 = arith.constant dense<0.000000e+00> : vector<512x16xf32>
    %10 = tpu.matmul %8, %9, %cst_7 {dimension_numbers = #tpu.dot_dimension_numbers<[1], [0], [0], [1], [0, 0, 1, 1], [], []>} : vector<512x4xf32>, vector<4x16xf32>, vector<512x16xf32> -> vector<512x16xf32>
    %c0_8 = arith.constant 0 : index
    %c0_9 = arith.constant 0 : index
    %11 = vector.load %arg6[%c0_8, %c0_9] : memref<1x16xf32, #tpu.memory_space<vmem>>, vector<1x16xf32>
    %12 = vector.broadcast %11 : vector<1x16xf32> to vector<512x16xf32>
    %13 = arith.addf %10, %12 : vector<512x16xf32>
    %c0_10 = arith.constant 0 : index
    %c0_11 = arith.constant 0 : index
    %14 = vector.load %arg2[%c0_10, %c0_11] : memref<512x16xf32, #tpu.memory_space<vmem>>, vector<512x16xf32>
    %15 = arith.addf %13, %14 : vector<512x16xf32>
    %c0_12 = arith.constant 0 : index
    %c0_13 = arith.constant 0 : index
    %16 = vector.load %arg7[%c0_12, %c0_13] : memref<512x16xf32, #tpu.memory_space<vmem>>, vector<512x16xf32>
    tpu.vector_store %arg7[%c0_12, %c0_13], %15 {strides = array<i32>} : memref<512x16xf32, #tpu.memory_space<vmem>>, vector<512x16xf32>,
    return
  }
  func.func @transform_0(%arg0: i32) -> (i32, i32) {
    %c0_i32 = arith.constant 0 : i32
    %c0_i32_0 = arith.constant 0 : i32
    return %arg0, %c0_i32 : i32, i32
  }
  func.func @transform_1(%arg0: i32) -> (i32, i32) {
    %c0_i32 = arith.constant 0 : i32
    %c0_i32_0 = arith.constant 0 : i32
    return %arg0, %c0_i32 : i32, i32
  }
  func.func @transform_2(%arg0: i32) -> (i32, i32) {
    %c0_i32 = arith.constant 0 : i32
    %c0_i32_0 = arith.constant 0 : i32
    %c0_i32_1 = arith.constant 0 : i32
    return %c0_i32, %c0_i32_0 : i32, i32
  }
  func.func @transform_3(%arg0: i32) -> (i32, i32) {
    %c0_i32 = arith.constant 0 : i32
    %c0_i32_0 = arith.constant 0 : i32
    %c0_i32_1 = arith.constant 0 : i32
    return %c0_i32, %c0_i32_0 : i32, i32
  }
  func.func @transform_4(%arg0: i32) -> (i32, i32) {
    %c0_i32 = arith.constant 0 : i32
    %c0_i32_0 = arith.constant 0 : i32
    %c0_i32_1 = arith.constant 0 : i32
    return %c0_i32, %c0_i32_0 : i32, i32
  }
  func.func @transform_5(%arg0: i32) -> (i32, i32) {
    %c0_i32 = arith.constant 0 : i32
    %c0_i32_0 = arith.constant 0 : i32
    %c0_i32_1 = arith.constant 0 : i32
    return %c0_i32, %c0_i32_0 : i32, i32
  }
  func.func @transform_6(%arg0: i32) -> (i32, i32) {
    %c0_i32 = arith.constant 0 : i32
    %c0_i32_0 = arith.constant 0 : i32
    return %arg0, %c0_i32 : i32, i32
  }
}

</mosaic_0001>

<bundles_post_ra>
// kernel: bottleneck_forward.3
= control target key start
LH: loop header
LB: loop body
LE: loop exit
PB: predicated region body
PF: predicated region fallthrough
CT: control target
= control target key end

     0   :  { %vm302_vm0 = vcmask 130048   ;;  %vm880_vm1 = vcmask 31744   ;;  %vm1078_vm2 = vcmask 24576   ;;  %s2748_s3 = inlined_call_operand.vmem [shape: f32[16,4], index: 3, kind: input, shape index: {}]   ;;  %s2749_s0 = inlined_call_operand.vmem [shape: f32[512,16], index: 0, kind: input, shape index: {}]   ;;  %s2750_s1 = inlined_call_operand.vmem [shape: f32[1,16], index: 1, kind: input, shape index: {}]   ;;  %s2751_s2 = inlined_call_operand.vmem [shape: f32[1,16], index: 2, kind: input, shape index: {}]   ;;  %s2752_s4 = inlined_call_operand.vmem [shape: f32[1,4], index: 4, kind: input, shape index: {}]   ;;  %s2753_s5 = inlined_call_operand.vmem [shape: f32[512,4], index: 5, kind: output, shape index: {0}]   ;;  %s2754_s6 = inlined_call_operand.vmem [shape: f32[1,1,4], index: 6, kind: output, shape index: {1}]   ;;  %s2755_s7 = inlined_call_operand.vmem [shape: f32[1,1,4], index: 7, kind: output, shape index: {2}]  }
   0x1   :  { %v293_v0 = vld [vmem:[%s2748_s3] sm:$0xff]  ;;  %v294_v1 = vld [vmem:[%s2748_s3 + $0x8] sm:$0xff]  ;;  %v25_v9 = vld [vmem:[%s2749_s0 + $0x10] sm:$0xff] }
   0x2   :  { %v23_v2 = vld [vmem:[%s2749_s0] sm:$0xff]  ;;  %v1523_v3 = vpack.c.bf16 %v294_v1, %v293_v0  ;;  %v24_v6 = vld [vmem:[%s2749_s0 + $0x8] sm:$0xff]  ;;  %v26_v10 = vld [vmem:[%s2749_s0 + $0x18] sm:$0xff] }
   0x3   :  { %v1581_v4 = vld [vmem:[%s2750_s1] ss:$0 sm:$0xff]  ;;  %v28_v15 = vld [vmem:[%s2749_s0 + $0x28] sm:$0xff]  ;;  %v29_v16 = vld [vmem:[%s2749_s0 + $0x30] sm:$0xff] }
   0x4   :  { %v1586_v5 = vld [vmem:[%s2751_s2] ss:$0 sm:$0xff]  ;;  %v94_v7 = vmul.f32 %v1581_v4, %v23_v2  ;;  %v95_v8 = vmul.f32 %v1581_v4, %v24_v6  ;;  %1524 = vmatprep.subr.bf16.mxu0 %v1523_v3  ;;  %v96_v12 = vmul.f32 %v1581_v4, %v25_v9  ;;  %v97_v13 = vmul.f32 %v1581_v4, %v26_v10  ;;  %v30_v26 = vld [vmem:[%s2749_s0 + $0x38] sm:$0xff]  ;;  %v32_v35 = vld [vmem:[%s2749_s0 + $0x48] sm:$0xff] }
   0x5   :  { %v27_v11 = vld [vmem:[%s2749_s0 + $0x20] sm:$0xff]  ;;  %1527 = vmatprep.subr.bf16.mxu1 %v1523_v3  ;;  %1526 = vmatpush3.bf16.msra.mxu0 %v1523_v3  ;;  %v99_v21 = vmul.f32 %v1581_v4, %v28_v15  ;;  %v100_v25 = vmul.f32 %v1581_v4, %v29_v16  ;;  %v101_v31 = vmul.f32 %v1581_v4, %v30_v26  ;;  %v33_v36 = vld [vmem:[%s2749_s0 + $0x50] sm:$0xff]  ;;  %v34_v40 = vld [vmem:[%s2749_s0 + $0x58] sm:$0xff] }
   0x6   :  { %v98_v14 = vmul.f32 %v1581_v4, %v27_v11  ;;  %v165_v17 = vadd.f32 %v1586_v5, %v94_v7  ;;  %v166_v18 = vadd.f32 %v1586_v5, %v95_v8  ;;  %v167_v19 = vadd.f32 %v1586_v5, %v96_v12  ;;  %1528 = vmatpush3.bf16.msra.mxu1 %v1523_v3  ;;  %v31_v28 = vld [vmem:[%s2749_s0 + $0x40] sm:$0xff]  ;;  %v36_v45 = vld [vmem:[%s2749_s0 + $0x68] sm:$0xff]  ;;  %v37_v46 = vld [vmem:[%s2749_s0 + $0x70] sm:$0xff] }
   0x7   :  { %v168_v20 = vadd.f32 %v1586_v5, %v97_v13  ;;  %v170_v30 = vadd.f32 %v1586_v5, %v99_v21  ;;  %v171_v33 = vadd.f32 %v1586_v5, %v100_v25  ;;  %v102_v34 = vmul.f32 %v1581_v4, %v31_v28  ;;  %v35_v41 = vld [vmem:[%s2749_s0 + $0x60] sm:$0xff]  ;;  %v38_v55 = vld [vmem:[%s2749_s0 + $0x78] sm:$0xff]  ;;  %v40_v0 = vld [vmem:[%s2749_s0 + $0x88] sm:$0xff] }
   0x8   :  { %v229_v22 = vmax.f32 %v165_v17, 0.0  ;;  %v230_v23 = vmax.f32 %v166_v18, 0.0  ;;  %v169_v24 = vadd.f32 %v1586_v5, %v98_v14  ;;  %v231_v27 = vmax.f32 %v167_v19, 0.0  ;;  %v39_v62 = vld [vmem:[%s2749_s0 + $0x80] sm:$0xff]  ;;  %v41_v1 = vld [vmem:[%s2749_s0 + $0x90] sm:$0xff]  ;;  %v42_v2 = vld [vmem:[%s2749_s0 + $0x98] sm:$0xff] }
   0x9   :  { %v232_v29 = vmax.f32 %v168_v20, 0.0  ;;  %v234_v37 = vmax.f32 %v170_v30, 0.0  ;;  %v172_v38 = vadd.f32 %v1586_v5, %v101_v31  ;;  %v103_v39 = vmul.f32 %v1581_v4, %v32_v35  ;;  %v55_v3 = vld [vmem:[%s2749_s0 + $0x100] sm:$0xff]  ;;  %v56_v6 = vld [vmem:[%s2749_s0 + $0x108] sm:$0xff]  ;;  %v57_v9 = vld [vmem:[%s2749_s0 + $0x110] sm:$0xff] }
   0xa   :  { %1427 = vmatprep.mubr.msk.f32.mxu0 %vm302_vm0, %v229_v22  ;;  %v233_v32 = vmax.f32 %v169_v24, 0.0  ;;  %v235_v42 = vmax.f32 %v171_v33, 0.0  ;;  %v173_v43 = vadd.f32 %v1586_v5, %v102_v34  ;;  %v104_v44 = vmul.f32 %v1581_v4, %v33_v36  ;;  %v58_v10 = vld [vmem:[%s2749_s0 + $0x118] sm:$0xff]  ;;  %v59_v11 = vld [vmem:[%s2749_s0 + $0x120] sm:$0xff]  ;;  %v44_v19 = vld [vmem:[%s2749_s0 + $0xa8] sm:$0xff] }
   0xb   :  { %1428 = vmatmul.mubr.msk.f32.vlgmr.msra.gmra.mrb[0].mxu0 %vm302_vm0, %v230_v23  ;;  %v105_v47 = vmul.f32 %v1581_v4, %v34_v40  ;;  %v106_v48 = vmul.f32 %v1581_v4, %v35_v41  ;;  %v236_v49 = vmax.f32 %v172_v38, 0.0  ;;  %v174_v50 = vadd.f32 %v1586_v5, %v103_v39  ;;  %v43_v16 = vld [vmem:[%s2749_s0 + $0xa0] sm:$0xff]  ;;  %v60_v22 = vld [vmem:[%s2749_s0 + $0x128] sm:$0xff]  ;;  %v45_v30 = vld [vmem:[%s2749_s0 + $0xb0] sm:$0xff] }
   0xc   :  { %1430 = vmatprep.mubr.msk.f32.mxu0 %vm302_vm0, %v231_v27  ;;  %v107_v51 = vmul.f32 %v1581_v4, %v36_v45  ;;  %v108_v52 = vmul.f32 %v1581_v4, %v37_v46  ;;  %v237_v53 = vmax.f32 %v173_v43, 0.0  ;;  %v175_v54 = vadd.f32 %v1586_v5, %v104_v44  ;;  %v61_v27 = vld [vmem:[%s2749_s0 + $0x130] sm:$0xff]  ;;  %v46_v31 = vld [vmem:[%s2749_s0 + $0xb8] sm:$0xff] }
   0xd   :  { %v176_v56 = vadd.f32 %v1586_v5, %v105_v47  ;;  %v177_v57 = vadd.f32 %v1586_v5, %v106_v48  ;;  %v238_v58 = vmax.f32 %v174_v50, 0.0  ;;  %v109_v61 = vmul.f32 %v1581_v4, %v38_v55  ;;  %v63_v47 = vld [vmem:[%s2749_s0 + $0x140] sm:$0xff] }
   0xe   :  { %v178_v59 = vadd.f32 %v1586_v5, %v107_v51  ;;  %v1671_v60 = vadd.f32 %v1586_v5, %v108_v52  ;;  %v239_v63 = vmax.f32 %v175_v54, 0.0  ;;  %v110_v8 = vmul.f32 %v1581_v4, %v39_v62  ;;  %v64_v62 = vld [vmem:[%s2749_s0 + $0x148] sm:$0xff] }
   0xf   :  { %1431 = vmatmul.mubr.msk.f32.gmra.mrb[2].mxu0 %vm302_vm0, %v232_v29  ;;  %v240_v7 = vmax.f32 %v176_v56, 0.0  ;;  %v241_v12 = vmax.f32 %v177_v57, 0.0  ;;  %v1706_v15 = vadd.f32 %v1586_v5, %v109_v61  ;;  %v111_v17 = vmul.f32 %v1581_v4, %v40_v0 }
  0x10   :  { %1433 = vmatprep.mubr.msk.f32.mxu0 %vm302_vm0, %v233_v32  ;;  %v242_v13 = vmax.f32 %v178_v59, 0.0  ;;  %v243_v14 = vmax.f32 %v1671_v60, 0.0  ;;  %v112_v18 = vmul.f32 %v1581_v4, %v41_v1  ;;  %v126_v20 = vmul.f32 %v1581_v4, %v55_v3 }
  0x11   :  { %v127_v21 = vmul.f32 %v1581_v4, %v56_v6  ;;  %v113_v23 = vmul.f32 %v1581_v4, %v42_v2  ;;  %v128_v24 = vmul.f32 %v1581_v4, %v57_v9  ;;  %v129_v25 = vmul.f32 %v1581_v4, %v58_v10  ;;  %v65_v2 = vld [vmem:[%s2749_s0 + $0x150] sm:$0xff]  ;;  %v66_v10 = vld [vmem:[%s2749_s0 + $0x158] sm:$0xff] }
  0x12   :  { %v130_v26 = vmul.f32 %v1581_v4, %v59_v11  ;;  %v1730_v28 = vadd.f32 %v1586_v5, %v110_v8  ;;  %v114_v29 = vmul.f32 %v1581_v4, %v43_v16  ;;  %v197_v32 = vadd.f32 %v1586_v5, %v126_v20  ;;  %v49_v9 = vld [vmem:[%s2749_s0 + $0xd0] sm:$0xff]  ;;  %v67_v11 = vld [vmem:[%s2749_s0 + $0x160] sm:$0xff] }
  0x13   :  { %1434 = vmatmul.mubr.msk.f32.gmra.mrb[4].mxu0 %vm302_vm0, %v234_v37  ;;  %v198_v33 = vadd.f32 %v1586_v5, %v127_v21  ;;  %v115_v34 = vmul.f32 %v1581_v4, %v44_v19  ;;  %v199_v35 = vadd.f32 %v1586_v5, %v128_v24  ;;  %v200_v36 = vadd.f32 %v1586_v5, %v129_v25 }
  0x14   :  { %1436 = vmatprep.mubr.msk.f32.mxu0 %vm302_vm0, %v235_v42  ;;  %v131_v37 = vmul.f32 %v1581_v4, %v60_v22  ;;  %v261_v38 = vmax.f32 %v197_v32, 0.0  ;;  %v201_v40 = vadd.f32 %v1586_v5, %v130_v26  ;;  %v132_v41 = vmul.f32 %v1581_v4, %v61_v27  ;;  %v62_v42 = vld [vmem:[%s2749_s0 + $0x138] sm:$0xff]  ;;  %v77_v27 = vld [vmem:[%s2749_s0 + $0x1b0] sm:$0xff] }
  0x15   :  { %v262_v39 = vmax.f32 %v198_v33, 0.0  ;;  %v1753_v43 = vadd.f32 %v1586_v5, %v111_v17  ;;  %v116_v44 = vmul.f32 %v1581_v4, %v45_v30  ;;  %v117_v45 = vmul.f32 %v1581_v4, %v46_v31  ;;  %v68_v31 = vld [vmem:[%s2749_s0 + $0x168] sm:$0xff]  ;;  %v78_v33 = vld [vmem:[%s2749_s0 + $0x1b8] sm:$0xff] }
  0x16   :  { %v263_v46 = vmax.f32 %v199_v35, 0.0  ;;  %v244_v48 = vmax.f32 %v1706_v15, 0.0  ;;  %v1765_v50 = vadd.f32 %v1586_v5, %v113_v23  ;;  %v1768_v51 = vadd.f32 %v1586_v5, %v114_v29  ;;  %1475 = vmatprep.mubr.msk.f32.mxu1 %vm302_vm0, %v261_v38  ;;  %v69_v38 = vld [vmem:[%s2749_s0 + $0x170] sm:$0xff] }
  0x17   :  { %1437 = vmatmul.mubr.msk.f32.gmra.mrb[6].mxu0 %vm302_vm0, %v236_v49  ;;  %v1762_v49 = vadd.f32 %v1586_v5, %v112_v18  ;;  %v245_v52 = vmax.f32 %v1730_v28, 0.0  ;;  %1476 = vmatmul.mubr.msk.f32.vlgmr.msra.gmra.mrb[0].mxu1 %vm302_vm0, %v262_v39  ;;  %v264_v54 = vmax.f32 %v200_v36, 0.0  ;;  %v202_v55 = vadd.f32 %v1586_v5, %v131_v37  ;;  %v76_v18 = vld [vmem:[%s2749_s0 + $0x1a8] sm:$0xff]  ;;  %v79_v39 = vld [vmem:[%s2749_s0 + $0x1c0] sm:$0xff] }
  0x18   :  { %1439 = vmatprep.mubr.msk.f32.mxu0 %vm302_vm0, %v237_v53  ;;  %v47_v53 = vld [vmem:[%s2749_s0 + $0xc0] sm:$0xff]  ;;  %v133_v56 = vmul.f32 %v1581_v4, %v62_v42  ;;  %v1781_v57 = vadd.f32 %v1586_v5, %v115_v34  ;;  %1478 = vmatprep.mubr.msk.f32.mxu1 %vm302_vm0, %v263_v46  ;;  %v265_v59 = vmax.f32 %v201_v40, 0.0  ;;  %v203_v60 = vadd.f32 %v1586_v5, %v132_v41  ;;  %v80_v40 = vld [vmem:[%s2749_s0 + $0x1c8] sm:$0xff]  ;;  %v82_v46 = vld [vmem:[%s2749_s0 + $0x1d8] sm:$0xff] }
  0x19   :  { %v134_v61 = vmul.f32 %v1581_v4, %v63_v47  ;;  %v1794_v0 = vadd.f32 %v1586_v5, %v116_v44  ;;  %v1797_v1 = vadd.f32 %v1586_v5, %v117_v45  ;;  %v247_v3 = vmax.f32 %v1762_v49, 0.0  ;;  %v81_v45 = vld [vmem:[%s2749_s0 + $0x1d0] sm:$0xff] }
  0x1a   :  { %v248_v6 = vmax.f32 %v1765_v50, 0.0  ;;  %v118_v8 = vmul.f32 %v1581_v4, %v47_v53  ;;  %v266_v15 = vmax.f32 %v202_v55, 0.0  ;;  %v204_v16 = vadd.f32 %v1586_v5, %v133_v56 }
  0x1b   :  { %1440 = vmatmul.mubr.msk.f32.gmra.mrb[8].mxu0 %vm302_vm0, %v238_v58  ;;  %v48_v58 = vld [vmem:[%s2749_s0 + $0xc8] sm:$0xff]  ;;  %1479 = vmatmul.mubr.msk.f32.gmra.mrb[2].mxu1 %vm302_vm0, %v264_v54  ;;  %v135_v17 = vmul.f32 %v1581_v4, %v64_v62  ;;  %v250_v19 = vmax.f32 %v1781_v57, 0.0  ;;  %v267_v20 = vmax.f32 %v203_v60, 0.0  ;;  %v205_v21 = vadd.f32 %v1586_v5, %v134_v61 }
  0x1c   :  { %1442 = vmatprep.mubr.msk.f32.mxu0 %vm302_vm0, %v239_v63  ;;  %v246_v63 = vmax.f32 %v1753_v43, 0.0  ;;  %1481 = vmatprep.mubr.msk.f32.mxu1 %vm302_vm0, %v265_v59  ;;  %v136_v22 = vmul.f32 %v1581_v4, %v65_v2  ;;  %v251_v23 = vmax.f32 %v1794_v0, 0.0  ;;  %v252_v24 = vmax.f32 %v1797_v1, 0.0  ;;  %v73_v0 = vld [vmem:[%s2749_s0 + $0x190] sm:$0xff] }
  0x1d   :  { %v137_v25 = vmul.f32 %v1581_v4, %v66_v10  ;;  %v138_v26 = vmul.f32 %v1581_v4, %v67_v11  ;;  %v120_v28 = vmul.f32 %v1581_v4, %v49_v9  ;;  %v147_v32 = vmul.f32 %v1581_v4, %v76_v18  ;;  %v71_v10 = vld [vmem:[%s2749_s0 + $0x180] sm:$0xff]  ;;  %v52_v18 = vld [vmem:[%s2749_s0 + $0xe8] sm:$0xff] }
  0x1e   :  { %v1857_v34 = vadd.f32 %v1586_v5, %v118_v8  ;;  %v268_v36 = vmax.f32 %v204_v16, 0.0  ;;  %v206_v37 = vadd.f32 %v1586_v5, %v135_v17  ;;  %v269_v41 = vmax.f32 %v205_v21, 0.0 }
  0x1f   :  { %1443 = vmatmul.mubr.msk.f32.gmra.mrb[10].mxu0 %vm302_vm0, %v240_v7  ;;  %v249_v7 = vmax.f32 %v1768_v51, 0.0  ;;  %1482 = vmatmul.mubr.msk.f32.gmra.mrb[4].mxu1 %vm302_vm0, %v266_v15  ;;  %v207_v42 = vadd.f32 %v1586_v5, %v136_v22  ;;  %v1877_v43 = vadd.f32 %v1586_v5, %v147_v32  ;;  %v148_v44 = vmul.f32 %v1581_v4, %v77_v27  ;;  %v86_v51 = vld [vmem:[%s2749_s0 + $0x1f8] sm:$0xff] }
  0x20   :  { %1445 = vmatprep.mubr.msk.f32.mxu0 %vm302_vm0, %v241_v12  ;;  %v119_v12 = vmul.f32 %v1581_v4, %v48_v58  ;;  %1484 = vmatprep.mubr.msk.f32.mxu1 %vm302_vm0, %v267_v20  ;;  %v208_v47 = vadd.f32 %v1586_v5, %v137_v25  ;;  %v139_v49 = vmul.f32 %v1581_v4, %v68_v31  ;;  %v84_v58 = vld [vmem:[%s2749_s0 + $0x1e8] sm:$0xff]  ;;  %v270_v59 = vmax.f32 %v206_v37, 0.0  ;;  %v53_v20 = vld [vmem:[%s2749_s0 + $0xf0] sm:$0xff] }
  0x21   :  { %v149_v50 = vmul.f32 %v1581_v4, %v78_v33  ;;  %v140_v53 = vmul.f32 %v1581_v4, %v69_v38  ;;  %v1897_v54 = vadd.f32 %v1586_v5, %v148_v44  ;;  %v150_v55 = vmul.f32 %v1581_v4, %v79_v39  ;;  %v54_v38 = vld [vmem:[%s2749_s0 + $0xf8] sm:$0xff] }
  0x22   :  { %v1860_v35 = vadd.f32 %v1586_v5, %v119_v12  ;;  %v151_v56 = vmul.f32 %v1581_v4, %v80_v40  ;;  %v152_v61 = vmul.f32 %v1581_v4, %v81_v45  ;;  %v153_v62 = vmul.f32 %v1581_v4, %v82_v46 }
  0x23   :  { %1446 = vmatmul.mubr.msk.f32.gmra.mrb[12].mxu0 %vm302_vm0, %v242_v13  ;;  %v50_v13 = vld [vmem:[%s2749_s0 + $0xd8] sm:$0xff]  ;;  %1485 = vmatmul.mubr.msk.f32.gmra.mrb[6].mxu1 %vm302_vm0, %v268_v36  ;;  %v1907_v60 = vadd.f32 %v1586_v5, %v149_v50  ;;  %v271_v2 = vmax.f32 %v207_v42, 0.0  ;;  %v210_v15 = vadd.f32 %v1586_v5, %v139_v49  ;;  %v272_v21 = vmax.f32 %v208_v47, 0.0  ;;  %v75_v42 = vld [vmem:[%s2749_s0 + $0x1a0] sm:$0xff] }
  0x24   :  { %1448 = vmatprep.mubr.msk.f32.mxu0 %vm302_vm0, %v243_v14  ;;  %v51_v14 = vld [vmem:[%s2749_s0 + $0xe0] sm:$0xff]  ;;  %v1843_v29 = vmul.f32 %v1581_v4, %v50_v13  ;;  %1487 = vmatprep.mubr.msk.f32.mxu1 %vm302_vm0, %v269_v41  ;;  %v1925_v8 = vadd.f32 %v1586_v5, %v151_v56  ;;  %v1936_v11 = vadd.f32 %v1586_v5, %v152_v61  ;;  %v254_v37 = vmax.f32 %v1860_v35, 0.0  ;;  %v74_v41 = vld [vmem:[%s2749_s0 + $0x198] sm:$0xff] }
  0x25   :  { %v1846_v30 = vmul.f32 %v1581_v4, %v51_v14  ;;  %v1939_v12 = vadd.f32 %v1586_v5, %v153_v62  ;;  %v155_v13 = vmul.f32 %v1581_v4, %v84_v58  ;;  %v253_v14 = vmax.f32 %v1857_v34, 0.0 }
  0x26   :  { %v157_v57 = vmul.f32 %v1581_v4, %v86_v51  ;;  %v142_v27 = vmul.f32 %v1581_v4, %v71_v10  ;;  %v192_v32 = vadd.f32 %v1586_v5, %v1843_v29  ;;  %v123_v34 = vmul.f32 %v1581_v4, %v52_v18 }
  0x27   :  { %1449 = vmatmul.mubr.msk.f32.gmra.mrb[14].mxu0 %vm302_vm0, %v244_v48  ;;  %v1888_v48 = vadd.f32 %v1586_v5, %v138_v26  ;;  %1488 = vmatmul.mubr.msk.f32.gmra.mrb[8].mxu1 %vm302_vm0, %v270_v59  ;;  %v1960_v25 = vadd.f32 %v1586_v5, %v155_v13  ;;  %v211_v26 = vadd.f32 %v1586_v5, %v140_v53  ;;  %v274_v29 = vmax.f32 %v210_v15, 0.0 }
  0x28   :  { %1451 = vmatprep.mubr.msk.f32.mxu0 %vm302_vm0, %v245_v52  ;;  %v83_v52 = vld [vmem:[%s2749_s0 + $0x1e0] sm:$0xff]  ;;  %1490 = vmatprep.mubr.msk.f32.mxu1 %vm302_vm0, %v271_v2  ;;  %v193_v33 = vadd.f32 %v1586_v5, %v1846_v30  ;;  %v124_v36 = vmul.f32 %v1581_v4, %v53_v20  ;;  %v144_v35 = vmul.f32 %v1581_v4, %v73_v0  ;;  %v256_v47 = vmax.f32 %v192_v32, 0.0 }
  0x29   :  { %v154_v9 = vmul.f32 %v1581_v4, %v83_v52  ;;  %v275_v1 = vmax.f32 %v211_v26, 0.0  ;;  %v194_v44 = vadd.f32 %v1586_v5, %v123_v34  ;;  %v125_v46 = vmul.f32 %v1581_v4, %v54_v38 }
  0x2a   :  { %v195_v45 = vadd.f32 %v1586_v5, %v124_v36  ;;  %v145_v50 = vmul.f32 %v1581_v4, %v74_v41  ;;  %v257_v52 = vmax.f32 %v193_v33, 0.0  ;;  %v146_v56 = vmul.f32 %v1581_v4, %v75_v42 }
  0x2b   :  { %1452 = vmatmul.mubr.msk.f32.gmra.mrb[16].mxu0 %vm302_vm0, %v246_v63  ;;  %v85_v63 = vld [vmem:[%s2749_s0 + $0x1f0] sm:$0xff]  ;;  %v1945_v16 = vadd.f32 %v1586_v5, %v154_v9  ;;  %1491 = vmatmul.mubr.msk.f32.gmra.mrb[10].mxu1 %vm302_vm0, %v272_v21  ;;  %v258_v58 = vmax.f32 %v194_v44, 0.0  ;;  %v196_v59 = vadd.f32 %v1586_v5, %v125_v46  ;;  %v284_v10 = vmax.f32 %v1907_v60, 0.0 }
  0x2c   :  { %1454 = vmatprep.mubr.msk.f32.mxu0 %vm302_vm0, %v247_v3  ;;  %v70_v3 = vld [vmem:[%s2749_s0 + $0x178] sm:$0xff]  ;;  %v156_v17 = vmul.f32 %v1581_v4, %v85_v63  ;;  %v216_v62 = vadd.f32 %v1586_v5, %v145_v50  ;;  %v259_v63 = vmax.f32 %v195_v45, 0.0 }
  0x2d   :  { %v141_v22 = vmul.f32 %v1581_v4, %v70_v3  ;;  %v217_v3 = vadd.f32 %v1586_v5, %v146_v56  ;;  %v289_v60 = vmax.f32 %v1945_v16, 0.0 }
  0x2e   :  { %v1974_v31 = vadd.f32 %v1586_v5, %v156_v17  ;;  %v280_v9 = vmax.f32 %v216_v62, 0.0 }
  0x2f   :  { %1455 = vmatmul.mubr.msk.f32.gmra.mrb[18].mxu0 %vm302_vm0, %v248_v6  ;;  %v1922_v6 = vadd.f32 %v1586_v5, %v150_v55  ;;  %v212_v39 = vadd.f32 %v1586_v5, %v141_v22  ;;  %v215_v55 = vadd.f32 %v1586_v5, %v144_v35  ;;  %v281_v51 = vmax.f32 %v217_v3, 0.0 }
  0x30   :  { %1457 = vmatprep.mubr.msk.f32.mxu0 %vm302_vm0, %v249_v7  ;;  %v191_v7 = vadd.f32 %v1586_v5, %v120_v28  ;;  %v72_v28 = vld [vmem:[%s2749_s0 + $0x188] sm:$0xff] }
  0x31   :  { %v143_v30 = vmul.f32 %v1581_v4, %v72_v28  ;;  %v279_v2 = vmax.f32 %v215_v55, 0.0  ;;  %v260_v4 = vmax.f32 %v196_v59, 0.0  ;;  %v285_v13 = vmax.f32 %v1922_v6, 0.0 }
  0x32   :  { %v255_v40 = vmax.f32 %v191_v7, 0.0  ;;  %v282_v7 = vmax.f32 %v1877_v43, 0.0  ;;  %v287_v43 = vmax.f32 %v1936_v11, 0.0  ;;  %v290_v6 = vmax.f32 %v1960_v25, 0.0 }
  0x33   :  { %1458 = vmatmul.mubr.msk.f32.gmra.mrb[20].mxu0 %vm302_vm0, %v250_v19  ;;  %v273_v19 = vmax.f32 %v1888_v48, 0.0  ;;  %v276_v48 = vmax.f32 %v212_v39, 0.0  ;;  %v214_v49 = vadd.f32 %v1586_v5, %v143_v30 }
  0x34   :  { %1460 = vmatprep.mubr.msk.f32.mxu0 %vm302_vm0, %v251_v23  ;;  %v1980_v23 = vadd.f32 %v1586_v5, %v157_v57 }
  0x35   :  { %1493 = vmatprep.mubr.msk.f32.mxu1 %vm302_vm0, %v273_v19  ;;  %v278_v61 = vmax.f32 %v214_v49, 0.0 }
  0x36   :  { %1494 = vmatmul.mubr.msk.f32.gmra.mrb[12].mxu1 %vm302_vm0, %v274_v29  ;;  %v292_v11 = vmax.f32 %v1980_v23, 0.0 }
  0x37   :  { %1461 = vmatmul.mubr.msk.f32.gmra.mrb[22].mxu0 %vm302_vm0, %v252_v24  ;;  %v213_v24 = vadd.f32 %v1586_v5, %v142_v27  ;;  %1496 = vmatprep.mubr.msk.f32.mxu1 %vm302_vm0, %v275_v1  ;;  %v283_v5 = vmax.f32 %v1897_v54, 0.0  ;;  %v288_v54 = vmax.f32 %v1939_v12, 0.0  ;;  %v2058_v12 = vld [vmem:[%s2752_s4] ss:$0 sm:$0xff] }
  0x38   :  { %1463 = vmatprep.mubr.msk.f32.mxu0 %vm302_vm0, %v253_v14  ;;  %v286_v14 = vmax.f32 %v1925_v8, 0.0  ;;  %v291_v8 = vmax.f32 %v1974_v31, 0.0 }
  0x39   :  { %v277_v53 = vmax.f32 %v213_v24, 0.0 }
  0x3a   :  { %1497 = vmatmul.mubr.msk.f32.gmra.mrb[14].mxu1 %vm302_vm0, %v276_v48 }
  0x3b   :  { %1464 = vmatmul.mubr.msk.f32.gmra.mrb[24].mxu0 %vm302_vm0, %v254_v37  ;;  %1499 = vmatprep.mubr.msk.f32.mxu1 %vm302_vm0, %v277_v53 }
  0x3c   :  { %1466 = vmatprep.mubr.msk.f32.mxu0 %vm302_vm0, %v255_v40 }
  0x3e   :  { %1500 = vmatmul.mubr.msk.f32.gmra.mrb[16].mxu1 %vm302_vm0, %v278_v61 }
  0x3f   :  { %1467 = vmatmul.mubr.msk.f32.gmra.mrb[26].mxu0 %vm302_vm0, %v256_v47  ;;  %1502 = vmatprep.mubr.msk.f32.mxu1 %vm302_vm0, %v279_v2 }
  0x40   :  { %1469 = vmatprep.mubr.msk.f32.mxu0 %vm302_vm0, %v257_v52 }
  0x42   :  { %1503 = vmatmul.mubr.msk.f32.gmra.mrb[18].mxu1 %vm302_vm0, %v280_v9 }
  0x43   :  { %1470 = vmatmul.mubr.msk.f32.gmra.mrb[28].mxu0 %vm302_vm0, %v258_v58  ;;  %1505 = vmatprep.mubr.msk.f32.mxu1 %vm302_vm0, %v281_v51 }
  0x44   :  { %1472 = vmatprep.mubr.msk.f32.mxu0 %vm302_vm0, %v259_v63 }
  0x46   :  { %1506 = vmatmul.mubr.msk.f32.gmra.mrb[20].mxu1 %vm302_vm0, %v282_v7 }
  0x47   :  { %1473 = vmatmul.mubr.msk.f32.gmra.mrb[30].mxu0 %vm302_vm0, %v260_v4  ;;  %1508 = vmatprep.mubr.msk.f32.mxu1 %vm302_vm0, %v283_v5 }
  0x4a   :  { %1509 = vmatmul.mubr.msk.f32.gmra.mrb[22].mxu1 %vm302_vm0, %v284_v10 }
  0x4b   :  { %1511 = vmatprep.mubr.msk.f32.mxu1 %vm302_vm0, %v285_v13 }
  0x4e   :  { %1512 = vmatmul.mubr.msk.f32.gmra.mrb[24].mxu1 %vm302_vm0, %v286_v14 }
  0x4f   :  { %1514 = vmatprep.mubr.msk.f32.mxu1 %vm302_vm0, %v287_v43 }
  0x52   :  { %1515 = vmatmul.mubr.msk.f32.gmra.mrb[26].mxu1 %vm302_vm0, %v288_v54 }
  0x53   :  { %1517 = vmatprep.mubr.msk.f32.mxu1 %vm302_vm0, %v289_v60 }
  0x56   :  { %1518 = vmatmul.mubr.msk.f32.gmra.mrb[28].mxu1 %vm302_vm0, %v290_v6 }
  0x57   :  { %1520 = vmatprep.mubr.msk.f32.mxu1 %vm302_vm0, %v291_v8 }
  0x5a   :  { %1521 = vmatmul.mubr.msk.f32.gmra.mrb[30].mxu1 %vm302_vm0, %v292_v11 }
  0xde   :  { %v1429_v15 = vpop.f32.mrb[0].mxu0 }
  0xdf   :  { %v567_v16 = vadd.f32 %v1429_v15, %v2058_v12  ;;  %v561_v17 = vpop.f32.mrb[1].mxu0 }
  0xe0   :  { %v562_v18 = vadd.f32 %v2058_v12, %v561_v17 }
  0xe1   :  { %882 = vst.msk [vmem:[%s2753_s5 + $0x8] sm:$0xff] %vm880_vm1, %v567_v16  ;;  %v946_v20 = vsel %vm880_vm1, %v567_v16, 0.0  ;;  %v1081_v21 = vmul.f32 %v567_v16, %v567_v16 }
  0xe2   :  { %881 = vst.msk [vmem:[%s2753_s5] sm:$0xff] %vm880_vm1, %v562_v18  ;;  %v945_v22 = vsel %vm880_vm1, %v562_v18, 0.0  ;;  %v1080_v25 = vmul.f32 %v562_v18, %v562_v18  ;;  %v1432_v57 = vpop.f32.mrb[2].mxu0 }
  0xe3   :  { %v1145_v19 = vsel %vm880_vm1, %v1081_v21, 0.0  ;;  %v947_v26 = vadd.f32 %v946_v20, %v945_v22  ;;  %v577_v27 = vadd.f32 %v1432_v57, %v2058_v12  ;;  %v571_v28 = vpop.f32.mrb[3].mxu0 }
  0xe4   :  { %v1144_v31 = vsel %vm880_vm1, %v1080_v25, 0.0  ;;  %v572_v0 = vadd.f32 %v2058_v12, %v571_v28 }
  0xe5   :  { %v1146_v23 = vadd.f32 %v1145_v19, %v1144_v31  ;;  %884 = vst.msk [vmem:[%s2753_s5 + $0x18] sm:$0xff] %vm880_vm1, %v577_v27  ;;  %v1083_v32 = vmul.f32 %v577_v27, %v577_v27  ;;  %v950_v39 = vsel %vm880_vm1, %v577_v27, 0.0 }
  0xe6   :  { %883 = vst.msk [vmem:[%s2753_s5 + $0x10] sm:$0xff] %vm880_vm1, %v572_v0  ;;  %v948_v33 = vsel %vm880_vm1, %v572_v0, 0.0  ;;  %v1082_v34 = vmul.f32 %v572_v0, %v572_v0  ;;  %v1435_v36 = vpop.f32.mrb[4].mxu0 }
  0xe7   :  { %v949_v37 = vadd.f32 %v948_v33, %v947_v26  ;;  %v587_v38 = vadd.f32 %v1435_v36, %v2058_v12  ;;  %v581_v29 = vpop.f32.mrb[5].mxu0  ;;  %v1149_v35 = vsel %vm880_vm1, %v1083_v32, 0.0 }
  0xe8   :  { %v1147_v30 = vsel %vm880_vm1, %v1082_v34, 0.0  ;;  %v582_v40 = vadd.f32 %v2058_v12, %v581_v29 }
  0xe9   :  { %v1148_v1 = vadd.f32 %v1147_v30, %v1146_v23  ;;  %886 = vst.msk [vmem:[%s2753_s5 + $0x28] sm:$0xff] %vm880_vm1, %v587_v38  ;;  %v951_v24 = vadd.f32 %v950_v39, %v949_v37  ;;  %v1085_v41 = vmul.f32 %v587_v38, %v587_v38  ;;  %v954_v50 = vsel %vm880_vm1, %v587_v38, 0.0 }
  0xea   :  { %885 = vst.msk [vmem:[%s2753_s5 + $0x20] sm:$0xff] %vm880_vm1, %v582_v40  ;;  %v952_v42 = vsel %vm880_vm1, %v582_v40, 0.0  ;;  %v1084_v44 = vmul.f32 %v582_v40, %v582_v40  ;;  %v1438_v45 = vpop.f32.mrb[6].mxu0  ;;  %v1477_v28 = vpop.f32.mrb[0].mxu1 }
  0xeb   :  { %v953_v46 = vadd.f32 %v952_v42, %v951_v24  ;;  %v1150_v47 = vadd.f32 %v1149_v35, %v1148_v1  ;;  %v597_v48 = vadd.f32 %v1438_v45, %v2058_v12  ;;  %v591_v49 = vpop.f32.mrb[7].mxu0  ;;  %v1153_v58 = vsel %vm880_vm1, %v1085_v41, 0.0  ;;  %v721_v34 = vpop.f32.mrb[1].mxu1 }
  0xec   :  { %v1151_v52 = vsel %vm880_vm1, %v1084_v44, 0.0  ;;  %v592_v53 = vadd.f32 %v2058_v12, %v591_v49  ;;  %v2146_v38 = vadd.f32 %v1477_v28, %v2058_v12  ;;  %v2149_v29 = vadd.f32 %v2058_v12, %v721_v34 }
  0xed   :  { %v1152_v55 = vadd.f32 %v1151_v52, %v1150_v47  ;;  %888 = vst.msk [vmem:[%s2753_s5 + $0x38] sm:$0xff] %vm880_vm1, %v597_v48  ;;  %v955_v56 = vadd.f32 %v954_v50, %v953_v46  ;;  %v1087_v59 = vmul.f32 %v597_v48, %v597_v48  ;;  %v958_v51 = vsel %vm880_vm1, %v597_v48, 0.0 }
  0xee   :  { %887 = vst.msk [vmem:[%s2753_s5 + $0x30] sm:$0xff] %vm880_vm1, %v592_v53  ;;  %v956_v61 = vsel %vm880_vm1, %v592_v53, 0.0  ;;  %v1086_v62 = vmul.f32 %v592_v53, %v592_v53  ;;  %v1441_v63 = vpop.f32.mrb[8].mxu0  ;;  %914 = vst.msk [vmem:[%s2753_s5 + $0x108] sm:$0xff] %vm880_vm1, %v2146_v38  ;;  %v1480_v42 = vpop.f32.mrb[2].mxu1 }
  0xef   :  { %v957_v2 = vadd.f32 %v956_v61, %v955_v56  ;;  %v1154_v3 = vadd.f32 %v1153_v58, %v1152_v55  ;;  %v607_v4 = vadd.f32 %v1441_v63, %v2058_v12  ;;  %v601_v9 = vpop.f32.mrb[9].mxu0  ;;  %v1157_v14 = vsel %vm880_vm1, %v1087_v59, 0.0  ;;  %913 = vst.msk [vmem:[%s2753_s5 + $0x100] sm:$0xff] %vm880_vm1, %v2149_v29  ;;  %v731_v48 = vpop.f32.mrb[3].mxu1 }
  0xf0   :  { %v1155_v7 = vsel %vm880_vm1, %v1086_v62, 0.0  ;;  %v602_v5 = vadd.f32 %v2058_v12, %v601_v9  ;;  %v2186_v63 = vadd.f32 %v1480_v42, %v2058_v12 }
  0xf1   :  { %v1156_v10 = vadd.f32 %v1155_v7, %v1154_v3  ;;  %890 = vst.msk [vmem:[%s2753_s5 + $0x48] sm:$0xff] %vm880_vm1, %v607_v4  ;;  %v959_v13 = vadd.f32 %v958_v51, %v957_v2  ;;  %v1089_v43 = vmul.f32 %v607_v4, %v607_v4  ;;  %v962_v17 = vsel %vm880_vm1, %v607_v4, 0.0 }
  0xf2   :  { %889 = vst.msk [vmem:[%s2753_s5 + $0x40] sm:$0xff] %vm880_vm1, %v602_v5  ;;  %v960_v54 = vsel %vm880_vm1, %v602_v5, 0.0  ;;  %v1088_v60 = vmul.f32 %v602_v5, %v602_v5  ;;  %v1444_v6 = vpop.f32.mrb[10].mxu0  ;;  %v1483_v2 = vpop.f32.mrb[4].mxu1  ;;  %916 = vst.msk [vmem:[%s2753_s5 + $0x118] sm:$0xff] %vm880_vm1, %v2186_v63 }
  0xf3   :  { %v961_v8 = vadd.f32 %v960_v54, %v959_v13  ;;  %v1158_v11 = vadd.f32 %v1157_v14, %v1156_v10  ;;  %v617_v15 = vadd.f32 %v1444_v6, %v2058_v12  ;;  %v611_v16 = vpop.f32.mrb[11].mxu0  ;;  %v1161_v25 = vsel %vm880_vm1, %v1089_v43, 0.0  ;;  %v741_v7 = vpop.f32.mrb[5].mxu1 }
  0xf4   :  { %v1159_v18 = vsel %vm880_vm1, %v1088_v60, 0.0  ;;  %v612_v20 = vadd.f32 %v2058_v12, %v611_v16 }
  0xf5   :  { %v1160_v21 = vadd.f32 %v1159_v18, %v1158_v11  ;;  %892 = vst.msk [vmem:[%s2753_s5 + $0x58] sm:$0xff] %vm880_vm1, %v617_v15  ;;  %v963_v22 = vadd.f32 %v962_v17, %v961_v8  ;;  %v1091_v57 = vmul.f32 %v617_v15, %v617_v15  ;;  %v966_v31 = vsel %vm880_vm1, %v617_v15, 0.0 }
  0xf6   :  { %891 = vst.msk [vmem:[%s2753_s5 + $0x50] sm:$0xff] %vm880_vm1, %v612_v20  ;;  %v964_v19 = vsel %vm880_vm1, %v612_v20, 0.0  ;;  %v1090_v26 = vmul.f32 %v612_v20, %v612_v20  ;;  %v1447_v27 = vpop.f32.mrb[12].mxu0  ;;  %v2208_v15 = vadd.f32 %v2058_v12, %v731_v48  ;;  %v1486_v16 = vpop.f32.mrb[6].mxu1 }
  0xf7   :  { %v965_v0 = vadd.f32 %v964_v19, %v963_v22  ;;  %v1162_v23 = vadd.f32 %v1161_v25, %v1160_v21  ;;  %v627_v32 = vadd.f32 %v1447_v27, %v2058_v12  ;;  %v621_v33 = vpop.f32.mrb[13].mxu0  ;;  %v1165_v1 = vsel %vm880_vm1, %v1091_v57, 0.0  ;;  %v2211_v22 = vpop.f32.mrb[7].mxu1 }
  0xf8   :  { %v1163_v36 = vsel %vm880_vm1, %v1090_v26, 0.0  ;;  %v622_v37 = vadd.f32 %v2058_v12, %v621_v33  ;;  %915 = vst.msk [vmem:[%s2753_s5 + $0x110] sm:$0xff] %vm880_vm1, %v2208_v15  ;;  %v2232_v33 = vadd.f32 %v1483_v2, %v2058_v12 }
  0xf9   :  { %v1164_v39 = vadd.f32 %v1163_v36, %v1162_v23  ;;  %894 = vst.msk [vmem:[%s2753_s5 + $0x68] sm:$0xff] %vm880_vm1, %v627_v32  ;;  %v1093_v30 = vmul.f32 %v627_v32, %v627_v32  ;;  %v967_v40 = vadd.f32 %v966_v31, %v965_v0  ;;  %v970_v49 = vsel %vm880_vm1, %v627_v32, 0.0 }
  0xfa   :  { %893 = vst.msk [vmem:[%s2753_s5 + $0x60] sm:$0xff] %vm880_vm1, %v622_v37  ;;  %v968_v24 = vsel %vm880_vm1, %v622_v37, 0.0  ;;  %v1092_v35 = vmul.f32 %v622_v37, %v622_v37  ;;  %v1450_v41 = vpop.f32.mrb[14].mxu0  ;;  %v2234_v34 = vpop.f32.mrb[8].mxu1  ;;  %918 = vst.msk [vmem:[%s2753_s5 + $0x128] sm:$0xff] %vm880_vm1, %v2232_v33 }
  0xfb   :  { %v969_v44 = vadd.f32 %v968_v24, %v967_v40  ;;  %v1166_v45 = vadd.f32 %v1165_v1, %v1164_v39  ;;  %v637_v46 = vadd.f32 %v1450_v41, %v2058_v12  ;;  %v631_v47 = vpop.f32.mrb[15].mxu0  ;;  %v1169_v53 = vsel %vm880_vm1, %v1093_v30, 0.0  ;;  %v2237_v40 = vpop.f32.mrb[9].mxu1 }
  0xfc   :  { %v1167_v50 = vsel %vm880_vm1, %v1092_v35, 0.0  ;;  %v632_v52 = vadd.f32 %v2058_v12, %v631_v47 }
  0xfd   :  { %v1168_v55 = vadd.f32 %v1167_v50, %v1166_v45  ;;  %896 = vst.msk [vmem:[%s2753_s5 + $0x78] sm:$0xff] %vm880_vm1, %v637_v46  ;;  %v971_v56 = vadd.f32 %v970_v49, %v969_v44  ;;  %v1095_v58 = vmul.f32 %v637_v46, %v637_v46  ;;  %v974_v5 = vsel %vm880_vm1, %v637_v46, 0.0 }
  0xfe   :  { %895 = vst.msk [vmem:[%s2753_s5 + $0x70] sm:$0xff] %vm880_vm1, %v632_v52  ;;  %v972_v59 = vsel %vm880_vm1, %v632_v52, 0.0  ;;  %v1094_v61 = vmul.f32 %v632_v52, %v632_v52  ;;  %v1453_v62 = vpop.f32.mrb[16].mxu0  ;;  %v2258_v49 = vadd.f32 %v2058_v12, %v741_v7  ;;  %v2260_v50 = vpop.f32.mrb[10].mxu1 }
  0xff   :  { %v973_v3 = vadd.f32 %v972_v59, %v971_v56  ;;  %v1170_v4 = vadd.f32 %v1169_v53, %v1168_v55  ;;  %v647_v9 = vadd.f32 %v1453_v62, %v2058_v12  ;;  %v641_v51 = vpop.f32.mrb[17].mxu0  ;;  %v1173_v60 = vsel %vm880_vm1, %v1095_v58, 0.0  ;;  %v2263_v58 = vpop.f32.mrb[11].mxu1 }
 0x100   :  { %v1171_v10 = vsel %vm880_vm1, %v1094_v61, 0.0  ;;  %v642_v13 = vadd.f32 %v2058_v12, %v641_v51  ;;  %917 = vst.msk [vmem:[%s2753_s5 + $0x120] sm:$0xff] %vm880_vm1, %v2258_v49 }
 0x101   :  { %v1172_v14 = vadd.f32 %v1171_v10, %v1170_v4  ;;  %898 = vst.msk [vmem:[%s2753_s5 + $0x88] sm:$0xff] %vm880_vm1, %v647_v9  ;;  %v1097_v43 = vmul.f32 %v647_v9, %v647_v9  ;;  %v975_v54 = vadd.f32 %v974_v5, %v973_v3  ;;  %v978_v25 = vsel %vm880_vm1, %v647_v9, 0.0 }
 0x102   :  { %897 = vst.msk [vmem:[%s2753_s5 + $0x80] sm:$0xff] %vm880_vm1, %v642_v13  ;;  %v976_v6 = vsel %vm880_vm1, %v642_v13, 0.0  ;;  %v1096_v8 = vmul.f32 %v642_v13, %v642_v13  ;;  %v1456_v11 = vpop.f32.mrb[18].mxu0  ;;  %v2284_v10 = vadd.f32 %v1486_v16, %v2058_v12 }
 0x103   :  { %v977_v17 = vadd.f32 %v976_v6, %v975_v54  ;;  %v1174_v18 = vadd.f32 %v1173_v60, %v1172_v14  ;;  %v657_v20 = vadd.f32 %v1456_v11, %v2058_v12  ;;  %v651_v21 = vpop.f32.mrb[19].mxu0  ;;  %v1177_v26 = vsel %vm880_vm1, %v1097_v43, 0.0 }
 0x104   :  { %v1175_v57 = vsel %vm880_vm1, %v1096_v8, 0.0  ;;  %v652_v19 = vadd.f32 %v2058_v12, %v651_v21  ;;  %920 = vst.msk [vmem:[%s2753_s5 + $0x138] sm:$0xff] %vm880_vm1, %v2284_v10 }
 0x105   :  { %v1176_v27 = vadd.f32 %v1175_v57, %v1174_v18  ;;  %900 = vst.msk [vmem:[%s2753_s5 + $0x98] sm:$0xff] %vm880_vm1, %v657_v20  ;;  %v979_v28 = vadd.f32 %v978_v25, %v977_v17  ;;  %v1099_v31 = vmul.f32 %v657_v20, %v657_v20  ;;  %v982_v1 = vsel %vm880_vm1, %v657_v20, 0.0 }
 0x106   :  { %899 = vst.msk [vmem:[%s2753_s5 + $0x90] sm:$0xff] %vm880_vm1, %v652_v19  ;;  %v980_v0 = vsel %vm880_vm1, %v652_v19, 0.0  ;;  %v1098_v23 = vmul.f32 %v652_v19, %v652_v19  ;;  %v1459_v32 = vpop.f32.mrb[20].mxu0 }
 0x107   :  { %v981_v36 = vadd.f32 %v980_v0, %v979_v28  ;;  %v1178_v37 = vadd.f32 %v1177_v26, %v1176_v27  ;;  %v667_v39 = vadd.f32 %v1459_v32, %v2058_v12  ;;  %v661_v30 = vpop.f32.mrb[21].mxu0  ;;  %v1181_v45 = vsel %vm880_vm1, %v1099_v31, 0.0 }
 0x108   :  { %v1179_v24 = vsel %vm880_vm1, %v1098_v23, 0.0  ;;  %v662_v35 = vadd.f32 %v2058_v12, %v661_v30  ;;  %v2311_v26 = vadd.f32 %v2058_v12, %v2211_v22 }
 0x109   :  { %v1180_v41 = vadd.f32 %v1179_v24, %v1178_v37  ;;  %902 = vst.msk [vmem:[%s2753_s5 + $0xa8] sm:$0xff] %vm880_vm1, %v667_v39  ;;  %v1101_v42 = vmul.f32 %v667_v39, %v667_v39  ;;  %v983_v44 = vadd.f32 %v982_v1, %v981_v36  ;;  %v986_v59 = vsel %vm880_vm1, %v667_v39, 0.0  ;;  %v2286_v13 = vpop.f32.mrb[12].mxu1 }
 0x10a   :  { %901 = vst.msk [vmem:[%s2753_s5 + $0xa0] sm:$0xff] %vm880_vm1, %v662_v35  ;;  %v984_v46 = vsel %vm880_vm1, %v662_v35, 0.0  ;;  %v1100_v47 = vmul.f32 %v662_v35, %v662_v35  ;;  %v1462_v48 = vpop.f32.mrb[22].mxu0  ;;  %v2289_v6 = vpop.f32.mrb[13].mxu1  ;;  %919 = vst.msk [vmem:[%s2753_s5 + $0x130] sm:$0xff] %vm880_vm1, %v2311_v26 }
 0x10b   :  { %v985_v52 = vadd.f32 %v984_v46, %v983_v44  ;;  %v1182_v53 = vadd.f32 %v1181_v45, %v1180_v41  ;;  %v677_v55 = vadd.f32 %v1462_v48, %v2058_v12  ;;  %v671_v56 = vpop.f32.mrb[23].mxu0  ;;  %v1185_v2 = vsel %vm880_vm1, %v1101_v42, 0.0 }
 0x10c   :  { %v1183_v61 = vsel %vm880_vm1, %v1100_v47, 0.0  ;;  %v672_v62 = vadd.f32 %v2058_v12, %v671_v56  ;;  %v2338_v44 = vadd.f32 %v2234_v34, %v2058_v12 }
 0x10d   :  { %v1184_v3 = vadd.f32 %v1183_v61, %v1182_v53  ;;  %904 = vst.msk [vmem:[%s2753_s5 + $0xb8] sm:$0xff] %vm880_vm1, %v677_v55  ;;  %v987_v4 = vadd.f32 %v986_v59, %v985_v52  ;;  %v1103_v9 = vmul.f32 %v677_v55, %v677_v55  ;;  %v990_v8 = vsel %vm880_vm1, %v677_v55, 0.0  ;;  %v2313_v27 = vpop.f32.mrb[14].mxu1 }
 0x10e   :  { %903 = vst.msk [vmem:[%s2753_s5 + $0xb0] sm:$0xff] %vm880_vm1, %v672_v62  ;;  %v988_v51 = vsel %vm880_vm1, %v672_v62, 0.0  ;;  %v1102_v7 = vmul.f32 %v672_v62, %v672_v62  ;;  %v1465_v5 = vpop.f32.mrb[24].mxu0  ;;  %v2316_v32 = vpop.f32.mrb[15].mxu1  ;;  %922 = vst.msk [vmem:[%s2753_s5 + $0x148] sm:$0xff] %vm880_vm1, %v2338_v44 }
 0x10f   :  { %v989_v14 = vadd.f32 %v988_v51, %v987_v4  ;;  %v1186_v43 = vadd.f32 %v1185_v2, %v1184_v3  ;;  %v687_v54 = vadd.f32 %v1465_v5, %v2058_v12  ;;  %v681_v60 = vpop.f32.mrb[25].mxu0  ;;  %v1189_v21 = vsel %vm880_vm1, %v1103_v9, 0.0 }
 0x110   :  { %v1187_v11 = vsel %vm880_vm1, %v1102_v7, 0.0  ;;  %v682_v17 = vadd.f32 %v2058_v12, %v681_v60  ;;  %v2365_v51 = vadd.f32 %v2058_v12, %v2237_v40 }
 0x111   :  { %v1188_v16 = vadd.f32 %v1187_v11, %v1186_v43  ;;  %906 = vst.msk [vmem:[%s2753_s5 + $0xc8] sm:$0xff] %vm880_vm1, %v687_v54  ;;  %v1105_v18 = vmul.f32 %v687_v54, %v687_v54  ;;  %v991_v20 = vadd.f32 %v990_v8, %v989_v14  ;;  %v994_v36 = vsel %vm880_vm1, %v687_v54, 0.0  ;;  %v2340_v45 = vpop.f32.mrb[16].mxu1 }
 0x112   :  { %905 = vst.msk [vmem:[%s2753_s5 + $0xc0] sm:$0xff] %vm880_vm1, %v682_v17  ;;  %v992_v25 = vsel %vm880_vm1, %v682_v17, 0.0  ;;  %v1104_v57 = vmul.f32 %v682_v17, %v682_v17  ;;  %v1468_v19 = vpop.f32.mrb[26].mxu0  ;;  %v2343_v53 = vpop.f32.mrb[17].mxu1  ;;  %921 = vst.msk [vmem:[%s2753_s5 + $0x140] sm:$0xff] %vm880_vm1, %v2365_v51 }
 0x113   :  { %v993_v28 = vadd.f32 %v992_v25, %v991_v20  ;;  %v1190_v31 = vadd.f32 %v1189_v21, %v1188_v16  ;;  %v697_v0 = vadd.f32 %v1468_v19, %v2058_v12  ;;  %v691_v23 = vpop.f32.mrb[27].mxu0  ;;  %v1193_v22 = vsel %vm880_vm1, %v1105_v18, 0.0 }
 0x114   :  { %v1191_v37 = vsel %vm880_vm1, %v1104_v57, 0.0  ;;  %v692_v39 = vadd.f32 %v2058_v12, %v691_v23  ;;  %v1112_v20 = vmul.f32 %v2149_v29, %v2149_v29  ;;  %v2392_v19 = vadd.f32 %v2260_v50, %v2058_v12 }
 0x115   :  { %v1192_v30 = vadd.f32 %v1191_v37, %v1190_v31  ;;  %908 = vst.msk [vmem:[%s2753_s5 + $0xd8] sm:$0xff] %vm880_vm1, %v697_v0  ;;  %v995_v1 = vadd.f32 %v994_v36, %v993_v28  ;;  %v1107_v24 = vmul.f32 %v697_v0, %v697_v0  ;;  %v998_v55 = vsel %vm880_vm1, %v697_v0, 0.0  ;;  %v2367_v7 = vpop.f32.mrb[18].mxu1 }
 0x116   :  { %907 = vst.msk [vmem:[%s2753_s5 + $0xd0] sm:$0xff] %vm880_vm1, %v692_v39  ;;  %v996_v35 = vsel %vm880_vm1, %v692_v39, 0.0  ;;  %v1106_v41 = vmul.f32 %v692_v39, %v692_v39  ;;  %v1471_v42 = vpop.f32.mrb[28].mxu0  ;;  %v811_v60 = vpop.f32.mrb[19].mxu1  ;;  %v2398_v23 = vadd.f32 %v2058_v12, %v2263_v58  ;;  %v1008_v50 = vsel %vm880_vm1, %v2149_v29, 0.0  ;;  %924 = vst.msk [vmem:[%s2753_s5 + $0x158] sm:$0xff] %vm880_vm1, %v2392_v19 }
 0x117   :  { %v997_v46 = vadd.f32 %v996_v35, %v995_v1  ;;  %v1194_v47 = vadd.f32 %v1193_v22, %v1192_v30  ;;  %v707_v48 = vadd.f32 %v1471_v42, %v2058_v12  ;;  %v701_v52 = vpop.f32.mrb[29].mxu0  ;;  %v1197_v2 = vsel %vm880_vm1, %v1107_v24, 0.0 }
 0x118   :  { %v1195_v56 = vsel %vm880_vm1, %v1106_v41, 0.0  ;;  %v702_v59 = vadd.f32 %v2058_v12, %v701_v52  ;;  %v1113_v22 = vmul.f32 %v2146_v38, %v2146_v38  ;;  %v1207_v1 = vsel %vm880_vm1, %v1112_v20, 0.0  ;;  %923 = vst.msk [vmem:[%s2753_s5 + $0x150] sm:$0xff] %vm880_vm1, %v2398_v23 }
 0x119   :  { %v1196_v34 = vadd.f32 %v1195_v56, %v1194_v47  ;;  %910 = vst.msk [vmem:[%s2753_s5 + $0xe8] sm:$0xff] %vm880_vm1, %v707_v48  ;;  %v1109_v61 = vmul.f32 %v707_v48, %v707_v48  ;;  %v999_v62 = vadd.f32 %v998_v55, %v997_v46  ;;  %v1002_v8 = vsel %vm880_vm1, %v707_v48, 0.0  ;;  %v2394_v28 = vpop.f32.mrb[20].mxu1 }
 0x11a   :  { %909 = vst.msk [vmem:[%s2753_s5 + $0xe0] sm:$0xff] %vm880_vm1, %v702_v59  ;;  %v1000_v3 = vsel %vm880_vm1, %v702_v59, 0.0  ;;  %v1108_v4 = vmul.f32 %v702_v59, %v702_v59  ;;  %v1474_v9 = vpop.f32.mrb[30].mxu0  ;;  %v2400_v36 = vpop.f32.mrb[21].mxu1  ;;  %v1114_v24 = vmul.f32 %v2208_v15, %v2208_v15  ;;  %v2424_v35 = vadd.f32 %v2286_v13, %v2058_v12 }
 0x11b   :  { %v1001_v5 = vadd.f32 %v1000_v3, %v999_v62  ;;  %v1198_v14 = vadd.f32 %v1197_v2, %v1196_v34  ;;  %v717_v43 = vadd.f32 %v1474_v9, %v2058_v12  ;;  %v711_v54 = vpop.f32.mrb[31].mxu0  ;;  %v1201_v40 = vsel %vm880_vm1, %v1109_v61, 0.0 }
 0x11c   :  { %v1199_v11 = vsel %vm880_vm1, %v1108_v4, 0.0  ;;  %v712_v17 = vadd.f32 %v2058_v12, %v711_v54  ;;  %v2428_v41 = vadd.f32 %v2058_v12, %v2289_v6  ;;  %v2432_v42 = vadd.f32 %v2313_v27, %v2058_v12  ;;  %926 = vst.msk [vmem:[%s2753_s5 + $0x168] sm:$0xff] %vm880_vm1, %v2424_v35 }
 0x11d   :  { %v1200_v16 = vadd.f32 %v1199_v11, %v1198_v14  ;;  %912 = vst.msk [vmem:[%s2753_s5 + $0xf8] sm:$0xff] %vm880_vm1, %v717_v43  ;;  %v1003_v18 = vadd.f32 %v1002_v8, %v1001_v5  ;;  %v1111_v21 = vmul.f32 %v717_v43, %v717_v43  ;;  %v1006_v37 = vsel %vm880_vm1, %v717_v43, 0.0  ;;  %v1510_v46 = vpop.f32.mrb[22].mxu1 }
 0x11e   :  { %911 = vst.msk [vmem:[%s2753_s5 + $0xf0] sm:$0xff] %vm880_vm1, %v712_v17  ;;  %v1004_v25 = vsel %vm880_vm1, %v712_v17, 0.0  ;;  %v1110_v57 = vmul.f32 %v712_v17, %v712_v17  ;;  %v2436_v52 = vadd.f32 %v2058_v12, %v2316_v32  ;;  %v831_v55 = vpop.f32.mrb[23].mxu1  ;;  %v1010_v13 = vsel %vm880_vm1, %v2146_v38, 0.0  ;;  %925 = vst.msk [vmem:[%s2753_s5 + $0x160] sm:$0xff] %vm880_vm1, %v2428_v41 }
 0x11f   :  { %v1005_v31 = vadd.f32 %v1004_v25, %v1003_v18  ;;  %v1202_v0 = vadd.f32 %v1201_v40, %v1200_v16  ;;  %v1205_v29 = vsel %vm880_vm1, %v1111_v21, 0.0  ;;  %v1012_v56 = vsel %vm880_vm1, %v2208_v15, 0.0  ;;  %928 = vst.msk [vmem:[%s2753_s5 + $0x178] sm:$0xff] %vm880_vm1, %v2432_v42 }
 0x120   :  { %v1203_v39 = vsel %vm880_vm1, %v1110_v57, 0.0  ;;  %927 = vst.msk [vmem:[%s2753_s5 + $0x170] sm:$0xff] %vm880_vm1, %v2436_v52  ;;  %v1209_v6 = vsel %vm880_vm1, %v1113_v22, 0.0  ;;  %v1115_v27 = vmul.f32 %v2186_v63, %v2186_v63  ;;  %v1211_v32 = vsel %vm880_vm1, %v1114_v24, 0.0 }
 0x121   :  { %v1204_v58 = vadd.f32 %v1203_v39, %v1202_v0  ;;  %v1007_v30 = vadd.f32 %v1006_v37, %v1005_v31  ;;  %v1116_v59 = vmul.f32 %v2258_v49, %v2258_v49  ;;  %v1513_v34 = vpop.f32.mrb[24].mxu1  ;;  %v1014_v61 = vsel %vm880_vm1, %v2186_v63, 0.0 }
 0x122   :  { %v2472_v3 = vadd.f32 %v2340_v45, %v2058_v12  ;;  %v841_v4 = vpop.f32.mrb[25].mxu1  ;;  %v1016_v9 = vsel %vm880_vm1, %v2258_v49, 0.0  ;;  %v2478_v5 = vadd.f32 %v2058_v12, %v2343_v53  ;;  %v2482_v14 = vadd.f32 %v2367_v7, %v2058_v12 }
 0x123   :  { %v1009_v47 = vadd.f32 %v1008_v50, %v1007_v30  ;;  %v1206_v48 = vadd.f32 %v1205_v29, %v1204_v58  ;;  %v2485_v63 = vadd.f32 %v2058_v12, %v811_v60  ;;  %v1213_v49 = vsel %vm880_vm1, %v1115_v27, 0.0 }
 0x124   :  { %930 = vst.msk [vmem:[%s2753_s5 + $0x188] sm:$0xff] %vm880_vm1, %v2472_v3  ;;  %v1117_v45 = vmul.f32 %v2232_v33, %v2232_v33  ;;  %v1215_v53 = vsel %vm880_vm1, %v1116_v59, 0.0  ;;  %v1118_v7 = vmul.f32 %v2311_v26, %v2311_v26  ;;  %929 = vst.msk [vmem:[%s2753_s5 + $0x180] sm:$0xff] %vm880_vm1, %v2478_v5  ;;  %v1018_v8 = vsel %vm880_vm1, %v2232_v33, 0.0 }
 0x125   :  { %v1208_v38 = vadd.f32 %v1207_v1, %v1206_v48  ;;  %v1011_v15 = vadd.f32 %v1010_v13, %v1009_v47  ;;  %932 = vst.msk [vmem:[%s2753_s5 + $0x198] sm:$0xff] %vm880_vm1, %v2482_v14  ;;  %931 = vst.msk [vmem:[%s2753_s5 + $0x190] sm:$0xff] %vm880_vm1, %v2485_v63  ;;  %v1516_v60 = vpop.f32.mrb[26].mxu1  ;;  %v1119_v16 = vmul.f32 %v2284_v10, %v2284_v10  ;;  %v1020_v18 = vsel %vm880_vm1, %v2311_v26, 0.0 }
 0x126   :  { %v851_v40 = vpop.f32.mrb[27].mxu1  ;;  %v1120_v20 = vmul.f32 %v2365_v51, %v2365_v51  ;;  %v2523_v21 = vadd.f32 %v2394_v28, %v2058_v12  ;;  %v2527_v33 = vadd.f32 %v2058_v12, %v2400_v36  ;;  %v2530_v31 = vadd.f32 %v1510_v46, %v2058_v12 }
 0x127   :  { %v1013_v62 = vadd.f32 %v1012_v56, %v1011_v15  ;;  %v1210_v2 = vadd.f32 %v1209_v6, %v1208_v38  ;;  %v1217_v0 = vsel %vm880_vm1, %v1117_v45, 0.0  ;;  %v1219_v26 = vsel %vm880_vm1, %v1118_v7, 0.0 }
 0x128   :  { %934 = vst.msk [vmem:[%s2753_s5 + $0x1a8] sm:$0xff] %vm880_vm1, %v2523_v21  ;;  %v2540_v28 = vadd.f32 %v2058_v12, %v831_v55  ;;  %933 = vst.msk [vmem:[%s2753_s5 + $0x1a0] sm:$0xff] %vm880_vm1, %v2527_v33  ;;  %v1022_v50 = vsel %vm880_vm1, %v2284_v10, 0.0  ;;  %v1221_v58 = vsel %vm880_vm1, %v1119_v16, 0.0  ;;  %v1024_v30 = vsel %vm880_vm1, %v2365_v51, 0.0 }
 0x129   :  { %v1212_v43 = vadd.f32 %v1211_v32, %v1210_v2  ;;  %v1015_v54 = vadd.f32 %v1014_v61, %v1013_v62  ;;  %v1519_v37 = vpop.f32.mrb[28].mxu1  ;;  %936 = vst.msk [vmem:[%s2753_s5 + $0x1b8] sm:$0xff] %vm880_vm1, %v2530_v31  ;;  %v1121_v24 = vmul.f32 %v2338_v44, %v2338_v44  ;;  %v1223_v46 = vsel %vm880_vm1, %v1120_v20, 0.0 }
 0x12a   :  { %v861_v22 = vpop.f32.mrb[29].mxu1  ;;  %935 = vst.msk [vmem:[%s2753_s5 + $0x1b0] sm:$0xff] %vm880_vm1, %v2540_v28  ;;  %v1122_v10 = vmul.f32 %v2398_v23, %v2398_v23  ;;  %v2568_v47 = vadd.f32 %v1513_v34, %v2058_v12  ;;  %v2571_v51 = vadd.f32 %v2058_v12, %v841_v4  ;;  %v2574_v48 = vadd.f32 %v1516_v60, %v2058_v12 }
 0x12b   :  { %v1017_v11 = vadd.f32 %v1016_v9, %v1015_v54  ;;  %v1214_v17 = vadd.f32 %v1213_v49, %v1212_v43  ;;  %v2577_v38 = vadd.f32 %v2058_v12, %v851_v40  ;;  %v1026_v6 = vsel %vm880_vm1, %v2338_v44, 0.0 }
 0x12c   :  { %v1028_v27 = vsel %vm880_vm1, %v2398_v23, 0.0  ;;  %938 = vst.msk [vmem:[%s2753_s5 + $0x1c8] sm:$0xff] %vm880_vm1, %v2568_v47  ;;  %937 = vst.msk [vmem:[%s2753_s5 + $0x1c0] sm:$0xff] %vm880_vm1, %v2571_v51  ;;  %v1225_v32 = vsel %vm880_vm1, %v1121_v24, 0.0  ;;  %v1123_v59 = vmul.f32 %v2392_v19, %v2392_v19  ;;  %v1227_v34 = vsel %vm880_vm1, %v1122_v10, 0.0 }
 0x12d   :  { %v1216_v25 = vadd.f32 %v1215_v53, %v1214_v17  ;;  %v1019_v57 = vadd.f32 %v1018_v8, %v1017_v11  ;;  %v1522_v55 = vpop.f32.mrb[30].mxu1  ;;  %940 = vst.msk [vmem:[%s2753_s5 + $0x1d8] sm:$0xff] %vm880_vm1, %v2574_v48  ;;  %939 = vst.msk [vmem:[%s2753_s5 + $0x1d0] sm:$0xff] %vm880_vm1, %v2577_v38  ;;  %v1124_v61 = vmul.f32 %v2428_v41, %v2428_v41  ;;  %v1030_v62 = vsel %vm880_vm1, %v2392_v19, 0.0 }
 0x12e   :  { %v871_v15 = vpop.f32.mrb[31].mxu1  ;;  %v2612_v9 = vadd.f32 %v1519_v37, %v2058_v12  ;;  %v1032_v43 = vsel %vm880_vm1, %v2428_v41, 0.0  ;;  %v2617_v54 = vadd.f32 %v2058_v12, %v861_v22  ;;  %v2620_v49 = vadd.f32 %v1522_v55, %v2058_v12 }
 0x12f   :  { %v1021_v39 = vadd.f32 %v1020_v18, %v1019_v57  ;;  %v1218_v36 = vadd.f32 %v1217_v0, %v1216_v25  ;;  %v2623_v45 = vadd.f32 %v2058_v12, %v871_v15  ;;  %v1229_v19 = vsel %vm880_vm1, %v1123_v59, 0.0 }
 0x130   :  { %942 = vst.msk [vmem:[%s2753_s5 + $0x1e8] sm:$0xff] %vm880_vm1, %v2612_v9  ;;  %v1125_v41 = vmul.f32 %v2424_v35, %v2424_v35  ;;  %v1231_v60 = vsel %vm880_vm1, %v1124_v61, 0.0  ;;  %v1126_v8 = vmul.f32 %v2436_v52, %v2436_v52  ;;  %941 = vst.msk [vmem:[%s2753_s5 + $0x1e0] sm:$0xff] %vm880_vm1, %v2617_v54  ;;  %v1034_v17 = vsel %vm880_vm1, %v2424_v35, 0.0 }
 0x131   :  { %v1220_v1 = vadd.f32 %v1219_v26, %v1218_v36  ;;  %v1023_v29 = vadd.f32 %v1022_v50, %v1021_v39  ;;  %944 = vst.msk [vmem:[%s2753_s5 + $0x1f8] sm:$0xff] %vm880_vm1, %v2620_v49  ;;  %943 = vst.msk [vmem:[%s2753_s5 + $0x1f0] sm:$0xff] %vm880_vm1, %v2623_v45  ;;  %v1036_v40 = vsel %vm880_vm1, %v2436_v52, 0.0  ;;  %v1127_v25 = vmul.f32 %v2432_v42, %v2432_v42 }
 0x132   :  { %v1233_v20 = vsel %vm880_vm1, %v1125_v41, 0.0  ;;  %v1235_v57 = vsel %vm880_vm1, %v1126_v8, 0.0  ;;  %v1128_v0 = vmul.f32 %v2478_v5, %v2478_v5  ;;  %v1038_v35 = vsel %vm880_vm1, %v2432_v42, 0.0 }
 0x133   :  { %v1025_v13 = vadd.f32 %v1024_v30, %v1023_v29  ;;  %v1222_v56 = vadd.f32 %v1221_v58, %v1220_v1  ;;  %v1040_v52 = vsel %vm880_vm1, %v2478_v5, 0.0  ;;  %v1237_v22 = vsel %vm880_vm1, %v1127_v25, 0.0 }
 0x134   :  { %v1129_v50 = vmul.f32 %v2472_v3, %v2472_v3  ;;  %v1239_v58 = vsel %vm880_vm1, %v1128_v0, 0.0  ;;  %v1130_v30 = vmul.f32 %v2485_v63, %v2485_v63  ;;  %v1042_v42 = vsel %vm880_vm1, %v2472_v3, 0.0 }
 0x135   :  { %v1224_v44 = vadd.f32 %v1223_v46, %v1222_v56  ;;  %v1027_v23 = vadd.f32 %v1026_v6, %v1025_v13  ;;  %v1044_v5 = vsel %vm880_vm1, %v2485_v63, 0.0  ;;  %v1131_v55 = vmul.f32 %v2482_v14, %v2482_v14 }
 0x136   :  { %v1241_v10 = vsel %vm880_vm1, %v1129_v50, 0.0  ;;  %v1243_v13 = vsel %vm880_vm1, %v1130_v30, 0.0  ;;  %v1132_v56 = vmul.f32 %v2527_v33, %v2527_v33  ;;  %v1046_v3 = vsel %vm880_vm1, %v2482_v14, 0.0 }
 0x137   :  { %v1029_v2 = vadd.f32 %v1028_v27, %v1027_v23  ;;  %v1226_v4 = vadd.f32 %v1225_v32, %v1224_v44  ;;  %v1048_v63 = vsel %vm880_vm1, %v2527_v33, 0.0  ;;  %v1245_v23 = vsel %vm880_vm1, %v1131_v55, 0.0 }
 0x138   :  { %v1133_v32 = vmul.f32 %v2523_v21, %v2523_v21  ;;  %v1247_v59 = vsel %vm880_vm1, %v1132_v56, 0.0  ;;  %v1050_v14 = vsel %vm880_vm1, %v2523_v21, 0.0  ;;  %v1052_v33 = vsel %vm880_vm1, %v2540_v28, 0.0 }
 0x139   :  { %v1228_v53 = vadd.f32 %v1227_v34, %v1226_v4  ;;  %v1031_v7 = vadd.f32 %v1030_v62, %v1029_v2  ;;  %v1134_v34 = vmul.f32 %v2540_v28, %v2540_v28  ;;  %v1054_v21 = vsel %vm880_vm1, %v2530_v31, 0.0 }
 0x13a   :  { %v1056_v28 = vsel %vm880_vm1, %v2571_v51, 0.0 }
 0x13b   :  { %v1033_v12 = vadd.f32 %v1032_v43, %v1031_v7  ;;  %v1230_v11 = vadd.f32 %v1229_v19, %v1228_v53  ;;  %v1249_v43 = vsel %vm880_vm1, %v1133_v32, 0.0  ;;  %v1135_v53 = vmul.f32 %v2530_v31, %v2530_v31 }
 0x13c   :  { %v1251_v7 = vsel %vm880_vm1, %v1134_v34, 0.0  ;;  %v1136_v19 = vmul.f32 %v2571_v51, %v2571_v51  ;;  %v1058_v31 = vsel %vm880_vm1, %v2568_v47, 0.0  ;;  %v1060_v51 = vsel %vm880_vm1, %v2577_v38, 0.0 }
 0x13d   :  { %v1232_v16 = vadd.f32 %v1231_v60, %v1230_v11  ;;  %v1035_v18 = vadd.f32 %v1034_v17, %v1033_v12  ;;  %v1253_v11 = vsel %vm880_vm1, %v1135_v53, 0.0  ;;  %v1137_v17 = vmul.f32 %v2568_v47, %v2568_v47 }
 0x13e   :  { %v1062_v47 = vsel %vm880_vm1, %v2574_v48, 0.0 }
 0x13f   :  { %v1037_v26 = vadd.f32 %v1036_v40, %v1035_v18  ;;  %v1234_v37 = vadd.f32 %v1233_v20, %v1232_v16  ;;  %v1255_v40 = vsel %vm880_vm1, %v1136_v19, 0.0  ;;  %v1138_v16 = vmul.f32 %v2577_v38, %v2577_v38 }
 0x140   :  { %v1257_v0 = vsel %vm880_vm1, %v1137_v17, 0.0  ;;  %v1064_v38 = vsel %vm880_vm1, %v2617_v54, 0.0 }
 0x141   :  { %v1236_v39 = vadd.f32 %v1235_v57, %v1234_v37  ;;  %v1039_v36 = vadd.f32 %v1038_v35, %v1037_v26  ;;  %v1139_v26 = vmul.f32 %v2574_v48, %v2574_v48  ;;  %v1259_v37 = vsel %vm880_vm1, %v1138_v16, 0.0 }
 0x142   :  { %v1140_v35 = vmul.f32 %v2617_v54, %v2617_v54  ;;  %v1066_v48 = vsel %vm880_vm1, %v2612_v9, 0.0  ;;  %v1068_v54 = vsel %vm880_vm1, %v2623_v45, 0.0 }
 0x143   :  { %v1041_v1 = vadd.f32 %v1040_v52, %v1039_v36  ;;  %v1238_v24 = vadd.f32 %v1237_v22, %v1236_v39  ;;  %v1261_v50 = vsel %vm880_vm1, %v1139_v26, 0.0 }
 0x144   :  { %v1263_v30 = vsel %vm880_vm1, %v1140_v35, 0.0 }
 0x145   :  { %v1240_v29 = vadd.f32 %v1239_v58, %v1238_v24  ;;  %v1043_v46 = vadd.f32 %v1042_v42, %v1041_v1  ;;  %v1141_v58 = vmul.f32 %v2612_v9, %v2612_v9  ;;  %v1142_v1 = vmul.f32 %v2623_v45, %v2623_v45 }
 0x147   :  { %v1045_v15 = vadd.f32 %v1044_v5, %v1043_v46  ;;  %v1242_v6 = vadd.f32 %v1241_v10, %v1240_v29  ;;  %v1265_v46 = vsel %vm880_vm1, %v1141_v58, 0.0  ;;  %v1143_v10 = vmul.f32 %v2620_v49, %v2620_v49 }
 0x148   :  { %v1267_v55 = vsel %vm880_vm1, %v1142_v1, 0.0 }
 0x149   :  { %v1244_v27 = vadd.f32 %v1243_v13, %v1242_v6  ;;  %v1047_v44 = vadd.f32 %v1046_v3, %v1045_v15  ;;  %v1070_v15 = vsel %vm880_vm1, %v2620_v49, 0.0  ;;  %v1269_v9 = vsel %vm880_vm1, %v1143_v10, 0.0 }
 0x14b   :  { %v1049_v61 = vadd.f32 %v1048_v63, %v1047_v44  ;;  %v1246_v62 = vadd.f32 %v1245_v23, %v1244_v27 }
 0x14d   :  { %v1248_v2 = vadd.f32 %v1247_v59, %v1246_v62  ;;  %v1051_v4 = vadd.f32 %v1050_v14, %v1049_v61 }
 0x14f   :  { %v1053_v41 = vadd.f32 %v1052_v33, %v1051_v4  ;;  %v1250_v60 = vadd.f32 %v1249_v43, %v1248_v2 }
 0x151   :  { %v1252_v8 = vadd.f32 %v1251_v7, %v1250_v60  ;;  %v1055_v12 = vadd.f32 %v1054_v21, %v1053_v41 }
 0x153   :  { %v1057_v18 = vadd.f32 %v1056_v28, %v1055_v12  ;;  %v1254_v20 = vadd.f32 %v1253_v11, %v1252_v8 }
 0x155   :  { %v1256_v25 = vadd.f32 %v1255_v40, %v1254_v20  ;;  %v1059_v57 = vadd.f32 %v1058_v31, %v1057_v18 }
 0x157   :  { %v1061_v52 = vadd.f32 %v1060_v51, %v1059_v57  ;;  %v1258_v39 = vadd.f32 %v1257_v0, %v1256_v25 }
 0x159   :  { %v1260_v36 = vadd.f32 %v1259_v37, %v1258_v39  ;;  %v1063_v22 = vadd.f32 %v1062_v47, %v1061_v52 }
 0x15b   :  { %v1065_v24 = vadd.f32 %v1064_v38, %v1063_v22  ;;  %v1262_v42 = vadd.f32 %v1261_v50, %v1260_v36 }
 0x15d   :  { %v1264_v5 = vadd.f32 %v1263_v30, %v1262_v42  ;;  %v1067_v29 = vadd.f32 %v1066_v48, %v1065_v24 }
 0x15f   :  { %v1069_v13 = vadd.f32 %v1068_v54, %v1067_v29  ;;  %v1266_v56 = vadd.f32 %v1265_v46, %v1264_v5 }
 0x161   :  { %v1071_v6 = vadd.f32 %v1070_v15, %v1069_v13  ;;  %v1268_v3 = vadd.f32 %v1267_v55, %v1266_v56 }
 0x163   :  { %v1072_v63 = vrot.slane %v1071_v6, 4  ;;  %v1270_v45 = vadd.f32 %v1269_v9, %v1268_v3 }
 0x165   :  { %v1073_v27 = vadd.f32 %v1072_v63, %v1071_v6  ;;  %v1271_v44 = vrot.slane %v1270_v45, 4 }
 0x167   :  { %v1074_v23 = vrot.slane %v1073_v27, 2  ;;  %v1272_v32 = vadd.f32 %v1271_v44, %v1270_v45 }
 0x169   :  { %v1075_v59 = vadd.f32 %v1074_v23, %v1073_v27  ;;  %v1273_v34 = vrot.slane %v1272_v32, 2 }
 0x16b   :  { %v1076_v61 = vrot.slane %v1075_v59, 1  ;;  %v1274_v62 = vadd.f32 %v1273_v34, %v1272_v32 }
 0x16d   :  { %v1077_v14 = vadd.f32 %v1076_v61, %v1075_v59  ;;  %v1275_v33 = vrot.slane %v1274_v62, 1 }
 0x16f   :  { %1079 = vst.msk [vmem:[%s2754_s6] sm:$0x1] %vm1078_vm2, %v1077_v14  ;;  %v1276_v49 = vadd.f32 %v1275_v33, %v1274_v62 }
 0x171   :  { %1277 = vst.msk [vmem:[%s2755_s7] sm:$0x1] %vm1078_vm2, %v1276_v49 }

// kernel: bottleneck_forward.5
= control target key start
LH: loop header
LB: loop body
LE: loop exit
PB: predicated region body
PF: predicated region fallthrough
CT: control target
= control target key end

     0   :  { %vm494_vm0 = vcmask 1043456   ;;  %vm301_vm1 = vcmask 31744   ;;  %vm1011_vm2 = vcmask 130048   ;;  %s2262_s4 = inlined_call_operand.vmem [shape: f32[4,16], index: 4, kind: input, shape index: {}]   ;;  %s2263_s0 = inlined_call_operand.vmem [shape: f32[512,4], index: 0, kind: input, shape index: {}]   ;;  %s2264_s2 = inlined_call_operand.vmem [shape: f32[1,4], index: 2, kind: input, shape index: {}]   ;;  %s2265_s3 = inlined_call_operand.vmem [shape: f32[1,4], index: 3, kind: input, shape index: {}]   ;;  %s2266_s5 = inlined_call_operand.vmem [shape: f32[1,16], index: 5, kind: input, shape index: {}]   ;;  %s2267_s1 = inlined_call_operand.vmem [shape: f32[512,16], index: 1, kind: input, shape index: {}]   ;;  %s2268_s6 = inlined_call_operand.vmem [shape: f32[512,16], index: 6, kind: output, shape index: {}]  }
   0x1   :  { %v293_v0 = vld [vmem:[%s2262_s4] sm:$0xf]  ;;  %v24_v6 = vld [vmem:[%s2263_s0 + $0x8] sm:$0xff]  ;;  %v25_v10 = vld [vmem:[%s2263_s0 + $0x10] sm:$0xff] }
   0x2   :  { %v23_v1 = vld [vmem:[%s2263_s0] sm:$0xff]  ;;  %1213 = vmatprep.subr.msk.mxu0 %vm494_vm0, %v293_v0  ;;  %1311 = vmatprep.subr.msk.mxu1 %vm494_vm0, %v293_v0  ;;  %v56_v9 = vld [vmem:[%s2263_s0 + $0x108] sm:$0xff]  ;;  %v57_v11 = vld [vmem:[%s2263_s0 + $0x110] sm:$0xff] }
   0x3   :  { %v1357_v2 = vld [vmem:[%s2264_s2] ss:$0 sm:$0xff]  ;;  %1214 = vmatpush3.msk.msra.mxu0 %vm494_vm0, %v293_v0  ;;  %1312 = vmatpush3.msk.msra.mxu1 %vm494_vm0, %v293_v0  ;;  %v26_v16 = vld [vmem:[%s2263_s0 + $0x18] sm:$0xff]  ;;  %v28_v28 = vld [vmem:[%s2263_s0 + $0x28] sm:$0xff] }
   0x4   :  { %v94_v3 = vmul.f32 %v1357_v2, %v23_v1  ;;  %v1363_v4 = vld [vmem:[%s2265_s3] ss:$0 sm:$0xff]  ;;  %v95_v8 = vmul.f32 %v1357_v2, %v24_v6  ;;  %v127_v13 = vmul.f32 %v1357_v2, %v56_v9  ;;  %v96_v14 = vmul.f32 %v1357_v2, %v25_v10  ;;  %v58_v17 = vld [vmem:[%s2263_s0 + $0x118] sm:$0xff]  ;;  %v60_v33 = vld [vmem:[%s2263_s0 + $0x128] sm:$0xff] }
   0x5   :  { %v55_v5 = vld [vmem:[%s2263_s0 + $0x100] sm:$0xff]  ;;  %v128_v15 = vmul.f32 %v1357_v2, %v57_v11  ;;  %v97_v20 = vmul.f32 %v1357_v2, %v26_v16  ;;  %v129_v21 = vmul.f32 %v1357_v2, %v58_v17  ;;  %v29_v34 = vld [vmem:[%s2263_s0 + $0x30] sm:$0xff]  ;;  %v30_v40 = vld [vmem:[%s2263_s0 + $0x38] sm:$0xff]  ;;  %v99_v43 = vmul.f32 %v1357_v2, %v28_v28 }
   0x6   :  { %v126_v7 = vmul.f32 %v1357_v2, %v55_v5  ;;  %v165_v12 = vadd.f32 %v1363_v4, %v94_v3  ;;  %v166_v19 = vadd.f32 %v1363_v4, %v95_v8  ;;  %v27_v22 = vld [vmem:[%s2263_s0 + $0x20] sm:$0xff]  ;;  %v198_v24 = vadd.f32 %v1363_v4, %v127_v13  ;;  %v61_v39 = vld [vmem:[%s2263_s0 + $0x130] sm:$0xff]  ;;  %v62_v44 = vld [vmem:[%s2263_s0 + $0x138] sm:$0xff] }
   0x7   :  { %v167_v25 = vadd.f32 %v1363_v4, %v96_v14  ;;  %v199_v26 = vadd.f32 %v1363_v4, %v128_v15  ;;  %v59_v27 = vld [vmem:[%s2263_s0 + $0x120] sm:$0xff]  ;;  %v168_v31 = vadd.f32 %v1363_v4, %v97_v20  ;;  %v200_v32 = vadd.f32 %v1363_v4, %v129_v21  ;;  %v32_v59 = vld [vmem:[%s2263_s0 + $0x48] sm:$0xff]  ;;  %v33_v1 = vld [vmem:[%s2263_s0 + $0x50] sm:$0xff] }
   0x8   :  { %v197_v18 = vadd.f32 %v1363_v4, %v126_v7  ;;  %v229_v23 = vmax.f32 %v165_v12, 0.0  ;;  %v230_v30 = vmax.f32 %v166_v19, 0.0  ;;  %v262_v35 = vmax.f32 %v198_v24, 0.0  ;;  %v31_v53 = vld [vmem:[%s2263_s0 + $0x40] sm:$0xff]  ;;  %v64_v0 = vld [vmem:[%s2263_s0 + $0x148] sm:$0xff]  ;;  %v65_v8 = vld [vmem:[%s2263_s0 + $0x150] sm:$0xff] }
   0x9   :  { %v231_v36 = vmax.f32 %v167_v25, 0.0  ;;  %v263_v37 = vmax.f32 %v199_v26, 0.0  ;;  %v98_v38 = vmul.f32 %v1357_v2, %v27_v22  ;;  %v232_v41 = vmax.f32 %v168_v31, 0.0  ;;  %v63_v58 = vld [vmem:[%s2263_s0 + $0x140] sm:$0xff]  ;;  %v34_v9 = vld [vmem:[%s2263_s0 + $0x58] sm:$0xff] }
   0xa   :  { %v261_v29 = vmax.f32 %v197_v18, 0.0  ;;  %1215 = vmatprep.mubr.msk.f32.mxu0 %vm301_vm1, %v229_v23  ;;  %v130_v42 = vmul.f32 %v1357_v2, %v59_v27  ;;  %v264_v45 = vmax.f32 %v200_v32, 0.0  ;;  %v131_v47 = vmul.f32 %v1357_v2, %v60_v33  ;;  %v66_v14 = vld [vmem:[%s2263_s0 + $0x158] sm:$0xff]  ;;  %v35_v23 = vld [vmem:[%s2263_s0 + $0x60] sm:$0xff]  ;;  %v68_v32 = vld [vmem:[%s2263_s0 + $0x168] sm:$0xff] }
   0xb   :  { %1216 = vmatmul.mubr.msk.f32.vlgmr.msra.gmra.mrb[0].mxu0 %vm301_vm1, %v230_v30  ;;  %v169_v46 = vadd.f32 %v1363_v4, %v98_v38  ;;  %v100_v48 = vmul.f32 %v1357_v2, %v29_v34  ;;  %v170_v50 = vadd.f32 %v1363_v4, %v99_v43  ;;  %v132_v51 = vmul.f32 %v1357_v2, %v61_v39  ;;  %v67_v28 = vld [vmem:[%s2263_s0 + $0x160] sm:$0xff]  ;;  %v37_v33 = vld [vmem:[%s2263_s0 + $0x70] sm:$0xff] }
   0xc   :  { %1263 = vmatprep.mubr.msk.f32.mxu1 %vm301_vm1, %v261_v29  ;;  %1218 = vmatprep.mubr.msk.f32.mxu0 %vm301_vm1, %v231_v36  ;;  %v201_v49 = vadd.f32 %v1363_v4, %v130_v42  ;;  %v101_v52 = vmul.f32 %v1357_v2, %v30_v40  ;;  %v202_v55 = vadd.f32 %v1363_v4, %v131_v47  ;;  %v36_v29 = vld [vmem:[%s2263_s0 + $0x68] sm:$0xff]  ;;  %v70_v47 = vld [vmem:[%s2263_s0 + $0x178] sm:$0xff] }
   0xd   :  { %1264 = vmatmul.mubr.msk.f32.vlgmr.msra.gmra.mrb[0].mxu1 %vm301_vm1, %v262_v35  ;;  %v233_v54 = vmax.f32 %v169_v46, 0.0  ;;  %v171_v56 = vadd.f32 %v1363_v4, %v100_v48  ;;  %v133_v57 = vmul.f32 %v1357_v2, %v62_v44  ;;  %v234_v61 = vmax.f32 %v170_v50, 0.0  ;;  %v38_v46 = vld [vmem:[%s2263_s0 + $0x78] sm:$0xff] }
   0xe   :  { %1266 = vmatprep.mubr.msk.f32.mxu1 %vm301_vm1, %v263_v37  ;;  %v265_v60 = vmax.f32 %v201_v49, 0.0  ;;  %v203_v62 = vadd.f32 %v1363_v4, %v132_v51  ;;  %v172_v63 = vadd.f32 %v1363_v4, %v101_v52  ;;  %v266_v3 = vmax.f32 %v202_v55, 0.0  ;;  %v69_v37 = vld [vmem:[%s2263_s0 + $0x170] sm:$0xff]  ;;  %v39_v51 = vld [vmem:[%s2263_s0 + $0x80] sm:$0xff] }
   0xf   :  { %1219 = vmatmul.mubr.msk.f32.gmra.mrb[2].mxu0 %vm301_vm1, %v232_v41  ;;  %v235_v5 = vmax.f32 %v171_v56, 0.0  ;;  %v204_v6 = vadd.f32 %v1363_v4, %v133_v57  ;;  %v102_v7 = vmul.f32 %v1357_v2, %v31_v53  ;;  %v134_v12 = vmul.f32 %v1357_v2, %v63_v58  ;;  %v71_v53 = vld [vmem:[%s2263_s0 + $0x180] sm:$0xff] }
  0x10   :  { %1221 = vmatprep.mubr.msk.f32.mxu0 %vm301_vm1, %v233_v54  ;;  %v267_v10 = vmax.f32 %v203_v62, 0.0  ;;  %v236_v11 = vmax.f32 %v172_v63, 0.0  ;;  %v103_v13 = vmul.f32 %v1357_v2, %v32_v59  ;;  %v135_v17 = vmul.f32 %v1357_v2, %v64_v0  ;;  %v40_v62 = vld [vmem:[%s2263_s0 + $0x88] sm:$0xff] }
  0x11   :  { %1267 = vmatmul.mubr.msk.f32.gmra.mrb[2].mxu1 %vm301_vm1, %v264_v45  ;;  %v268_v15 = vmax.f32 %v204_v6, 0.0  ;;  %v173_v16 = vadd.f32 %v1363_v4, %v102_v7  ;;  %v104_v18 = vmul.f32 %v1357_v2, %v33_v1  ;;  %v205_v19 = vadd.f32 %v1363_v4, %v134_v12  ;;  %v73_v7 = vld [vmem:[%s2263_s0 + $0x190] sm:$0xff]  ;;  %v42_v12 = vld [vmem:[%s2263_s0 + $0x98] sm:$0xff] }
  0x12   :  { %1269 = vmatprep.mubr.msk.f32.mxu1 %vm301_vm1, %v265_v60  ;;  %v174_v20 = vadd.f32 %v1363_v4, %v103_v13  ;;  %v136_v21 = vmul.f32 %v1357_v2, %v65_v8  ;;  %v105_v22 = vmul.f32 %v1357_v2, %v34_v9  ;;  %v206_v25 = vadd.f32 %v1363_v4, %v135_v17  ;;  %v74_v17 = vld [vmem:[%s2263_s0 + $0x198] sm:$0xff] }
  0x13   :  { %1222 = vmatmul.mubr.msk.f32.gmra.mrb[4].mxu0 %vm301_vm1, %v234_v61  ;;  %v237_v24 = vmax.f32 %v173_v16, 0.0  ;;  %v175_v26 = vadd.f32 %v1363_v4, %v104_v18  ;;  %v137_v27 = vmul.f32 %v1357_v2, %v66_v14  ;;  %v269_v30 = vmax.f32 %v205_v19, 0.0 }
  0x14   :  { %1224 = vmatprep.mubr.msk.f32.mxu0 %vm301_vm1, %v235_v5  ;;  %v207_v31 = vadd.f32 %v1363_v4, %v136_v21  ;;  %v238_v34 = vmax.f32 %v174_v20, 0.0  ;;  %v176_v35 = vadd.f32 %v1363_v4, %v105_v22  ;;  %v106_v36 = vmul.f32 %v1357_v2, %v35_v23  ;;  %v41_v5 = vld [vmem:[%s2263_s0 + $0x90] sm:$0xff]  ;;  %v43_v21 = vld [vmem:[%s2263_s0 + $0xa0] sm:$0xff] }
  0x15   :  { %1270 = vmatmul.mubr.msk.f32.gmra.mrb[4].mxu1 %vm301_vm1, %v266_v3  ;;  %v270_v38 = vmax.f32 %v206_v25, 0.0  ;;  %v208_v39 = vadd.f32 %v1363_v4, %v137_v27  ;;  %v138_v40 = vmul.f32 %v1357_v2, %v67_v28  ;;  %v107_v41 = vmul.f32 %v1357_v2, %v36_v29  ;;  %v72_v3 = vld [vmem:[%s2263_s0 + $0x188] sm:$0xff]  ;;  %v75_v23 = vld [vmem:[%s2263_s0 + $0x1a0] sm:$0xff] }
  0x16   :  { %1272 = vmatprep.mubr.msk.f32.mxu1 %vm301_vm1, %v267_v10  ;;  %v239_v42 = vmax.f32 %v175_v26, 0.0  ;;  %v177_v43 = vadd.f32 %v1363_v4, %v106_v36  ;;  %v139_v44 = vmul.f32 %v1357_v2, %v68_v32  ;;  %v108_v45 = vmul.f32 %v1357_v2, %v37_v33  ;;  %v44_v32 = vld [vmem:[%s2263_s0 + $0xa8] sm:$0xff] }
  0x17   :  { %1225 = vmatmul.mubr.msk.f32.gmra.mrb[6].mxu0 %vm301_vm1, %v236_v11  ;;  %v271_v48 = vmax.f32 %v207_v31, 0.0  ;;  %v209_v49 = vadd.f32 %v1363_v4, %v138_v40  ;;  %v140_v50 = vmul.f32 %v1357_v2, %v69_v37  ;;  %v178_v52 = vadd.f32 %v1363_v4, %v107_v41  ;;  %v76_v33 = vld [vmem:[%s2263_s0 + $0x1a8] sm:$0xff]  ;;  %v45_v37 = vld [vmem:[%s2263_s0 + $0xb0] sm:$0xff] }
  0x18   :  { %1227 = vmatprep.mubr.msk.f32.mxu0 %vm301_vm1, %v237_v24  ;;  %v240_v54 = vmax.f32 %v176_v35, 0.0  ;;  %v210_v55 = vadd.f32 %v1363_v4, %v139_v44  ;;  %v109_v56 = vmul.f32 %v1357_v2, %v38_v46  ;;  %v141_v57 = vmul.f32 %v1357_v2, %v70_v47 }
  0x19   :  { %1273 = vmatmul.mubr.msk.f32.gmra.mrb[6].mxu1 %vm301_vm1, %v268_v15  ;;  %v272_v58 = vmax.f32 %v208_v39, 0.0  ;;  %v241_v59 = vmax.f32 %v177_v43, 0.0  ;;  %v179_v60 = vadd.f32 %v1363_v4, %v108_v45  ;;  %v110_v61 = vmul.f32 %v1357_v2, %v39_v51  ;;  %v77_v39 = vld [vmem:[%s2263_s0 + $0x1b0] sm:$0xff] }
  0x1a   :  { %1275 = vmatprep.mubr.msk.f32.mxu1 %vm301_vm1, %v269_v30  ;;  %v273_v63 = vmax.f32 %v209_v49, 0.0  ;;  %v211_v0 = vadd.f32 %v1363_v4, %v140_v50  ;;  %v142_v1 = vmul.f32 %v1357_v2, %v71_v53  ;;  %v242_v6 = vmax.f32 %v178_v52, 0.0  ;;  %v78_v52 = vld [vmem:[%s2263_s0 + $0x1b8] sm:$0xff]  ;;  %v47_v53 = vld [vmem:[%s2263_s0 + $0xc0] sm:$0xff] }
  0x1b   :  { %1228 = vmatmul.mubr.msk.f32.gmra.mrb[8].mxu0 %vm301_vm1, %v238_v34  ;;  %v274_v8 = vmax.f32 %v210_v55, 0.0  ;;  %v180_v9 = vadd.f32 %v1363_v4, %v109_v56  ;;  %v212_v10 = vadd.f32 %v1363_v4, %v141_v57  ;;  %v111_v11 = vmul.f32 %v1357_v2, %v40_v62  ;;  %v79_v55 = vld [vmem:[%s2263_s0 + $0x1c0] sm:$0xff] }
  0x1c   :  { %1230 = vmatprep.mubr.msk.f32.mxu0 %vm301_vm1, %v239_v42  ;;  %v243_v13 = vmax.f32 %v179_v60, 0.0  ;;  %v181_v14 = vadd.f32 %v1363_v4, %v110_v61  ;;  %v143_v15 = vmul.f32 %v1357_v2, %v72_v3  ;;  %v112_v16 = vmul.f32 %v1357_v2, %v41_v5  ;;  %v48_v60 = vld [vmem:[%s2263_s0 + $0xc8] sm:$0xff] }
  0x1d   :  { %1276 = vmatmul.mubr.msk.f32.gmra.mrb[8].mxu1 %vm301_vm1, %v270_v38  ;;  %v275_v18 = vmax.f32 %v211_v0, 0.0  ;;  %v213_v19 = vadd.f32 %v1363_v4, %v142_v1  ;;  %v144_v20 = vmul.f32 %v1357_v2, %v73_v7  ;;  %v113_v22 = vmul.f32 %v1357_v2, %v42_v12  ;;  %v80_v1 = vld [vmem:[%s2263_s0 + $0x1c8] sm:$0xff]  ;;  %v49_v7 = vld [vmem:[%s2263_s0 + $0xd0] sm:$0xff] }
  0x1e   :  { %1278 = vmatprep.mubr.msk.f32.mxu1 %vm301_vm1, %v271_v48  ;;  %v244_v24 = vmax.f32 %v180_v9, 0.0  ;;  %v276_v25 = vmax.f32 %v212_v10, 0.0  ;;  %v182_v26 = vadd.f32 %v1363_v4, %v111_v11  ;;  %v145_v27 = vmul.f32 %v1357_v2, %v74_v17  ;;  %v46_v48 = vld [vmem:[%s2263_s0 + $0xb8] sm:$0xff]  ;;  %v81_v9 = vld [vmem:[%s2263_s0 + $0x1d0] sm:$0xff] }
  0x1f   :  { %1231 = vmatmul.mubr.msk.f32.gmra.mrb[10].mxu0 %vm301_vm1, %v240_v54  ;;  %v245_v28 = vmax.f32 %v181_v14, 0.0  ;;  %v214_v29 = vadd.f32 %v1363_v4, %v143_v15  ;;  %v183_v30 = vadd.f32 %v1363_v4, %v112_v16  ;;  %v114_v31 = vmul.f32 %v1357_v2, %v43_v21 }
  0x20   :  { %1233 = vmatprep.mubr.msk.f32.mxu0 %vm301_vm1, %v241_v59  ;;  %v277_v34 = vmax.f32 %v213_v19, 0.0  ;;  %v215_v35 = vadd.f32 %v1363_v4, %v144_v20  ;;  %v146_v36 = vmul.f32 %v1357_v2, %v75_v23  ;;  %v184_v38 = vadd.f32 %v1363_v4, %v113_v22  ;;  %v82_v19 = vld [vmem:[%s2263_s0 + $0x1d8] sm:$0xff]  ;;  %v51_v23 = vld [vmem:[%s2263_s0 + $0xe0] sm:$0xff] }
  0x21   :  { %1279 = vmatmul.mubr.msk.f32.gmra.mrb[10].mxu1 %vm301_vm1, %v272_v58  ;;  %v246_v40 = vmax.f32 %v182_v26, 0.0  ;;  %v216_v41 = vadd.f32 %v1363_v4, %v145_v27  ;;  %v115_v42 = vmul.f32 %v1357_v2, %v44_v32  ;;  %v147_v43 = vmul.f32 %v1357_v2, %v76_v33 }
  0x22   :  { %1281 = vmatprep.mubr.msk.f32.mxu1 %vm301_vm1, %v273_v63  ;;  %v278_v44 = vmax.f32 %v214_v29, 0.0  ;;  %v247_v45 = vmax.f32 %v183_v30, 0.0  ;;  %v185_v46 = vadd.f32 %v1363_v4, %v114_v31  ;;  %v116_v47 = vmul.f32 %v1357_v2, %v45_v37 }
  0x23   :  { %1234 = vmatmul.mubr.msk.f32.gmra.mrb[12].mxu0 %vm301_vm1, %v242_v6  ;;  %v279_v49 = vmax.f32 %v215_v35, 0.0  ;;  %v217_v50 = vadd.f32 %v1363_v4, %v146_v36  ;;  %v148_v51 = vmul.f32 %v1357_v2, %v77_v39  ;;  %v248_v54 = vmax.f32 %v184_v38, 0.0  ;;  %v84_v38 = vld [vmem:[%s2263_s0 + $0x1e8] sm:$0xff]  ;;  %v53_v39 = vld [vmem:[%s2263_s0 + $0xf0] sm:$0xff] }
  0x24   :  { %1236 = vmatprep.mubr.msk.f32.mxu0 %vm301_vm1, %v243_v13  ;;  %v280_v56 = vmax.f32 %v216_v41, 0.0  ;;  %v186_v57 = vadd.f32 %v1363_v4, %v115_v42  ;;  %v218_v58 = vadd.f32 %v1363_v4, %v147_v43  ;;  %v117_v59 = vmul.f32 %v1357_v2, %v46_v48  ;;  %v85_v41 = vld [vmem:[%s2263_s0 + $0x1f0] sm:$0xff] }
  0x25   :  { %1282 = vmatmul.mubr.msk.f32.gmra.mrb[12].mxu1 %vm301_vm1, %v274_v8  ;;  %v249_v61 = vmax.f32 %v185_v46, 0.0  ;;  %v187_v62 = vadd.f32 %v1363_v4, %v116_v47  ;;  %v149_v63 = vmul.f32 %v1357_v2, %v78_v52  ;;  %v118_v0 = vmul.f32 %v1357_v2, %v47_v53 }
  0x26   :  { %1284 = vmatprep.mubr.msk.f32.mxu1 %vm301_vm1, %v275_v18  ;;  %v281_v3 = vmax.f32 %v217_v50, 0.0  ;;  %v219_v5 = vadd.f32 %v1363_v4, %v148_v51  ;;  %v150_v6 = vmul.f32 %v1357_v2, %v79_v55  ;;  %v119_v8 = vmul.f32 %v1357_v2, %v48_v60  ;;  %v50_v18 = vld [vmem:[%s2263_s0 + $0xd8] sm:$0xff] }
  0x27   :  { %1237 = vmatmul.mubr.msk.f32.gmra.mrb[14].mxu0 %vm301_vm1, %v244_v24  ;;  %v250_v10 = vmax.f32 %v186_v57, 0.0  ;;  %v282_v11 = vmax.f32 %v218_v58, 0.0  ;;  %v188_v12 = vadd.f32 %v1363_v4, %v117_v59  ;;  %v151_v13 = vmul.f32 %v1357_v2, %v80_v1  ;;  %v54_v50 = vld [vmem:[%s2263_s0 + $0xf8] sm:$0xff] }
  0x28   :  { %1239 = vmatprep.mubr.msk.f32.mxu0 %vm301_vm1, %v245_v28  ;;  %v251_v14 = vmax.f32 %v187_v62, 0.0  ;;  %v220_v15 = vadd.f32 %v1363_v4, %v149_v63  ;;  %v189_v16 = vadd.f32 %v1363_v4, %v118_v0  ;;  %v120_v17 = vmul.f32 %v1357_v2, %v49_v7 }
  0x29   :  { %1285 = vmatmul.mubr.msk.f32.gmra.mrb[14].mxu1 %vm301_vm1, %v276_v25  ;;  %v283_v20 = vmax.f32 %v219_v5, 0.0  ;;  %v221_v21 = vadd.f32 %v1363_v4, %v150_v6  ;;  %v152_v22 = vmul.f32 %v1357_v2, %v81_v9  ;;  %v190_v24 = vadd.f32 %v1363_v4, %v119_v8  ;;  %v83_v25 = vld [vmem:[%s2263_s0 + $0x1e0] sm:$0xff] }
  0x2a   :  { %1287 = vmatprep.mubr.msk.f32.mxu1 %vm301_vm1, %v277_v34  ;;  %v252_v26 = vmax.f32 %v188_v12, 0.0  ;;  %v222_v27 = vadd.f32 %v1363_v4, %v151_v13  ;;  %v121_v28 = vmul.f32 %v1357_v2, %v50_v18  ;;  %v153_v29 = vmul.f32 %v1357_v2, %v82_v19  ;;  %v52_v34 = vld [vmem:[%s2263_s0 + $0xe8] sm:$0xff] }
  0x2b   :  { %1240 = vmatmul.mubr.msk.f32.gmra.mrb[16].mxu0 %vm301_vm1, %v246_v40  ;;  %v284_v30 = vmax.f32 %v220_v15, 0.0  ;;  %v253_v31 = vmax.f32 %v189_v16, 0.0  ;;  %v191_v32 = vadd.f32 %v1363_v4, %v120_v17  ;;  %v122_v33 = vmul.f32 %v1357_v2, %v51_v23  ;;  %v883_v16 = vld [vmem:[%s2267_s1] sm:$0xff] }
  0x2c   :  { %1242 = vmatprep.mubr.msk.f32.mxu0 %vm301_vm1, %v247_v45  ;;  %v285_v35 = vmax.f32 %v221_v21, 0.0  ;;  %v223_v36 = vadd.f32 %v1363_v4, %v152_v22  ;;  %v154_v37 = vmul.f32 %v1357_v2, %v83_v25  ;;  %v254_v40 = vmax.f32 %v190_v24, 0.0 }
  0x2d   :  { %1288 = vmatmul.mubr.msk.f32.gmra.mrb[16].mxu1 %vm301_vm1, %v278_v44  ;;  %v286_v42 = vmax.f32 %v222_v27, 0.0  ;;  %v192_v43 = vadd.f32 %v1363_v4, %v121_v28  ;;  %v224_v44 = vadd.f32 %v1363_v4, %v153_v29  ;;  %v123_v45 = vmul.f32 %v1357_v2, %v52_v34 }
  0x2e   :  { %1290 = vmatprep.mubr.msk.f32.mxu1 %vm301_vm1, %v279_v49  ;;  %v255_v46 = vmax.f32 %v191_v32, 0.0  ;;  %v193_v47 = vadd.f32 %v1363_v4, %v122_v33  ;;  %v155_v48 = vmul.f32 %v1357_v2, %v84_v38  ;;  %v124_v49 = vmul.f32 %v1357_v2, %v53_v39  ;;  %v885_v32 = vld [vmem:[%s2267_s1 + $0x10] sm:$0xff] }
  0x2f   :  { %1243 = vmatmul.mubr.msk.f32.gmra.mrb[18].mxu0 %vm301_vm1, %v248_v54  ;;  %v287_v51 = vmax.f32 %v223_v36, 0.0  ;;  %v225_v52 = vadd.f32 %v1363_v4, %v154_v37  ;;  %v156_v53 = vmul.f32 %v1357_v2, %v85_v41  ;;  %v86_v54 = vld [vmem:[%s2263_s0 + $0x1f8] sm:$0xff]  ;;  %v256_v55 = vmax.f32 %v192_v43, 0.0  ;;  %v917_v36 = vld [vmem:[%s2267_s1 + $0x110] sm:$0xff] }
  0x30   :  { %1245 = vmatprep.mubr.msk.f32.mxu0 %vm301_vm1, %v249_v61  ;;  %v194_v57 = vadd.f32 %v1363_v4, %v123_v45  ;;  %v125_v58 = vmul.f32 %v1357_v2, %v54_v50  ;;  %v257_v59 = vmax.f32 %v193_v47, 0.0  ;;  %v226_v60 = vadd.f32 %v1363_v4, %v155_v48  ;;  %v887_v48 = vld [vmem:[%s2267_s1 + $0x20] sm:$0xff] }
  0x31   :  { %1291 = vmatmul.mubr.msk.f32.gmra.mrb[18].mxu1 %vm301_vm1, %v280_v56  ;;  %v288_v56 = vmax.f32 %v224_v44, 0.0  ;;  %v195_v61 = vadd.f32 %v1363_v4, %v124_v49  ;;  %v157_v62 = vmul.f32 %v1357_v2, %v86_v54  ;;  %v289_v63 = vmax.f32 %v225_v52, 0.0  ;;  %v919_v52 = vld [vmem:[%s2267_s1 + $0x120] sm:$0xff] }
  0x32   :  { %1293 = vmatprep.mubr.msk.f32.mxu1 %vm301_vm1, %v281_v3  ;;  %v227_v0 = vadd.f32 %v1363_v4, %v156_v53  ;;  %v258_v1 = vmax.f32 %v194_v57, 0.0  ;;  %v196_v3 = vadd.f32 %v1363_v4, %v125_v58  ;;  %v290_v5 = vmax.f32 %v226_v60, 0.0  ;;  %v890_v58 = vld [vmem:[%s2267_s1 + $0x38] sm:$0xff] }
  0x33   :  { %1246 = vmatmul.mubr.msk.f32.gmra.mrb[20].mxu0 %vm301_vm1, %v250_v10  ;;  %v259_v6 = vmax.f32 %v195_v61, 0.0  ;;  %v228_v7 = vadd.f32 %v1363_v4, %v157_v62  ;;  %v1748_v4 = vld [vmem:[%s2266_s5] ss:$0 sm:$0xff]  ;;  %v922_v62 = vld [vmem:[%s2267_s1 + $0x138] sm:$0xff] }
  0x34   :  { %1248 = vmatprep.mubr.msk.f32.mxu0 %vm301_vm1, %v251_v14  ;;  %v291_v2 = vmax.f32 %v227_v0, 0.0  ;;  %v260_v8 = vmax.f32 %v196_v3, 0.0  ;;  %v916_v14 = vld [vmem:[%s2267_s1 + $0x108] sm:$0xff]  ;;  %v889_v0 = vld [vmem:[%s2267_s1 + $0x30] sm:$0xff] }
  0x35   :  { %1294 = vmatmul.mubr.msk.f32.gmra.mrb[20].mxu1 %vm301_vm1, %v282_v11  ;;  %v292_v9 = vmax.f32 %v228_v7, 0.0  ;;  %v884_v11 = vld [vmem:[%s2267_s1 + $0x8] sm:$0xff] }
  0x36   :  { %1296 = vmatprep.mubr.msk.f32.mxu1 %vm301_vm1, %v283_v20  ;;  %v915_v20 = vld [vmem:[%s2267_s1 + $0x100] sm:$0xff] }
  0x37   :  { %1249 = vmatmul.mubr.msk.f32.gmra.mrb[22].mxu0 %vm301_vm1, %v252_v26  ;;  %v886_v26 = vld [vmem:[%s2267_s1 + $0x18] sm:$0xff] }
  0x38   :  { %1251 = vmatprep.mubr.msk.f32.mxu0 %vm301_vm1, %v253_v31 }
  0x39   :  { %1297 = vmatmul.mubr.msk.f32.gmra.mrb[22].mxu1 %vm301_vm1, %v284_v30  ;;  %v918_v30 = vld [vmem:[%s2267_s1 + $0x118] sm:$0xff] }
  0x3a   :  { %1299 = vmatprep.mubr.msk.f32.mxu1 %vm301_vm1, %v285_v35 }
  0x3b   :  { %1252 = vmatmul.mubr.msk.f32.gmra.mrb[24].mxu0 %vm301_vm1, %v254_v40 }
  0x3c   :  { %1254 = vmatprep.mubr.msk.f32.mxu0 %vm301_vm1, %v255_v46  ;;  %v920_v46 = vld [vmem:[%s2267_s1 + $0x128] sm:$0xff] }
  0x3d   :  { %1300 = vmatmul.mubr.msk.f32.gmra.mrb[24].mxu1 %vm301_vm1, %v286_v42  ;;  %v888_v42 = vld [vmem:[%s2267_s1 + $0x28] sm:$0xff] }
  0x3e   :  { %1302 = vmatprep.mubr.msk.f32.mxu1 %vm301_vm1, %v287_v51 }
  0x3f   :  { %1255 = vmatmul.mubr.msk.f32.gmra.mrb[26].mxu0 %vm301_vm1, %v256_v55 }
  0x40   :  { %1257 = vmatprep.mubr.msk.f32.mxu0 %vm301_vm1, %v257_v59 }
  0x41   :  { %1303 = vmatmul.mubr.msk.f32.gmra.mrb[26].mxu1 %vm301_vm1, %v288_v56 }
  0x42   :  { %1305 = vmatprep.mubr.msk.f32.mxu1 %vm301_vm1, %v289_v63 }
  0x43   :  { %1258 = vmatmul.mubr.msk.f32.gmra.mrb[28].mxu0 %vm301_vm1, %v258_v1 }
  0x44   :  { %1260 = vmatprep.mubr.msk.f32.mxu0 %vm301_vm1, %v259_v6  ;;  %v921_v6 = vld [vmem:[%s2267_s1 + $0x130] sm:$0xff] }
  0x45   :  { %1306 = vmatmul.mubr.msk.f32.gmra.mrb[28].mxu1 %vm301_vm1, %v290_v5 }
  0x46   :  { %1308 = vmatprep.mubr.msk.f32.mxu1 %vm301_vm1, %v291_v2 }
  0x47   :  { %1261 = vmatmul.mubr.msk.f32.gmra.mrb[30].mxu0 %vm301_vm1, %v260_v8 }
  0x49   :  { %1309 = vmatmul.mubr.msk.f32.gmra.mrb[30].mxu1 %vm301_vm1, %v292_v9 }
  0xde   :  { %v1217_v10 = vpop.f32.mrb[0].mxu0 }
  0xdf   :  { %v570_v12 = vadd.f32 %v1217_v10, %v1748_v4  ;;  %v564_v15 = vpop.f32.mrb[1].mxu0 }
  0xe0   :  { %v1265_v13 = vpop.f32.mrb[0].mxu1  ;;  %v565_v18 = vadd.f32 %v1748_v4, %v564_v15  ;;  %v924_v15 = vld [vmem:[%s2267_s1 + $0x148] sm:$0xff] }
  0xe1   :  { %v730_v17 = vadd.f32 %v1265_v13, %v1748_v4  ;;  %v724_v19 = vpop.f32.mrb[1].mxu1  ;;  %v948_v21 = vadd.f32 %v884_v11, %v570_v12  ;;  %v892_v11 = vld [vmem:[%s2267_s1 + $0x48] sm:$0xff] }
  0xe2   :  { %v725_v22 = vadd.f32 %v1748_v4, %v724_v19  ;;  %v947_v24 = vadd.f32 %v883_v16, %v565_v18  ;;  %v1220_v25 = vpop.f32.mrb[2].mxu0 }
  0xe3   :  { %v980_v23 = vadd.f32 %v916_v14, %v730_v17  ;;  %1013 = vst.msk [vmem:[%s2268_s6 + $0x8] sm:$0xff] %vm1011_vm2, %v948_v21  ;;  %v580_v28 = vadd.f32 %v1220_v25, %v1748_v4  ;;  %v574_v31 = vpop.f32.mrb[3].mxu0  ;;  %v891_v17 = vld [vmem:[%s2267_s1 + $0x40] sm:$0xff] }
  0xe4   :  { %v979_v27 = vadd.f32 %v915_v20, %v725_v22  ;;  %v1268_v29 = vpop.f32.mrb[2].mxu1  ;;  %1012 = vst.msk [vmem:[%s2268_s6] sm:$0xff] %vm1011_vm2, %v947_v24  ;;  %v575_v34 = vadd.f32 %v1748_v4, %v574_v31  ;;  %v923_v21 = vld [vmem:[%s2267_s1 + $0x140] sm:$0xff]  ;;  %v926_v31 = vld [vmem:[%s2267_s1 + $0x158] sm:$0xff] }
  0xe5   :  { %1045 = vst.msk [vmem:[%s2268_s6 + $0x108] sm:$0xff] %vm1011_vm2, %v980_v23  ;;  %v740_v33 = vadd.f32 %v1268_v29, %v1748_v4  ;;  %v734_v35 = vpop.f32.mrb[3].mxu1  ;;  %v950_v37 = vadd.f32 %v886_v26, %v580_v28 }
  0xe6   :  { %1044 = vst.msk [vmem:[%s2268_s6 + $0x100] sm:$0xff] %vm1011_vm2, %v979_v27  ;;  %v735_v38 = vadd.f32 %v1748_v4, %v734_v35  ;;  %v949_v40 = vadd.f32 %v885_v32, %v575_v34  ;;  %v1223_v41 = vpop.f32.mrb[4].mxu0  ;;  %v894_v27 = vld [vmem:[%s2267_s1 + $0x58] sm:$0xff] }
  0xe7   :  { %v982_v39 = vadd.f32 %v918_v30, %v740_v33  ;;  %1015 = vst.msk [vmem:[%s2268_s6 + $0x18] sm:$0xff] %vm1011_vm2, %v950_v37  ;;  %v590_v44 = vadd.f32 %v1223_v41, %v1748_v4  ;;  %v584_v47 = vpop.f32.mrb[5].mxu0  ;;  %v893_v33 = vld [vmem:[%s2267_s1 + $0x50] sm:$0xff] }
  0xe8   :  { %v981_v43 = vadd.f32 %v917_v36, %v735_v38  ;;  %v1271_v45 = vpop.f32.mrb[4].mxu1  ;;  %1014 = vst.msk [vmem:[%s2268_s6 + $0x10] sm:$0xff] %vm1011_vm2, %v949_v40  ;;  %v585_v50 = vadd.f32 %v1748_v4, %v584_v47  ;;  %v925_v37 = vld [vmem:[%s2267_s1 + $0x150] sm:$0xff]  ;;  %v928_v47 = vld [vmem:[%s2267_s1 + $0x168] sm:$0xff] }
  0xe9   :  { %1047 = vst.msk [vmem:[%s2268_s6 + $0x118] sm:$0xff] %vm1011_vm2, %v982_v39  ;;  %v750_v49 = vadd.f32 %v1271_v45, %v1748_v4  ;;  %v744_v51 = vpop.f32.mrb[5].mxu1  ;;  %v952_v53 = vadd.f32 %v888_v42, %v590_v44 }
  0xea   :  { %1046 = vst.msk [vmem:[%s2268_s6 + $0x110] sm:$0xff] %vm1011_vm2, %v981_v43  ;;  %v745_v54 = vadd.f32 %v1748_v4, %v744_v51  ;;  %v951_v56 = vadd.f32 %v887_v48, %v585_v50  ;;  %v1226_v57 = vpop.f32.mrb[6].mxu0  ;;  %v896_v43 = vld [vmem:[%s2267_s1 + $0x68] sm:$0xff] }
  0xeb   :  { %v984_v55 = vadd.f32 %v920_v46, %v750_v49  ;;  %1017 = vst.msk [vmem:[%s2268_s6 + $0x28] sm:$0xff] %vm1011_vm2, %v952_v53  ;;  %v600_v60 = vadd.f32 %v1226_v57, %v1748_v4  ;;  %v594_v63 = vpop.f32.mrb[7].mxu0  ;;  %v895_v49 = vld [vmem:[%s2267_s1 + $0x60] sm:$0xff] }
  0xec   :  { %v983_v59 = vadd.f32 %v919_v52, %v745_v54  ;;  %v1274_v61 = vpop.f32.mrb[6].mxu1  ;;  %1016 = vst.msk [vmem:[%s2268_s6 + $0x20] sm:$0xff] %vm1011_vm2, %v951_v56  ;;  %v595_v3 = vadd.f32 %v1748_v4, %v594_v63  ;;  %v927_v53 = vld [vmem:[%s2267_s1 + $0x160] sm:$0xff]  ;;  %v930_v63 = vld [vmem:[%s2267_s1 + $0x178] sm:$0xff] }
  0xed   :  { %1049 = vst.msk [vmem:[%s2268_s6 + $0x128] sm:$0xff] %vm1011_vm2, %v984_v55  ;;  %v760_v1 = vadd.f32 %v1274_v61, %v1748_v4  ;;  %v754_v5 = vpop.f32.mrb[7].mxu1  ;;  %v954_v7 = vadd.f32 %v890_v58, %v600_v60 }
  0xee   :  { %1048 = vst.msk [vmem:[%s2268_s6 + $0x120] sm:$0xff] %vm1011_vm2, %v983_v59  ;;  %v755_v2 = vadd.f32 %v1748_v4, %v754_v5  ;;  %v953_v9 = vadd.f32 %v889_v0, %v595_v3  ;;  %v1229_v10 = vpop.f32.mrb[8].mxu0  ;;  %v898_v59 = vld [vmem:[%s2267_s1 + $0x78] sm:$0xff] }
  0xef   :  { %v986_v8 = vadd.f32 %v922_v62, %v760_v1  ;;  %1019 = vst.msk [vmem:[%s2268_s6 + $0x38] sm:$0xff] %vm1011_vm2, %v954_v7  ;;  %v610_v13 = vadd.f32 %v1229_v10, %v1748_v4  ;;  %v604_v16 = vpop.f32.mrb[9].mxu0  ;;  %v897_v1 = vld [vmem:[%s2267_s1 + $0x70] sm:$0xff] }
  0xf0   :  { %v985_v12 = vadd.f32 %v921_v6, %v755_v2  ;;  %v1277_v14 = vpop.f32.mrb[8].mxu1  ;;  %1018 = vst.msk [vmem:[%s2268_s6 + $0x30] sm:$0xff] %vm1011_vm2, %v953_v9  ;;  %v605_v19 = vadd.f32 %v1748_v4, %v604_v16  ;;  %v929_v7 = vld [vmem:[%s2267_s1 + $0x170] sm:$0xff]  ;;  %v932_v16 = vld [vmem:[%s2267_s1 + $0x188] sm:$0xff] }
  0xf1   :  { %1051 = vst.msk [vmem:[%s2268_s6 + $0x138] sm:$0xff] %vm1011_vm2, %v986_v8  ;;  %v770_v18 = vadd.f32 %v1277_v14, %v1748_v4  ;;  %v764_v20 = vpop.f32.mrb[9].mxu1  ;;  %v956_v22 = vadd.f32 %v892_v11, %v610_v13 }
  0xf2   :  { %1050 = vst.msk [vmem:[%s2268_s6 + $0x130] sm:$0xff] %vm1011_vm2, %v985_v12  ;;  %v765_v23 = vadd.f32 %v1748_v4, %v764_v20  ;;  %v955_v25 = vadd.f32 %v891_v17, %v605_v19  ;;  %v1232_v26 = vpop.f32.mrb[10].mxu0  ;;  %v900_v12 = vld [vmem:[%s2267_s1 + $0x88] sm:$0xff] }
  0xf3   :  { %v988_v24 = vadd.f32 %v924_v15, %v770_v18  ;;  %1021 = vst.msk [vmem:[%s2268_s6 + $0x48] sm:$0xff] %vm1011_vm2, %v956_v22  ;;  %v620_v29 = vadd.f32 %v1232_v26, %v1748_v4  ;;  %v614_v32 = vpop.f32.mrb[11].mxu0  ;;  %v899_v18 = vld [vmem:[%s2267_s1 + $0x80] sm:$0xff] }
  0xf4   :  { %v987_v28 = vadd.f32 %v923_v21, %v765_v23  ;;  %v1280_v30 = vpop.f32.mrb[10].mxu1  ;;  %1020 = vst.msk [vmem:[%s2268_s6 + $0x40] sm:$0xff] %vm1011_vm2, %v955_v25  ;;  %v615_v35 = vadd.f32 %v1748_v4, %v614_v32  ;;  %v931_v22 = vld [vmem:[%s2267_s1 + $0x180] sm:$0xff]  ;;  %v934_v32 = vld [vmem:[%s2267_s1 + $0x198] sm:$0xff] }
  0xf5   :  { %1053 = vst.msk [vmem:[%s2268_s6 + $0x148] sm:$0xff] %vm1011_vm2, %v988_v24  ;;  %v780_v34 = vadd.f32 %v1280_v30, %v1748_v4  ;;  %v774_v36 = vpop.f32.mrb[11].mxu1  ;;  %v958_v38 = vadd.f32 %v894_v27, %v620_v29 }
  0xf6   :  { %1052 = vst.msk [vmem:[%s2268_s6 + $0x140] sm:$0xff] %vm1011_vm2, %v987_v28  ;;  %v775_v39 = vadd.f32 %v1748_v4, %v774_v36  ;;  %v957_v41 = vadd.f32 %v893_v33, %v615_v35  ;;  %v1235_v42 = vpop.f32.mrb[12].mxu0  ;;  %v902_v28 = vld [vmem:[%s2267_s1 + $0x98] sm:$0xff] }
  0xf7   :  { %v990_v40 = vadd.f32 %v926_v31, %v780_v34  ;;  %1023 = vst.msk [vmem:[%s2268_s6 + $0x58] sm:$0xff] %vm1011_vm2, %v958_v38  ;;  %v630_v45 = vadd.f32 %v1235_v42, %v1748_v4  ;;  %v624_v48 = vpop.f32.mrb[13].mxu0  ;;  %v901_v34 = vld [vmem:[%s2267_s1 + $0x90] sm:$0xff] }
  0xf8   :  { %v989_v44 = vadd.f32 %v925_v37, %v775_v39  ;;  %v1283_v46 = vpop.f32.mrb[12].mxu1  ;;  %1022 = vst.msk [vmem:[%s2268_s6 + $0x50] sm:$0xff] %vm1011_vm2, %v957_v41  ;;  %v625_v51 = vadd.f32 %v1748_v4, %v624_v48  ;;  %v933_v38 = vld [vmem:[%s2267_s1 + $0x190] sm:$0xff]  ;;  %v936_v48 = vld [vmem:[%s2267_s1 + $0x1a8] sm:$0xff] }
  0xf9   :  { %1055 = vst.msk [vmem:[%s2268_s6 + $0x158] sm:$0xff] %vm1011_vm2, %v990_v40  ;;  %v790_v50 = vadd.f32 %v1283_v46, %v1748_v4  ;;  %v784_v52 = vpop.f32.mrb[13].mxu1  ;;  %v960_v54 = vadd.f32 %v896_v43, %v630_v45 }
  0xfa   :  { %1054 = vst.msk [vmem:[%s2268_s6 + $0x150] sm:$0xff] %vm1011_vm2, %v989_v44  ;;  %v785_v55 = vadd.f32 %v1748_v4, %v784_v52  ;;  %v959_v57 = vadd.f32 %v895_v49, %v625_v51  ;;  %v1238_v58 = vpop.f32.mrb[14].mxu0  ;;  %v904_v44 = vld [vmem:[%s2267_s1 + $0xa8] sm:$0xff] }
  0xfb   :  { %v992_v56 = vadd.f32 %v928_v47, %v790_v50  ;;  %1025 = vst.msk [vmem:[%s2268_s6 + $0x68] sm:$0xff] %vm1011_vm2, %v960_v54  ;;  %v640_v61 = vadd.f32 %v1238_v58, %v1748_v4  ;;  %v634_v0 = vpop.f32.mrb[15].mxu0  ;;  %v903_v50 = vld [vmem:[%s2267_s1 + $0xa0] sm:$0xff] }
  0xfc   :  { %v991_v60 = vadd.f32 %v927_v53, %v785_v55  ;;  %v1286_v62 = vpop.f32.mrb[14].mxu1  ;;  %1024 = vst.msk [vmem:[%s2268_s6 + $0x60] sm:$0xff] %vm1011_vm2, %v959_v57  ;;  %v635_v5 = vadd.f32 %v1748_v4, %v634_v0  ;;  %v935_v54 = vld [vmem:[%s2267_s1 + $0x1a0] sm:$0xff]  ;;  %v938_v0 = vld [vmem:[%s2267_s1 + $0x1b8] sm:$0xff] }
  0xfd   :  { %1057 = vst.msk [vmem:[%s2268_s6 + $0x168] sm:$0xff] %vm1011_vm2, %v992_v56  ;;  %v800_v3 = vadd.f32 %v1286_v62, %v1748_v4  ;;  %v794_v6 = vpop.f32.mrb[15].mxu1  ;;  %v962_v2 = vadd.f32 %v898_v59, %v640_v61 }
  0xfe   :  { %1056 = vst.msk [vmem:[%s2268_s6 + $0x160] sm:$0xff] %vm1011_vm2, %v991_v60  ;;  %v795_v8 = vadd.f32 %v1748_v4, %v794_v6  ;;  %v961_v10 = vadd.f32 %v897_v1, %v635_v5  ;;  %v1241_v11 = vpop.f32.mrb[16].mxu0  ;;  %v906_v60 = vld [vmem:[%s2267_s1 + $0xb8] sm:$0xff] }
  0xff   :  { %v994_v9 = vadd.f32 %v930_v63, %v800_v3  ;;  %1027 = vst.msk [vmem:[%s2268_s6 + $0x78] sm:$0xff] %vm1011_vm2, %v962_v2  ;;  %v650_v14 = vadd.f32 %v1241_v11, %v1748_v4  ;;  %v644_v17 = vpop.f32.mrb[17].mxu0  ;;  %v905_v3 = vld [vmem:[%s2267_s1 + $0xb0] sm:$0xff] }
 0x100   :  { %v993_v13 = vadd.f32 %v929_v7, %v795_v8  ;;  %v1289_v15 = vpop.f32.mrb[16].mxu1  ;;  %1026 = vst.msk [vmem:[%s2268_s6 + $0x70] sm:$0xff] %vm1011_vm2, %v961_v10  ;;  %v645_v20 = vadd.f32 %v1748_v4, %v644_v17  ;;  %v937_v2 = vld [vmem:[%s2267_s1 + $0x1b0] sm:$0xff]  ;;  %v940_v17 = vld [vmem:[%s2267_s1 + $0x1c8] sm:$0xff] }
 0x101   :  { %1059 = vst.msk [vmem:[%s2268_s6 + $0x178] sm:$0xff] %vm1011_vm2, %v994_v9  ;;  %v810_v19 = vadd.f32 %v1289_v15, %v1748_v4  ;;  %v804_v21 = vpop.f32.mrb[17].mxu1  ;;  %v964_v23 = vadd.f32 %v900_v12, %v650_v14 }
 0x102   :  { %1058 = vst.msk [vmem:[%s2268_s6 + $0x170] sm:$0xff] %vm1011_vm2, %v993_v13  ;;  %v805_v24 = vadd.f32 %v1748_v4, %v804_v21  ;;  %v963_v26 = vadd.f32 %v899_v18, %v645_v20  ;;  %v1244_v27 = vpop.f32.mrb[18].mxu0  ;;  %v908_v13 = vld [vmem:[%s2267_s1 + $0xc8] sm:$0xff] }
 0x103   :  { %v996_v25 = vadd.f32 %v932_v16, %v810_v19  ;;  %1029 = vst.msk [vmem:[%s2268_s6 + $0x88] sm:$0xff] %vm1011_vm2, %v964_v23  ;;  %v660_v30 = vadd.f32 %v1244_v27, %v1748_v4  ;;  %v654_v33 = vpop.f32.mrb[19].mxu0  ;;  %v907_v19 = vld [vmem:[%s2267_s1 + $0xc0] sm:$0xff] }
 0x104   :  { %v995_v29 = vadd.f32 %v931_v22, %v805_v24  ;;  %v1292_v31 = vpop.f32.mrb[18].mxu1  ;;  %1028 = vst.msk [vmem:[%s2268_s6 + $0x80] sm:$0xff] %vm1011_vm2, %v963_v26  ;;  %v655_v36 = vadd.f32 %v1748_v4, %v654_v33  ;;  %v939_v23 = vld [vmem:[%s2267_s1 + $0x1c0] sm:$0xff]  ;;  %v942_v33 = vld [vmem:[%s2267_s1 + $0x1d8] sm:$0xff] }
 0x105   :  { %1061 = vst.msk [vmem:[%s2268_s6 + $0x188] sm:$0xff] %vm1011_vm2, %v996_v25  ;;  %v820_v35 = vadd.f32 %v1292_v31, %v1748_v4  ;;  %v814_v37 = vpop.f32.mrb[19].mxu1  ;;  %v966_v39 = vadd.f32 %v902_v28, %v660_v30 }
 0x106   :  { %1060 = vst.msk [vmem:[%s2268_s6 + $0x180] sm:$0xff] %vm1011_vm2, %v995_v29  ;;  %v815_v40 = vadd.f32 %v1748_v4, %v814_v37  ;;  %v965_v42 = vadd.f32 %v901_v34, %v655_v36  ;;  %v1247_v43 = vpop.f32.mrb[20].mxu0  ;;  %v910_v29 = vld [vmem:[%s2267_s1 + $0xd8] sm:$0xff] }
 0x107   :  { %v998_v41 = vadd.f32 %v934_v32, %v820_v35  ;;  %1031 = vst.msk [vmem:[%s2268_s6 + $0x98] sm:$0xff] %vm1011_vm2, %v966_v39  ;;  %v670_v46 = vadd.f32 %v1247_v43, %v1748_v4  ;;  %v664_v49 = vpop.f32.mrb[21].mxu0  ;;  %v909_v35 = vld [vmem:[%s2267_s1 + $0xd0] sm:$0xff] }
 0x108   :  { %v997_v45 = vadd.f32 %v933_v38, %v815_v40  ;;  %v1295_v47 = vpop.f32.mrb[20].mxu1  ;;  %1030 = vst.msk [vmem:[%s2268_s6 + $0x90] sm:$0xff] %vm1011_vm2, %v965_v42  ;;  %v665_v52 = vadd.f32 %v1748_v4, %v664_v49  ;;  %v941_v39 = vld [vmem:[%s2267_s1 + $0x1d0] sm:$0xff]  ;;  %v944_v49 = vld [vmem:[%s2267_s1 + $0x1e8] sm:$0xff] }
 0x109   :  { %1063 = vst.msk [vmem:[%s2268_s6 + $0x198] sm:$0xff] %vm1011_vm2, %v998_v41  ;;  %v830_v51 = vadd.f32 %v1295_v47, %v1748_v4  ;;  %v824_v53 = vpop.f32.mrb[21].mxu1  ;;  %v968_v55 = vadd.f32 %v904_v44, %v670_v46 }
 0x10a   :  { %1062 = vst.msk [vmem:[%s2268_s6 + $0x190] sm:$0xff] %vm1011_vm2, %v997_v45  ;;  %v825_v56 = vadd.f32 %v1748_v4, %v824_v53  ;;  %v967_v58 = vadd.f32 %v903_v50, %v665_v52  ;;  %v1250_v59 = vpop.f32.mrb[22].mxu0  ;;  %v912_v45 = vld [vmem:[%s2267_s1 + $0xe8] sm:$0xff] }
 0x10b   :  { %v1000_v57 = vadd.f32 %v936_v48, %v830_v51  ;;  %1033 = vst.msk [vmem:[%s2268_s6 + $0xa8] sm:$0xff] %vm1011_vm2, %v968_v55  ;;  %v680_v62 = vadd.f32 %v1250_v59, %v1748_v4  ;;  %v674_v1 = vpop.f32.mrb[23].mxu0  ;;  %v911_v51 = vld [vmem:[%s2267_s1 + $0xe0] sm:$0xff] }
 0x10c   :  { %v999_v61 = vadd.f32 %v935_v54, %v825_v56  ;;  %v1298_v63 = vpop.f32.mrb[22].mxu1  ;;  %1032 = vst.msk [vmem:[%s2268_s6 + $0xa0] sm:$0xff] %vm1011_vm2, %v967_v58  ;;  %v675_v6 = vadd.f32 %v1748_v4, %v674_v1  ;;  %v943_v55 = vld [vmem:[%s2267_s1 + $0x1e0] sm:$0xff]  ;;  %v946_v1 = vld [vmem:[%s2267_s1 + $0x1f8] sm:$0xff] }
 0x10d   :  { %1065 = vst.msk [vmem:[%s2268_s6 + $0x1a8] sm:$0xff] %vm1011_vm2, %v1000_v57  ;;  %v840_v5 = vadd.f32 %v1298_v63, %v1748_v4  ;;  %v834_v7 = vpop.f32.mrb[23].mxu1  ;;  %v970_v8 = vadd.f32 %v906_v60, %v680_v62 }
 0x10e   :  { %1064 = vst.msk [vmem:[%s2268_s6 + $0x1a0] sm:$0xff] %vm1011_vm2, %v999_v61  ;;  %v835_v9 = vadd.f32 %v1748_v4, %v834_v7  ;;  %v969_v11 = vadd.f32 %v905_v3, %v675_v6  ;;  %v1253_v12 = vpop.f32.mrb[24].mxu0  ;;  %v914_v61 = vld [vmem:[%s2267_s1 + $0xf8] sm:$0xff] }
 0x10f   :  { %v1002_v10 = vadd.f32 %v938_v0, %v840_v5  ;;  %1035 = vst.msk [vmem:[%s2268_s6 + $0xb8] sm:$0xff] %vm1011_vm2, %v970_v8  ;;  %v690_v15 = vadd.f32 %v1253_v12, %v1748_v4  ;;  %v684_v18 = vpop.f32.mrb[25].mxu0  ;;  %v913_v5 = vld [vmem:[%s2267_s1 + $0xf0] sm:$0xff] }
 0x110   :  { %v1001_v14 = vadd.f32 %v937_v2, %v835_v9  ;;  %v1301_v16 = vpop.f32.mrb[24].mxu1  ;;  %1034 = vst.msk [vmem:[%s2268_s6 + $0xb0] sm:$0xff] %vm1011_vm2, %v969_v11  ;;  %v685_v21 = vadd.f32 %v1748_v4, %v684_v18  ;;  %v945_v8 = vld [vmem:[%s2267_s1 + $0x1f0] sm:$0xff] }
 0x111   :  { %1067 = vst.msk [vmem:[%s2268_s6 + $0x1b8] sm:$0xff] %vm1011_vm2, %v1002_v10  ;;  %v850_v20 = vadd.f32 %v1301_v16, %v1748_v4  ;;  %v844_v22 = vpop.f32.mrb[25].mxu1  ;;  %v972_v24 = vadd.f32 %v908_v13, %v690_v15 }
 0x112   :  { %1066 = vst.msk [vmem:[%s2268_s6 + $0x1b0] sm:$0xff] %vm1011_vm2, %v1001_v14  ;;  %v845_v25 = vadd.f32 %v1748_v4, %v844_v22  ;;  %v971_v27 = vadd.f32 %v907_v19, %v685_v21  ;;  %v1256_v28 = vpop.f32.mrb[26].mxu0 }
 0x113   :  { %v1004_v26 = vadd.f32 %v940_v17, %v850_v20  ;;  %1037 = vst.msk [vmem:[%s2268_s6 + $0xc8] sm:$0xff] %vm1011_vm2, %v972_v24  ;;  %v700_v31 = vadd.f32 %v1256_v28, %v1748_v4  ;;  %v694_v34 = vpop.f32.mrb[27].mxu0 }
 0x114   :  { %v1003_v30 = vadd.f32 %v939_v23, %v845_v25  ;;  %v1304_v32 = vpop.f32.mrb[26].mxu1  ;;  %1036 = vst.msk [vmem:[%s2268_s6 + $0xc0] sm:$0xff] %vm1011_vm2, %v971_v27  ;;  %v695_v37 = vadd.f32 %v1748_v4, %v694_v34 }
 0x115   :  { %1069 = vst.msk [vmem:[%s2268_s6 + $0x1c8] sm:$0xff] %vm1011_vm2, %v1004_v26  ;;  %v860_v36 = vadd.f32 %v1304_v32, %v1748_v4  ;;  %v854_v38 = vpop.f32.mrb[27].mxu1  ;;  %v974_v40 = vadd.f32 %v910_v29, %v700_v31 }
 0x116   :  { %1068 = vst.msk [vmem:[%s2268_s6 + $0x1c0] sm:$0xff] %vm1011_vm2, %v1003_v30  ;;  %v855_v41 = vadd.f32 %v1748_v4, %v854_v38  ;;  %v973_v43 = vadd.f32 %v909_v35, %v695_v37  ;;  %v1259_v44 = vpop.f32.mrb[28].mxu0 }
 0x117   :  { %v1006_v42 = vadd.f32 %v942_v33, %v860_v36  ;;  %1039 = vst.msk [vmem:[%s2268_s6 + $0xd8] sm:$0xff] %vm1011_vm2, %v974_v40  ;;  %v710_v47 = vadd.f32 %v1259_v44, %v1748_v4  ;;  %v704_v50 = vpop.f32.mrb[29].mxu0 }
 0x118   :  { %v1005_v46 = vadd.f32 %v941_v39, %v855_v41  ;;  %v1307_v48 = vpop.f32.mrb[28].mxu1  ;;  %1038 = vst.msk [vmem:[%s2268_s6 + $0xd0] sm:$0xff] %vm1011_vm2, %v973_v43  ;;  %v705_v53 = vadd.f32 %v1748_v4, %v704_v50 }
 0x119   :  { %1071 = vst.msk [vmem:[%s2268_s6 + $0x1d8] sm:$0xff] %vm1011_vm2, %v1006_v42  ;;  %v870_v52 = vadd.f32 %v1307_v48, %v1748_v4  ;;  %v864_v54 = vpop.f32.mrb[29].mxu1  ;;  %v976_v56 = vadd.f32 %v912_v45, %v710_v47 }
 0x11a   :  { %1070 = vst.msk [vmem:[%s2268_s6 + $0x1d0] sm:$0xff] %vm1011_vm2, %v1005_v46  ;;  %v865_v57 = vadd.f32 %v1748_v4, %v864_v54  ;;  %v975_v59 = vadd.f32 %v911_v51, %v705_v53  ;;  %v1262_v60 = vpop.f32.mrb[30].mxu0 }
 0x11b   :  { %v1008_v58 = vadd.f32 %v944_v49, %v870_v52  ;;  %1041 = vst.msk [vmem:[%s2268_s6 + $0xe8] sm:$0xff] %vm1011_vm2, %v976_v56  ;;  %v720_v63 = vadd.f32 %v1262_v60, %v1748_v4  ;;  %v714_v3 = vpop.f32.mrb[31].mxu0 }
 0x11c   :  { %v1007_v62 = vadd.f32 %v943_v55, %v865_v57  ;;  %v1310_v0 = vpop.f32.mrb[30].mxu1  ;;  %1040 = vst.msk [vmem:[%s2268_s6 + $0xe0] sm:$0xff] %vm1011_vm2, %v975_v59  ;;  %v715_v7 = vadd.f32 %v1748_v4, %v714_v3 }
 0x11d   :  { %1073 = vst.msk [vmem:[%s2268_s6 + $0x1e8] sm:$0xff] %vm1011_vm2, %v1008_v58  ;;  %v880_v6 = vadd.f32 %v1310_v0, %v1748_v4  ;;  %v874_v2 = vpop.f32.mrb[31].mxu1  ;;  %v978_v9 = vadd.f32 %v914_v61, %v720_v63 }
 0x11e   :  { %1072 = vst.msk [vmem:[%s2268_s6 + $0x1e0] sm:$0xff] %vm1011_vm2, %v1007_v62  ;;  %v875_v10 = vadd.f32 %v1748_v4, %v874_v2  ;;  %v977_v12 = vadd.f32 %v913_v5, %v715_v7 }
 0x11f   :  { %v1010_v11 = vadd.f32 %v946_v1, %v880_v6  ;;  %1043 = vst.msk [vmem:[%s2268_s6 + $0xf8] sm:$0xff] %vm1011_vm2, %v978_v9 }
 0x120   :  { %v1009_v13 = vadd.f32 %v945_v8, %v875_v10  ;;  %1042 = vst.msk [vmem:[%s2268_s6 + $0xf0] sm:$0xff] %vm1011_vm2, %v977_v12 }
 0x121   :  { %1075 = vst.msk [vmem:[%s2268_s6 + $0x1f8] sm:$0xff] %vm1011_vm2, %v1010_v11 }
 0x122   :  { %1074 = vst.msk [vmem:[%s2268_s6 + $0x1f0] sm:$0xff] %vm1011_vm2, %v1009_v13 }

// kernel: bottleneck_forward.4
= control target key start
LH: loop header
LB: loop body
LE: loop exit
PB: predicated region body
PF: predicated region fallthrough
CT: control target
= control target key end

     0   :  { %s6206_s24 = smov 0   ;;  %s8011_s0 = inlined_call_operand.vmem [shape: f32[512,4], index: 0, kind: input, shape index: {}]   ;;  %s8012_s1 = inlined_call_operand.vmem [shape: f32[1,4], index: 1, kind: input, shape index: {}]   ;;  %s8013_s2 = inlined_call_operand.vmem [shape: f32[1,4], index: 2, kind: input, shape index: {}]   ;;  %s8014_s3 = inlined_call_operand.vmem [shape: f32[9,4,4], index: 3, kind: input, shape index: {}]   ;;  %s8015_s4 = inlined_call_operand.vmem [shape: f32[1,4], index: 4, kind: input, shape index: {}]   ;;  %s8016_s5 = inlined_call_operand.vmem [shape: f32[512,4], index: 5, kind: output, shape index: {0}]   ;;  %s8017_s6 = inlined_call_operand.vmem [shape: f32[2,1,4], index: 6, kind: output, shape index: {1}]   ;;  %s8018_s7 = inlined_call_operand.vmem [shape: f32[2,1,4], index: 7, kind: output, shape index: {2}]  }
   0x1 LB: > { %s6212_s25 = sadd.s32 4294967295, %s6163_s24   ;;  %p4763_p0 = scmp.ge.s32.totalorder %s6163_s24, 1  ;;  %s6163_s24 = sphi %s6206_s24, %s18_s24  }
   0x2   : > { %p243_p1 = scmp.lt.s32.totalorder %s6163_s24, 3 }
   0x4   : > { %p244_p2 = pnand %p4763_p0, %p243_p1 }
   0x6   : > { %247 = sbr.rel (%p244_p2) target bundleno = 556 (0x22c), region = 40 }
   0xd   : > { %v4834_v0 = vld [vmem:[%s8014_s3 + $0x4] sm:$0xf]  ;;  %vm966_vm0 = vcmask 1043456   ;;  %vm730_vm1 = vcmask 31744   ;;  %s4764_s28 = sshll.u32 %s6212_s25, 5  ;;  %v8019_v1 = vmov 0.0  }
   0xe   : > { %5439 = vmatprep.subr.msk.mxu1 %vm966_vm0, %v4834_v0  ;;  %733 = vst.msk [vmem:[#allocation2 + $0x10] sm:$0xff] %vm730_vm1, %v8019_v1  ;;  %732 = vst.msk [vmem:[#allocation2 + $0x8] sm:$0xff] %vm730_vm1, %v8019_v1  ;;  %v4969_v2 = vld [vmem:[%s8014_s3 + $0x10] sm:$0xf]  ;;  %p282_p3 = scmp.lt.s32.totalorder %s4764_s28, 63  ;;  %p293_p4 = scmp.lt.s32.totalorder %s6212_s25, 1 }
   0xf   : > { %734 = vst.msk [vmem:[#allocation2 + $0x18] sm:$0xff] %vm730_vm1, %v8019_v1  ;;  %767 = vst.msk [vmem:[#allocation2 + $0x120] sm:$0xff] %vm730_vm1, %v8019_v1  ;;  %5440 = vmatpush3.msk.msra.mxu1 %vm966_vm0, %v4834_v0  ;;  %5639 = vmatprep.subr.msk.mxu0 %vm966_vm0, %v4969_v2  ;;  %v835_v3 = vld [vmem:[%s8014_s3] sm:$0xf]  ;;  %v6244_v4 = vld [vmem:[%s8014_s3 + $0x14] sm:$0xf] }
  0x10   : > { %768 = vst.msk [vmem:[#allocation2 + $0x128] sm:$0xff] %vm730_vm1, %v8019_v1  ;;  %769 = vst.msk [vmem:[#allocation2 + $0x130] sm:$0xff] %vm730_vm1, %v8019_v1  ;;  %5640 = vmatpush3.msk.msra.mxu0 %vm966_vm0, %v4969_v2  ;;  %s8263_s28 = smov (!%p282_p3, %s4764_s28), 63  ;;  %5489 = vmatprep.subr.msk.mxu1 %vm966_vm0, %v835_v3  ;;  %v6256_v5 = vld [vmem:[%s8012_s1] ss:$0 sm:$0xff]  ;;  %s8265_s25 = smov (!%p293_p4, %s6212_s25), 1 }
  0x11   : > { %5689 = vmatprep.subr.msk.mxu0 %vm966_vm0, %v6244_v4  ;;  %s4765_s12 = sshll.u32 %s8263_s28, 3  ;;  %v6268_v6 = vld [vmem:[%s8013_s2] ss:$0 sm:$0xff]  ;;  %v6276_v10 = vld [vmem:[%s8014_s3 + $0x8] sm:$0xf]  ;;  %s295_s18 = scalar_lea.vmem %s8017_s6, %s8265_s25 }
  0x12   : > { %s6263_s17 = scalar_lea.vmem %s8011_s0, %s4765_s12  ;;  %s298_s21 = scalar_lea.vmem %s8018_s7, %s8265_s25 }
  0x13   : > { %v588_v7 = vld [vmem:[%s6263_s17] sm:$0xff]  ;;  %v589_v8 = vld [vmem:[%s6263_s17 + $0x8] sm:$0xff]  ;;  %v590_v9 = vld [vmem:[%s6263_s17 + $0x10] sm:$0xff] }
  0x14   : > { %v627_v13 = vmul.f32 %v6256_v5, %v588_v7  ;;  %v628_v14 = vmul.f32 %v6256_v5, %v589_v8  ;;  %v629_v15 = vmul.f32 %v6256_v5, %v590_v9  ;;  %v591_v16 = vld [vmem:[%s6263_s17 + $0x18] sm:$0xff]  ;;  %v592_v18 = vld [vmem:[%s6263_s17 + $0x20] sm:$0xff]  ;;  %v593_v19 = vld [vmem:[%s6263_s17 + $0x28] sm:$0xff] }
  0x15   : > { %v836_v11 = vld [vmem:[#allocation2 + $0x10] sm:$0xff]  ;;  %v630_v17 = vmul.f32 %v6256_v5, %v591_v16  ;;  %v631_v24 = vmul.f32 %v6256_v5, %v592_v18  ;;  %v595_v25 = vld [vmem:[%s6263_s17 + $0x38] sm:$0xff]  ;;  %v632_v27 = vmul.f32 %v6256_v5, %v593_v19  ;;  %v596_v30 = vld [vmem:[%s6263_s17 + $0x40] sm:$0xff] }
  0x16   : > { %v837_v12 = vld [vmem:[#allocation2 + $0x18] sm:$0xff]  ;;  %5441 = vmatprep.mubr.msk.f32.mxu1 %vm730_vm1, %v836_v11  ;;  %v594_v20 = vld [vmem:[%s6263_s17 + $0x30] sm:$0xff]  ;;  %v666_v21 = vadd.f32 %v6268_v6, %v627_v13  ;;  %v667_v22 = vadd.f32 %v6268_v6, %v628_v14  ;;  %v668_v23 = vadd.f32 %v6268_v6, %v629_v15  ;;  %v634_v29 = vmul.f32 %v6256_v5, %v595_v25  ;;  %v597_v31 = vld [vmem:[%s6263_s17 + $0x48] sm:$0xff] }
  0x17   : > { %5442 = vmatmul.mubr.msk.f32.vlgmr.msra.gmra.mrb[0].mxu1 %vm730_vm1, %v837_v12  ;;  %v669_v26 = vadd.f32 %v6268_v6, %v630_v17  ;;  %v633_v28 = vmul.f32 %v6256_v5, %v594_v20  ;;  %v598_v32 = vld [vmem:[%s6263_s17 + $0x50] sm:$0xff]  ;;  %v670_v36 = vadd.f32 %v6268_v6, %v631_v24  ;;  %v599_v37 = vld [vmem:[%s6263_s17 + $0x58] sm:$0xff]  ;;  %v671_v39 = vadd.f32 %v6268_v6, %v632_v27  ;;  %v600_v42 = vld [vmem:[%s6263_s17 + $0x60] sm:$0xff] }
  0x18   : > { %5490 = vmatpush3.msk.msra.mxu1 %vm966_vm0, %v835_v3  ;;  %v698_v33 = vmax.f32 %v666_v21, 0.0  ;;  %v699_v34 = vmax.f32 %v667_v22, 0.0  ;;  %v700_v35 = vmax.f32 %v668_v23, 0.0  ;;  %v673_v41 = vadd.f32 %v6268_v6, %v634_v29  ;;  %v601_v47 = vld [vmem:[%s6263_s17 + $0x68] sm:$0xff]  ;;  %v602_v48 = vld [vmem:[%s6263_s17 + $0x70] sm:$0xff]  ;;  %v603_v49 = vld [vmem:[%s6263_s17 + $0x78] sm:$0xff] }
  0x19   : > { %5539 = vmatprep.subr.msk.mxu1 %vm966_vm0, %v6276_v10  ;;  %v701_v38 = vmax.f32 %v669_v26, 0.0  ;;  %v672_v40 = vadd.f32 %v6268_v6, %v633_v28  ;;  %v702_v43 = vmax.f32 %v670_v36, 0.0  ;;  %v635_v44 = vmul.f32 %v6256_v5, %v596_v30  ;;  %v604_v62 = vld [vmem:[%s6263_s17 + $0x80] sm:$0xff]  ;;  %v605_v63 = vld [vmem:[%s6263_s17 + $0x88] sm:$0xff]  ;;  %v606_v8 = vld [vmem:[%s6263_s17 + $0x90] sm:$0xff] }
  0x1a   : > { %735 = vst.msk [vmem:[#allocation2 + $0x20] sm:$0xff] %vm730_vm1, %v698_v33  ;;  %736 = vst.msk [vmem:[#allocation2 + $0x28] sm:$0xff] %vm730_vm1, %v699_v34  ;;  %v636_v45 = vmul.f32 %v6256_v5, %v597_v31  ;;  %v637_v46 = vmul.f32 %v6256_v5, %v598_v32  ;;  %v703_v50 = vmax.f32 %v671_v39, 0.0  ;;  %v705_v52 = vmax.f32 %v673_v41, 0.0  ;;  %v6353_v25 = vld [vmem:[%s8014_s3 + $0x18] sm:$0xf] }
  0x1b   : > { %737 = vst.msk [vmem:[#allocation2 + $0x30] sm:$0xff] %vm730_vm1, %v700_v35  ;;  %738 = vst.msk [vmem:[#allocation2 + $0x38] sm:$0xff] %vm730_vm1, %v701_v38  ;;  %v704_v51 = vmax.f32 %v672_v40, 0.0  ;;  %v638_v53 = vmul.f32 %v6256_v5, %v599_v37  ;;  %v674_v54 = vadd.f32 %v6268_v6, %v635_v44  ;;  %v639_v57 = vmul.f32 %v6256_v5, %v600_v42  ;;  %v607_v27 = vld [vmem:[%s6263_s17 + $0x98] sm:$0xff]  ;;  %v608_v28 = vld [vmem:[%s6263_s17 + $0xa0] sm:$0xff] }
  0x1c   : > { %739 = vst.msk [vmem:[#allocation2 + $0x40] sm:$0xff] %vm730_vm1, %v702_v43  ;;  %v675_v55 = vadd.f32 %v6268_v6, %v636_v45  ;;  %v676_v56 = vadd.f32 %v6268_v6, %v637_v46  ;;  %740 = vst.msk [vmem:[#allocation2 + $0x48] sm:$0xff] %vm730_vm1, %v703_v50  ;;  %v640_v59 = vmul.f32 %v6256_v5, %v601_v47  ;;  %v299_v29 = vlaneseq  ;;  %v609_v31 = vld [vmem:[%s6263_s17 + $0xa8] sm:$0xff]  ;;  %v610_v32 = vld [vmem:[%s6263_s17 + $0xb0] sm:$0xff] }
  0x1d   : > { %741 = vst.msk [vmem:[#allocation2 + $0x50] sm:$0xff] %vm730_vm1, %v704_v51  ;;  %742 = vst.msk [vmem:[#allocation2 + $0x58] sm:$0xff] %vm730_vm1, %v705_v52  ;;  %v677_v58 = vadd.f32 %v6268_v6, %v638_v53  ;;  %v641_v60 = vmul.f32 %v6256_v5, %v602_v48  ;;  %v642_v61 = vmul.f32 %v6256_v5, %v603_v49  ;;  %v706_v0 = vmax.f32 %v674_v54, 0.0  ;;  %v611_v46 = vld [vmem:[%s6263_s17 + $0xb8] sm:$0xff]  ;;  %v612_v50 = vld [vmem:[%s6263_s17 + $0xc0] sm:$0xff] }
  0x1e   : > { %v707_v2 = vmax.f32 %v675_v55, 0.0  ;;  %v708_v3 = vmax.f32 %v676_v56, 0.0  ;;  %v678_v7 = vadd.f32 %v6268_v6, %v639_v57  ;;  %v679_v11 = vadd.f32 %v6268_v6, %v640_v59  ;;  %v613_v53 = vld [vmem:[%s6263_s17 + $0xc8] sm:$0xff] }
  0x1f   : > { %v709_v9 = vmax.f32 %v677_v58, 0.0  ;;  %v680_v12 = vadd.f32 %v6268_v6, %v641_v60  ;;  %v681_v13 = vadd.f32 %v6268_v6, %v642_v61  ;;  %743 = vst.msk [vmem:[#allocation2 + $0x60] sm:$0xff] %vm730_vm1, %v706_v0  ;;  %v643_v15 = vmul.f32 %v6256_v5, %v604_v62 }
  0x20   : > { %744 = vst.msk [vmem:[#allocation2 + $0x68] sm:$0xff] %vm730_vm1, %v707_v2  ;;  %745 = vst.msk [vmem:[#allocation2 + $0x70] sm:$0xff] %vm730_vm1, %v708_v3  ;;  %v710_v14 = vmax.f32 %v678_v7, 0.0  ;;  %v644_v16 = vmul.f32 %v6256_v5, %v605_v63  ;;  %v711_v20 = vmax.f32 %v679_v11, 0.0  ;;  %v645_v23 = vmul.f32 %v6256_v5, %v606_v8  ;;  %v614_v2 = vld [vmem:[%s6263_s17 + $0xd0] sm:$0xff]  ;;  %v615_v11 = vld [vmem:[%s6263_s17 + $0xd8] sm:$0xff] }
  0x21   : > { %v838_v17 = vld [vmem:[#allocation2 + $0x20] sm:$0xff]  ;;  %v839_v18 = vld [vmem:[#allocation2 + $0x28] sm:$0xff]  ;;  %746 = vst.msk [vmem:[#allocation2 + $0x78] sm:$0xff] %vm730_vm1, %v709_v9  ;;  %v712_v21 = vmax.f32 %v680_v12, 0.0  ;;  %v713_v22 = vmax.f32 %v681_v13, 0.0  ;;  %v682_v24 = vadd.f32 %v6268_v6, %v643_v15  ;;  %v646_v38 = vmul.f32 %v6256_v5, %v607_v27 }
  0x22   : > { %v840_v19 = vld [vmem:[#allocation2 + $0x30] sm:$0xff]  ;;  %5444 = vmatprep.mubr.msk.f32.mxu1 %vm730_vm1, %v838_v17  ;;  %5641 = vmatprep.mubr.msk.f32.mxu0 %vm730_vm1, %v838_v17  ;;  %747 = vst.msk [vmem:[#allocation2 + $0x80] sm:$0xff] %vm730_vm1, %v710_v14  ;;  %v683_v26 = vadd.f32 %v6268_v6, %v644_v16  ;;  %748 = vst.msk [vmem:[#allocation2 + $0x88] sm:$0xff] %vm730_vm1, %v711_v20  ;;  %v684_v30 = vadd.f32 %v6268_v6, %v645_v23  ;;  %v841_v33 = vld [vmem:[#allocation2 + $0x38] sm:$0xff]  ;;  %v6380_v41 = vshrl.u32 %v299_v29, 7 }
  0x23   : > { %5445 = vmatmul.mubr.msk.f32.gmra.mrb[2].mxu1 %vm730_vm1, %v839_v18  ;;  %5642 = vmatmul.mubr.msk.f32.vlgmr.msra.gmra.mrb[0].mxu0 %vm730_vm1, %v839_v18  ;;  %749 = vst.msk [vmem:[#allocation2 + $0x90] sm:$0xff] %vm730_vm1, %v712_v21  ;;  %750 = vst.msk [vmem:[#allocation2 + $0x98] sm:$0xff] %vm730_vm1, %v713_v22  ;;  %v714_v34 = vmax.f32 %v682_v24, 0.0  ;;  %v842_v36 = vld [vmem:[#allocation2 + $0x40] sm:$0xff]  ;;  %v647_v39 = vmul.f32 %v6256_v5, %v608_v28  ;;  %v649_v40 = vmul.f32 %v6256_v5, %v610_v32  ;;  %v843_v44 = vld [vmem:[#allocation2 + $0x48] sm:$0xff] }
  0x24   : > { %5690 = vmatpush3.msk.msra.mxu0 %vm966_vm0, %v6244_v4  ;;  %5447 = vmatprep.mubr.msk.f32.mxu1 %vm730_vm1, %v840_v19  ;;  %v715_v35 = vmax.f32 %v683_v26, 0.0  ;;  %v716_v37 = vmax.f32 %v684_v30, 0.0  ;;  %v648_v4 = vmul.f32 %v6256_v5, %v609_v31  ;;  %v685_v42 = vadd.f32 %v6268_v6, %v646_v38  ;;  %v844_v47 = vld [vmem:[#allocation2 + $0x50] sm:$0xff]  ;;  %v845_v56 = vld [vmem:[#allocation2 + $0x58] sm:$0xff]  ;;  %v616_v17 = vld [vmem:[%s6263_s17 + $0xe0] sm:$0xff] }
  0x25   : > { %5644 = vmatprep.mubr.msk.f32.mxu0 %vm730_vm1, %v840_v19  ;;  %5739 = vmatprep.subr.msk.mxu0 %vm966_vm0, %v6353_v25  ;;  %751 = vst.msk [vmem:[#allocation2 + $0xa0] sm:$0xff] %vm730_vm1, %v714_v34  ;;  %v686_v43 = vadd.f32 %v6268_v6, %v647_v39  ;;  %v688_v52 = vadd.f32 %v6268_v6, %v649_v40  ;;  %v301_v54 = vadd.s32 8, %v6380_v41  ;;  %v332_v57 = vand.u32 15, %v6380_v41  ;;  %v617_v32 = vld [vmem:[%s6263_s17 + $0xe8] sm:$0xff] }
  0x26   : > { %752 = vst.msk [vmem:[#allocation2 + $0xa8] sm:$0xff] %vm730_vm1, %v715_v35  ;;  %753 = vst.msk [vmem:[#allocation2 + $0xb0] sm:$0xff] %vm730_vm1, %v716_v37  ;;  %v687_v45 = vadd.f32 %v6268_v6, %v648_v4  ;;  %v717_v48 = vmax.f32 %v685_v42, 0.0  ;;  %v650_v55 = vmul.f32 %v6256_v5, %v611_v46  ;;  %v302_v58 = vadd.s32 16, %v6380_v41  ;;  %v846_v61 = vld [vmem:[#allocation2 + $0x60] sm:$0xff] }
  0x27   : > { %5448 = vmatmul.mubr.msk.f32.gmra.mrb[4].mxu1 %vm730_vm1, %v841_v33  ;;  %5645 = vmatmul.mubr.msk.f32.gmra.mrb[2].mxu0 %vm730_vm1, %v841_v33  ;;  %v718_v49 = vmax.f32 %v686_v43, 0.0  ;;  %v720_v59 = vmax.f32 %v688_v52, 0.0  ;;  %v651_v60 = vmul.f32 %v6256_v5, %v612_v50  ;;  %v652_v63 = vmul.f32 %v6256_v5, %v613_v53  ;;  %v847_v12 = vld [vmem:[#allocation2 + $0x68] sm:$0xff]  ;;  %v848_v18 = vld [vmem:[#allocation2 + $0x70] sm:$0xff] }
  0x28   : > { %5450 = vmatprep.mubr.msk.f32.mxu1 %vm730_vm1, %v842_v36  ;;  %5647 = vmatprep.mubr.msk.f32.mxu0 %vm730_vm1, %v842_v36  ;;  %v719_v51 = vmax.f32 %v687_v45, 0.0  ;;  %754 = vst.msk [vmem:[#allocation2 + $0xb8] sm:$0xff] %vm730_vm1, %v717_v48  ;;  %v689_v62 = vadd.f32 %v6268_v6, %v650_v55  ;;  %v333_v3 = vand.u32 15, %v301_v54  ;;  %v303_v7 = vadd.s32 24, %v6380_v41  ;;  %v849_v28 = vld [vmem:[#allocation2 + $0x78] sm:$0xff]  ;;  %v2753_v43 = vld [vmem:[#allocation2 + $0x21] sm:$0xff] }
  0x29   : > { %755 = vst.msk [vmem:[#allocation2 + $0xc0] sm:$0xff] %vm730_vm1, %v718_v49  ;;  %757 = vst.msk [vmem:[#allocation2 + $0xd0] sm:$0xff] %vm730_vm1, %v720_v59  ;;  %v690_v0 = vadd.f32 %v6268_v6, %v651_v60  ;;  %v691_v9 = vadd.f32 %v6268_v6, %v652_v63  ;;  %v6416_v13 = vcvt.s32.f32 %v332_v57  ;;  %v334_v14 = vand.u32 15, %v302_v58  ;;  %v850_v33 = vld [vmem:[#allocation2 + $0x80] sm:$0xff]  ;;  %v851_v42 = vld [vmem:[#allocation2 + $0x88] sm:$0xff] }
  0x2a   : > { %756 = vst.msk [vmem:[#allocation2 + $0xc8] sm:$0xff] %vm730_vm1, %v719_v51  ;;  %v721_v8 = vmax.f32 %v689_v62, 0.0  ;;  %v304_v15 = vadd.s32 32, %v6380_v41  ;;  %v653_v20 = vmul.f32 %v6256_v5, %v614_v2  ;;  %v305_v21 = vadd.s32 40, %v6380_v41  ;;  %v853_v57 = vld [vmem:[#allocation2 + $0x98] sm:$0xff]  ;;  %v2754_v58 = vld [vmem:[#allocation2 + $0x29] sm:$0xff] }
  0x2b   : > { %5451 = vmatmul.mubr.msk.f32.gmra.mrb[6].mxu1 %vm730_vm1, %v843_v44  ;;  %5648 = vmatmul.mubr.msk.f32.gmra.mrb[4].mxu0 %vm730_vm1, %v843_v44  ;;  %v722_v16 = vmax.f32 %v690_v0, 0.0  ;;  %v723_v19 = vmax.f32 %v691_v9, 0.0  ;;  %v654_v22 = vmul.f32 %v6256_v5, %v615_v11  ;;  %v6427_v23 = vcvt.s32.f32 %v333_v3  ;;  %v2755_v62 = vld [vmem:[#allocation2 + $0x31] sm:$0xff] }
  0x2c   : > { %5453 = vmatprep.mubr.msk.f32.mxu1 %vm730_vm1, %v844_v47  ;;  %5650 = vmatprep.mubr.msk.f32.mxu0 %vm730_vm1, %v844_v47  ;;  %758 = vst.msk [vmem:[#allocation2 + $0xd8] sm:$0xff] %vm730_vm1, %v721_v8  ;;  %v335_v24 = vand.u32 15, %v303_v7  ;;  %v692_v26 = vadd.f32 %v6268_v6, %v653_v20  ;;  %v655_v27 = vmul.f32 %v6256_v5, %v616_v17  ;;  %vm492_vm2 = vcmp.le.f32.partialorder %v6416_v13, 14.5  ;;  %v852_v47 = vld [vmem:[#allocation2 + $0x90] sm:$0xff] }
  0x2d   : > { %759 = vst.msk [vmem:[#allocation2 + $0xe0] sm:$0xff] %vm730_vm1, %v722_v16  ;;  %760 = vst.msk [vmem:[#allocation2 + $0xe8] sm:$0xff] %vm730_vm1, %v723_v19  ;;  %v6435_v29 = vcvt.s32.f32 %v334_v14  ;;  %v336_v30 = vand.u32 15, %v304_v15  ;;  %v693_v31 = vadd.f32 %v6268_v6, %v654_v22  ;;  %v306_v34 = vadd.s32 48, %v6380_v41  ;;  %v2756_v16 = vld [vmem:[#allocation2 + $0x39] sm:$0xff]  ;;  %v2757_v19 = vld [vmem:[#allocation2 + $0x41] sm:$0xff] }
  0x2e   : > { %v724_v35 = vmax.f32 %v692_v26, 0.0  ;;  %v694_v36 = vadd.f32 %v6268_v6, %v655_v27  ;;  %v307_v37 = vadd.s32 56, %v6380_v41  ;;  %v6445_v39 = vsel %vm492_vm2, 1.0, %v8019_v1 }
  0x2f   : > { %5454 = vmatmul.mubr.msk.f32.gmra.mrb[8].mxu1 %vm730_vm1, %v845_v56  ;;  %5651 = vmatmul.mubr.msk.f32.gmra.mrb[6].mxu0 %vm730_vm1, %v845_v56  ;;  %v725_v38 = vmax.f32 %v693_v31, 0.0  ;;  %vm493_vm3 = vcmp.le.f32.partialorder %v6427_v23, 14.5  ;;  %v656_v40 = vmul.f32 %v6256_v5, %v617_v32  ;;  %vm494_vm4 = vcmp.le.f32.partialorder %v6435_v29, 14.5  ;;  %v857_v32 = vld [vmem:[#allocation2 + $0xb8] sm:$0xff] }
  0x30   : > { %5456 = vmatprep.mubr.msk.f32.mxu1 %vm730_vm1, %v846_v61  ;;  %5653 = vmatprep.mubr.msk.f32.mxu0 %vm730_vm1, %v846_v61  ;;  %761 = vst.msk [vmem:[#allocation2 + $0xf0] sm:$0xff] %vm730_vm1, %v724_v35  ;;  %v726_v4 = vmax.f32 %v694_v36, 0.0  ;;  %v6453_v44 = vcvt.s32.f32 %v335_v24  ;;  %v6455_v45 = vcvt.s32.f32 %v336_v30  ;;  %v337_v46 = vand.u32 15, %v305_v21  ;;  %v854_v61 = vld [vmem:[#allocation2 + $0xa0] sm:$0xff]  ;;  %v2758_v35 = vld [vmem:[#allocation2 + $0x49] sm:$0xff] }
  0x31   : > { %762 = vst.msk [vmem:[#allocation2 + $0xf8] sm:$0xff] %vm730_vm1, %v725_v38  ;;  %v338_v48 = vand.u32 15, %v306_v34  ;;  %v308_v49 = vadd.s32 64, %v6380_v41  ;;  %v309_v50 = vadd.s32 72, %v6380_v41  ;;  %v695_v51 = vadd.f32 %v6268_v6, %v656_v40 }
  0x32   : > { %763 = vst.msk [vmem:[#allocation2 + $0x100] sm:$0xff] %vm730_vm1, %v726_v4  ;;  %v339_v52 = vand.u32 15, %v307_v37  ;;  %v310_v53 = vadd.s32 80, %v6380_v41  ;;  %v2785_v54 = vmul.f32 %v6445_v39, %v2753_v43  ;;  %v6469_v55 = vsel %vm493_vm3, 1.0, %v8019_v1  ;;  %v858_v37 = vld [vmem:[#allocation2 + $0xc0] sm:$0xff] }
  0x33   : > { %5457 = vmatmul.mubr.msk.f32.gmra.mrb[10].mxu1 %vm730_vm1, %v847_v12  ;;  %5654 = vmatmul.mubr.msk.f32.gmra.mrb[8].mxu0 %vm730_vm1, %v847_v12  ;;  %v727_v56 = vmax.f32 %v695_v51, 0.0  ;;  %v6476_v59 = vsel %vm494_vm4, 1.0, %v8019_v1  ;;  %vm495_vm5 = vcmp.le.f32.partialorder %v6453_v44, 14.5  ;;  %vm496_vm6 = vcmp.le.f32.partialorder %v6455_v45, 14.5  ;;  %v855_v12 = vld [vmem:[#allocation2 + $0xa8] sm:$0xff]  ;;  %v6544_v4 = vld [vmem:[#allocation2 + $0x59] sm:$0xff] }
  0x34   : > { %5459 = vmatprep.mubr.msk.f32.mxu1 %vm730_vm1, %v848_v18  ;;  %5656 = vmatprep.mubr.msk.f32.mxu0 %vm730_vm1, %v848_v18  ;;  %8112 = vst [vmem:[#allocation3_spill] sm:$0xff] %v6476_v59  ;;  %v6480_v60 = vcvt.s32.f32 %v337_v46  ;;  %v6482_v63 = vcvt.s32.f32 %v338_v48  ;;  %v340_v0 = vand.u32 15, %v308_v49  ;;  %v341_v2 = vand.u32 15, %v309_v50  ;;  %v856_v18 = vld [vmem:[#allocation2 + $0xb0] sm:$0xff]  ;;  %8118 = vst [vmem:[#allocation9_spill] sm:$0xff] %v6544_v4  ;;  %v859_v50 = vld [vmem:[#allocation2 + $0xc8] sm:$0xff] }
  0x35   : > { %v311_v3 = vadd.s32 88, %v6380_v41  ;;  %764 = vst.msk [vmem:[#allocation2 + $0x108] sm:$0xff] %vm730_vm1, %v727_v56  ;;  %v6486_v7 = vcvt.s32.f32 %v339_v52  ;;  %v342_v8 = vand.u32 15, %v310_v53  ;;  %v2786_v9 = vmul.f32 %v6469_v55, %v2754_v58  ;;  %v860_v56 = vld [vmem:[#allocation2 + $0xd0] sm:$0xff] }
  0x36   : > { %v312_v11 = vadd.s32 96, %v6380_v41  ;;  %v2787_v14 = vmul.f32 %v6476_v59, %v2755_v62  ;;  %v6498_v15 = vsel %vm495_vm5, 1.0, %v8019_v1  ;;  %v6503_v17 = vsel %vm496_vm6, 1.0, %v8019_v1  ;;  %v6577_v58 = vld [vmem:[#allocation2 + $0x69] sm:$0xff]  ;;  %v6586_v62 = vld [vmem:[#allocation2 + $0x71] sm:$0xff] }
  0x37   : > { %5460 = vmatmul.mubr.msk.f32.gmra.mrb[12].mxu1 %vm730_vm1, %v849_v28  ;;  %5657 = vmatmul.mubr.msk.f32.gmra.mrb[10].mxu0 %vm730_vm1, %v849_v28  ;;  %8113 = vst [vmem:[#allocation4_spill] sm:$0xff] %v6498_v15  ;;  %8114 = vst [vmem:[#allocation5_spill] sm:$0xff] %v6503_v17  ;;  %vm497_vm7 = vcmp.le.f32.partialorder %v6480_v60, 14.5  ;;  %vm498_vm8 = vcmp.le.f32.partialorder %v6482_v63, 14.5  ;;  %v6507_v20 = vcvt.s32.f32 %v340_v0  ;;  %v6509_v21 = vcvt.s32.f32 %v341_v2  ;;  %v6519_v28 = vld [vmem:[%s8014_s3 + $0x1c] sm:$0xf] }
  0x38   : > { %5462 = vmatprep.mubr.msk.f32.mxu1 %vm730_vm1, %v850_v33  ;;  %5659 = vmatprep.mubr.msk.f32.mxu0 %vm730_vm1, %v850_v33  ;;  %v343_v22 = vand.u32 15, %v311_v3  ;;  %vm499_vm9 = vcmp.le.f32.partialorder %v6486_v7, 14.5  ;;  %v6512_v24 = vcvt.s32.f32 %v342_v8  ;;  %v313_v26 = vadd.s32 104, %v6380_v41  ;;  %8122 = vst [vmem:[#allocation13_spill] sm:$0xff] %v6577_v58  ;;  %8124 = vst [vmem:[#allocation15_spill] sm:$0xff] %v6586_v62 }
  0x39   : > { %v314_v27 = vadd.s32 112, %v6380_v41  ;;  %v2788_v30 = vmul.f32 %v6498_v15, %v2756_v16  ;;  %v344_v31 = vand.u32 15, %v312_v11  ;;  %v2789_v33 = vmul.f32 %v6503_v17, %v2757_v19  ;;  %v862_v19 = vld [vmem:[#allocation2 + $0xe0] sm:$0xff] }
  0x3a   : > { %v6531_v34 = vsel %vm497_vm7, 1.0, %v8019_v1  ;;  %v6536_v36 = vsel %vm498_vm8, 1.0, %v8019_v1  ;;  %v6542_v38 = vsel %vm499_vm9, 1.0, %v8019_v1  ;;  %vm500_vm10 = vcmp.le.f32.partialorder %v6507_v20, 14.5 }
  0x3b   : > { %5463 = vmatmul.mubr.msk.f32.gmra.mrb[14].mxu1 %vm730_vm1, %v851_v42  ;;  %5660 = vmatmul.mubr.msk.f32.gmra.mrb[12].mxu0 %vm730_vm1, %v851_v42  ;;  %8115 = vst [vmem:[#allocation6_spill] sm:$0xff] %v6531_v34  ;;  %8116 = vst [vmem:[#allocation7_spill] sm:$0xff] %v6536_v36  ;;  %vm501_vm11 = vcmp.le.f32.partialorder %v6509_v21, 14.5  ;;  %v6548_v40 = vcvt.s32.f32 %v343_v22  ;;  %vm502_vm12 = vcmp.le.f32.partialorder %v6512_v24, 14.5  ;;  %v345_v42 = vand.u32 15, %v313_v26 }
  0x3c   : > { %5465 = vmatprep.mubr.msk.f32.mxu1 %vm730_vm1, %v852_v47  ;;  %5662 = vmatprep.mubr.msk.f32.mxu0 %vm730_vm1, %v852_v47  ;;  %8117 = vst [vmem:[#allocation8_spill] sm:$0xff] %v6542_v38  ;;  %v346_v43 = vand.u32 15, %v314_v27  ;;  %v315_v46 = vadd.s32 120, %v6380_v41  ;;  %v2790_v47 = vmul.f32 %v6531_v34, %v2758_v35  ;;  %v6557_v48 = vcvt.s32.f32 %v344_v31  ;;  %v6611_v27 = vld [vmem:[#allocation2 + $0x79] sm:$0xff]  ;;  %v6628_v35 = vld [vmem:[#allocation2 + $0x81] sm:$0xff] }
  0x3d   : > { %v316_v49 = vadd.s32 128, %v6380_v41  ;;  %v2792_v52 = vmul.f32 %v6542_v38, %v6544_v4  ;;  %v6568_v53 = vsel %vm500_vm10, 1.0, %v8019_v1  ;;  %vm503_vm13 = vcmp.le.f32.partialorder %v6548_v40, 14.5  ;;  %8126 = vst [vmem:[#allocation17_spill] sm:$0xff] %v6611_v27  ;;  %8130 = vst [vmem:[#allocation21_spill] sm:$0xff] %v6628_v35  ;;  %v619_v38 = vld [vmem:[%s6263_s17 + $0xf8] sm:$0xff] }
  0x3e   : > { %8119 = vst [vmem:[#allocation10_spill] sm:$0xff] %v6568_v53  ;;  %vm396_vm14 = vcmp.ge.f32.partialorder %v6416_v13, 0.5  ;;  %v6588_v0 = vcvt.s32.f32 %v345_v42  ;;  %v6590_v2 = vcvt.s32.f32 %v346_v43  ;;  %vm397_vm15 = vcmp.ge.f32.partialorder %v6427_v23, 0.5  ;;  %v863_v43 = vld [vmem:[#allocation2 + $0xe8] sm:$0xff] }
  0x3f   : > { %5466 = vmatmul.mubr.msk.f32.gmra.mrb[16].mxu1 %vm730_vm1, %v853_v57  ;;  %5663 = vmatmul.mubr.msk.f32.gmra.mrb[14].mxu0 %vm730_vm1, %v853_v57  ;;  %v6575_v57 = vsel %vm501_vm11, 1.0, %v8019_v1  ;;  %v347_v3 = vand.u32 15, %v315_v46  ;;  %vm504_vm2 = vcmp.le.f32.partialorder %v6557_v48, 14.5  ;;  %v348_v8 = vand.u32 15, %v316_v49 }
  0x40   : > { %5468 = vmatprep.mubr.msk.f32.mxu1 %vm730_vm1, %v854_v61  ;;  %5691 = vmatprep.mubr.msk.f32.mxu0 %vm730_vm1, %v2785_v54  ;;  %v6570_v54 = vld [vmem:[#allocation2 + $0x61] sm:$0xff]  ;;  %8121 = vst [vmem:[#allocation12_spill] sm:$0xff] %v6575_v57  ;;  %v6582_v61 = vsel %vm502_vm12, 1.0, %v8019_v1  ;;  %v318_v11 = vadd.s32 144, %v6380_v41  ;;  %v2794_v16 = vmul.f32 %v6575_v57, %v6577_v58  ;;  %v6609_v26 = vsel %vm503_vm13, 1.0, %v8019_v1 }
  0x41   : > { %8120 = vst [vmem:[#allocation11_spill] sm:$0xff] %v6570_v54  ;;  %8123 = vst [vmem:[#allocation14_spill] sm:$0xff] %v6582_v61  ;;  %v2795_v22 = vmul.f32 %v6582_v61, %v6586_v62  ;;  %v6621_v31 = vsel %vm397_vm15, 1.0, %v8019_v1  ;;  %vm505_vm3 = vcmp.le.f32.partialorder %v6588_v0, 14.5  ;;  %vm506_vm4 = vcmp.le.f32.partialorder %v6590_v2, 14.5  ;;  %v6747_v61 = vld [vmem:[#allocation2 + $0xa9] sm:$0xff] }
  0x42   : > { %8125 = vst [vmem:[#allocation16_spill] sm:$0xff] %v6609_v26  ;;  %8128 = vst [vmem:[#allocation19_spill] sm:$0xff] %v6621_v31  ;;  %v6632_v13 = vcvt.s32.f32 %v347_v3  ;;  %v6636_v23 = vcvt.s32.f32 %v348_v8  ;;  %v319_v42 = vadd.s32 152, %v6380_v41  ;;  %v2796_v46 = vmul.f32 %v6609_v26, %v6611_v27  ;;  %v6657_v3 = vld [vmem:[#allocation2 + $0x89] sm:$0xff] }
  0x43   : > { %5469 = vmatmul.mubr.msk.f32.gmra.mrb[18].mxu1 %vm730_vm1, %v855_v12  ;;  %5692 = vmatmul.mubr.msk.f32.vlgmr.msra.gmra.mrb[0].mxu0 %vm730_vm1, %v2786_v9  ;;  %v317_v9 = vadd.s32 136, %v6380_v41  ;;  %v861_v12 = vld [vmem:[#allocation2 + $0xd8] sm:$0xff]  ;;  %8132 = vst [vmem:[#allocation23_spill] sm:$0xff] %v6657_v3  ;;  %vm398_vm5 = vcmp.ge.f32.partialorder %v6435_v29, 0.5  ;;  %vm399_vm6 = vcmp.ge.f32.partialorder %v6453_v44, 0.5  ;;  %v6664_v8 = vsel %vm506_vm4, 1.0, %v8019_v1 }
  0x44   : > { %5740 = vmatpush3.msk.msra.mxu0 %vm966_vm0, %v6353_v25  ;;  %5471 = vmatprep.mubr.msk.f32.mxu1 %vm730_vm1, %v856_v18  ;;  %v2759_v25 = vld [vmem:[#allocation2 + $0x51] sm:$0xff]  ;;  %8133 = vst [vmem:[#allocation24_spill] sm:$0xff] %v6664_v8  ;;  %vm507_vm7 = vcmp.le.f32.partialorder %v6632_v13, 14.5  ;;  %vm400_vm8 = vcmp.ge.f32.partialorder %v6455_v45, 0.5  ;;  %vm401_vm9 = vcmp.ge.f32.partialorder %v6480_v60, 0.5  ;;  %vm508_vm10 = vcmp.le.f32.partialorder %v6636_v23, 14.5 }
  0x45   : > { %5694 = vmatprep.mubr.msk.f32.mxu0 %vm730_vm1, %v2787_v14  ;;  %5789 = vmatprep.subr.msk.mxu0 %vm966_vm0, %v6519_v28  ;;  %v2791_v51 = vmul.f32 %v6536_v36, %v2759_v25  ;;  %v2793_v14 = vmul.f32 %v6568_v53, %v6570_v54  ;;  %v771_v18 = vld [vmem:[#allocation2 + $0xf] sm:$0xff]  ;;  %v350_v25 = vand.u32 15, %v318_v11  ;;  %vm402_vm11 = vcmp.ge.f32.partialorder %v6482_v63, 0.5  ;;  %v6729_v45 = vld [vmem:[#allocation2 + $0x37] sm:$0xff]  ;;  %8145 = vst [vmem:[#allocation35_spill] sm:$0xff] %v6747_v61 }
  0x46   : > { %8144 = vst [vmem:[#allocation34_spill] sm:$0xff] %v6729_v45  ;;  %v867_v60 = vld [vmem:[#allocation2 + $0x108] sm:$0xff]  ;;  %v323_v62 = vadd.s32 184, %v6380_v41  ;;  %v6775_v63 = vld [vmem:[#allocation2 + $0xb1] sm:$0xff]  ;;  %v325_v4 = vadd.s32 200, %v6380_v41 }
  0x47   : > { %5472 = vmatmul.mubr.msk.f32.gmra.mrb[20].mxu1 %vm730_vm1, %v857_v32  ;;  %5695 = vmatmul.mubr.msk.f32.gmra.mrb[2].mxu0 %vm730_vm1, %v2788_v30  ;;  %v6616_v30 = vsel %vm396_vm14, 1.0, %v8019_v1  ;;  %v772_v32 = vld [vmem:[#allocation2 + $0x17] sm:$0xff]  ;;  %vm403_vm14 = vcmp.ge.f32.partialorder %v6486_v7, 0.5  ;;  %8148 = vst [vmem:[#allocation38_spill] sm:$0xff] %v6775_v63 }
  0x48   : > { %5474 = vmatprep.mubr.msk.f32.mxu1 %vm730_vm1, %v858_v37  ;;  %5697 = vmatprep.mubr.msk.f32.mxu0 %vm730_vm1, %v2789_v33  ;;  %8127 = vst [vmem:[#allocation18_spill] sm:$0xff] %v6616_v30  ;;  %v6626_v33 = vsel %vm504_vm2, 1.0, %v8019_v1  ;;  %v349_v37 = vand.u32 15, %v317_v9  ;;  %v6647_v49 = vmul.f32 %v6621_v31, %v772_v32  ;;  %v6666_v9 = vld [vmem:[#allocation2 + $0x91] sm:$0xff]  ;;  %v355_v54 = vand.u32 15, %v323_v62 }
  0x49   : > { %8129 = vst [vmem:[#allocation20_spill] sm:$0xff] %v6626_v33  ;;  %8134 = vst [vmem:[#allocation25_spill] sm:$0xff] %v6666_v9  ;;  %v326_v62 = vadd.s32 208, %v6380_v41 }
  0x4a   : > { %v6674_v11 = vcvt.s32.f32 %v349_v37  ;;  %v2799_v37 = vmul.f32 %v6664_v8, %v6666_v9  ;;  %v6708_v8 = vld [vmem:[#allocation2 + $0x27] sm:$0xff] }
  0x4b   : > { %5475 = vmatmul.mubr.msk.f32.gmra.mrb[22].mxu1 %vm730_vm1, %v859_v50  ;;  %5698 = vmatmul.mubr.msk.f32.gmra.mrb[4].mxu0 %vm730_vm1, %v2790_v47  ;;  %v6644_v47 = vmul.f32 %v6616_v30, %v771_v18  ;;  %v320_v50 = vadd.s32 160, %v6380_v41  ;;  %v865_v18 = vld [vmem:[#allocation2 + $0xf8] sm:$0xff]  ;;  %8141 = vst [vmem:[#allocation31_spill] sm:$0xff] %v6708_v8  ;;  %v358_v34 = vand.u32 15, %v326_v62 }
  0x4c   : > { %5477 = vmatprep.mubr.msk.f32.mxu1 %vm730_vm1, %v860_v56  ;;  %5700 = vmatprep.mubr.msk.f32.mxu0 %vm730_vm1, %v2791_v51  ;;  %v864_v51 = vld [vmem:[#allocation2 + $0xf0] sm:$0xff]  ;;  %v6655_v56 = vsel %vm505_vm3, 1.0, %v8019_v1  ;;  %v866_v1 = vld [vmem:[#allocation2 + $0x100] sm:$0xff]  ;;  %vm509_vm12 = vcmp.le.f32.partialorder %v6674_v11, 14.5  ;;  %vm404_vm3 = vcmp.ge.f32.partialorder %v6507_v20, 0.5 }
  0x4d   : > { %8131 = vst [vmem:[#allocation22_spill] sm:$0xff] %v6655_v56  ;;  %v352_v32 = vand.u32 15, %v320_v50  ;;  %v6860_v20 = vld [vmem:[#allocation2 + $0x4f] sm:$0xff]  ;;  %v6888_v62 = vcvt.s32.f32 %v358_v34  ;;  %v6902_v34 = vld [vmem:[#allocation2 + $0x57] sm:$0xff] }
  0x4f   : > { %5478 = vmatmul.mubr.msk.f32.gmra.mrb[24].mxu1 %vm730_vm1, %v861_v12  ;;  %5701 = vmatmul.mubr.msk.f32.gmra.mrb[6].mxu0 %vm730_vm1, %v2792_v52  ;;  %v2797_v52 = vmul.f32 %v6626_v33, %v6628_v35  ;;  %v6676_v12 = vcvt.s32.f32 %v350_v25  ;;  %v8135_v25 = vmov 0.0   ;;  %v6723_v35 = vld [vmem:[#allocation2 + $0xa1] sm:$0xff] }
  0x50   : > { %5480 = vmatprep.mubr.msk.f32.mxu1 %vm730_vm1, %v862_v19  ;;  %5703 = vmatprep.mubr.msk.f32.mxu0 %vm730_vm1, %v2793_v14  ;;  %v351_v14 = vand.u32 15, %v319_v42  ;;  %v2798_v19 = vmul.f32 %v6655_v56, %v6657_v3  ;;  %v6689_v42 = vsel %vm507_vm7, 1.0, %v8135_v25  ;;  %v6699_v50 = vsel %vm399_vm6, 1.0, %v8135_v25  ;;  %v6701_v3 = vld [vmem:[#allocation2 + $0x99] sm:$0xff]  ;;  %8142 = vst [vmem:[#allocation32_spill] sm:$0xff] %v6723_v35  ;;  %v6726_v56 = vld [vmem:[#allocation2 + $0x2f] sm:$0xff] }
  0x51   : > { %8136 = vst [vmem:[#allocation26_spill] sm:$0xff] %v6689_v42  ;;  %8138 = vst [vmem:[#allocation28_spill] sm:$0xff] %v6699_v50  ;;  %v6706_v9 = vsel %vm508_vm10, 1.0, %v8135_v25  ;;  %v6713_v29 = vsel %vm400_vm8, 1.0, %v8135_v25  ;;  %v6718_v44 = vsel %vm401_vm9, 1.0, %v8135_v25  ;;  %vm510_vm13 = vcmp.le.f32.partialorder %v6676_v12, 14.5 }
  0x52   : > { %8139 = vst [vmem:[#allocation29_spill] sm:$0xff] %v6701_v3  ;;  %8140 = vst [vmem:[#allocation30_spill] sm:$0xff] %v6706_v9  ;;  %v6731_v27 = vcvt.s32.f32 %v351_v14  ;;  %v2800_v26 = vmul.f32 %v6689_v42, %v6701_v3  ;;  %v806_v58 = vmul.f32 %v6699_v50, %v6708_v8  ;;  %v618_v8 = vld [vmem:[%s6263_s17 + $0xf0] sm:$0xff]  ;;  %v6773_v3 = vsel %vm510_vm13, 1.0, %v8135_v25  ;;  %s7830_s17 = scalar_lea.vmem %s8016_s5, %s4765_s12 }
  0x53   : > { %5481 = vmatmul.mubr.msk.f32.gmra.mrb[26].mxu1 %vm730_vm1, %v863_v43  ;;  %5704 = vmatmul.mubr.msk.f32.gmra.mrb[8].mxu0 %vm730_vm1, %v2794_v16  ;;  %v321_v43 = vadd.s32 168, %v6380_v41  ;;  %v322_v16 = vadd.s32 176, %v6380_v41  ;;  %8143 = vst [vmem:[#allocation33_spill] sm:$0xff] %v6726_v56  ;;  %8147 = vst [vmem:[#allocation37_spill] sm:$0xff] %v6773_v3  ;;  %v657_v53 = vmul.f32 %v6256_v5, %v618_v8  ;;  %v6848_v36 = vsel %vm404_vm3, 1.0, %v8135_v25 }
  0x54   : > { %5483 = vmatprep.mubr.msk.f32.mxu1 %vm730_vm1, %v864_v51  ;;  %5706 = vmatprep.mubr.msk.f32.mxu0 %vm730_vm1, %v2795_v22  ;;  %v6694_v22 = vsel %vm398_vm5, 1.0, %v8135_v25  ;;  %v773_v51 = vld [vmem:[#allocation2 + $0x1f] sm:$0xff]  ;;  %vm511_vm15 = vcmp.le.f32.partialorder %v6731_v27, 14.5  ;;  %vm405_vm6 = vcmp.ge.f32.partialorder %v6509_v21, 0.5  ;;  %vm406_vm7 = vcmp.ge.f32.partialorder %v6512_v24, 0.5 }
  0x55   : > { %8137 = vst [vmem:[#allocation27_spill] sm:$0xff] %v6694_v22  ;;  %v354_v33 = vand.u32 15, %v322_v16  ;;  %v805_v14 = vmul.f32 %v6694_v22, %v773_v51  ;;  %v6758_v16 = vsel %vm402_vm11, 1.0, %v8135_v25  ;;  %v6760_v51 = vld [vmem:[#allocation2 + $0x3f] sm:$0xff]  ;;  %v6815_v8 = vsel %vm511_vm15, 1.0, %v8135_v25 }
  0x56   : > { %v6795_v57 = vmul.f32 %v6758_v16, %v6760_v51  ;;  %8149 = vst [vmem:[#allocation39_spill] sm:$0xff] %v6815_v8  ;;  %vm407_vm10 = vcmp.ge.f32.partialorder %v6548_v40, 0.5  ;;  %v6922_v24 = vld [vmem:[#allocation2 + $0x5f] sm:$0xff]  ;;  %vm408_vm11 = vcmp.ge.f32.partialorder %v6557_v48, 0.5  ;;  %vm518_vm13 = vcmp.le.f32.partialorder %v6888_v62, 14.5  ;;  %v6967_v40 = vld [vmem:[#allocation2 + $0xe9] sm:$0xff] }
  0x57   : > { %5484 = vmatmul.mubr.msk.f32.gmra.mrb[28].mxu1 %vm730_vm1, %v865_v18  ;;  %5707 = vmatmul.mubr.msk.f32.gmra.mrb[10].mxu0 %vm730_vm1, %v2796_v46  ;;  %v6736_v46 = vcvt.s32.f32 %v352_v32  ;;  %v353_v18 = vand.u32 15, %v321_v43  ;;  %v807_v32 = vmul.f32 %v6713_v29, %v6726_v56  ;;  %v6753_v43 = vmul.f32 %v6718_v44, %v6729_v45  ;;  %8163 = vst [vmem:[#allocation53_spill] sm:$0xff] %v6967_v40 }
  0x58   : > { %5486 = vmatprep.mubr.msk.f32.mxu1 %vm730_vm1, %v866_v1  ;;  %5709 = vmatprep.mubr.msk.f32.mxu0 %vm730_vm1, %v2797_v52  ;;  %v324_v1 = vadd.s32 192, %v6380_v41  ;;  %v2801_v52 = vmul.f32 %v6706_v9, %v6723_v35  ;;  %v6768_v35 = vsel %vm509_vm12, 1.0, %v8135_v25  ;;  %v6791_v42 = vcvt.s32.f32 %v354_v33 }
  0x59   : > { %8146 = vst [vmem:[#allocation36_spill] sm:$0xff] %v6768_v35  ;;  %vm512_vm2 = vcmp.le.f32.partialorder %v6736_v46, 14.5  ;;  %v6789_v9 = vcvt.s32.f32 %v353_v18  ;;  %vm410_vm15 = vcmp.ge.f32.partialorder %v6590_v2, 0.5  ;;  %v7167_v15 = vmul.f32 %v6713_v29, %v6760_v51 }
  0x5a   : > { %v356_v7 = vand.u32 15, %v324_v1  ;;  %v6820_v18 = vsel %vm512_vm2, 1.0, %v8135_v25  ;;  %v696_v1 = vadd.f32 %v6268_v6, %v657_v53  ;;  %vm514_vm5 = vcmp.le.f32.partialorder %v6791_v42, 14.5 }
  0x5b   : > { %5487 = vmatmul.mubr.msk.f32.gmra.mrb[30].mxu1 %vm730_vm1, %v867_v60  ;;  %5710 = vmatmul.mubr.msk.f32.gmra.mrb[12].mxu0 %vm730_vm1, %v2798_v19  ;;  %v6781_v60 = vsel %vm403_vm14, 1.0, %v8135_v25  ;;  %v6783_v19 = vld [vmem:[#allocation2 + $0x47] sm:$0xff]  ;;  %8150 = vst [vmem:[#allocation40_spill] sm:$0xff] %v6820_v18  ;;  %vm513_vm4 = vcmp.le.f32.partialorder %v6789_v9, 14.5  ;;  %v658_v53 = vmul.f32 %v6256_v5, %v619_v38  ;;  %vm409_vm14 = vcmp.ge.f32.partialorder %v6588_v0, 0.5 }
  0x5c   : > { %5491 = vmatprep.mubr.msk.f32.mxu1 %vm730_vm1, %v6644_v47  ;;  %5712 = vmatprep.mubr.msk.f32.mxu0 %vm730_vm1, %v2799_v37  ;;  %v2802_v47 = vmul.f32 %v6768_v35, %v6747_v61  ;;  %v2803_v37 = vmul.f32 %v6773_v3, %v6775_v63  ;;  %v6806_v33 = vmul.f32 %v6781_v60, %v6783_v19  ;;  %v6833_v63 = vld [vmem:[#allocation2 + $0xc1] sm:$0xff]  ;;  %v6837_v61 = vcvt.s32.f32 %v355_v54  ;;  %v6872_v38 = vld [vmem:[#allocation2 + $0xc9] sm:$0xff] }
  0x5d   : > { %8153 = vst [vmem:[#allocation43_spill] sm:$0xff] %v6833_v63  ;;  %v6842_v3 = vcvt.s32.f32 %v356_v7  ;;  %v728_v35 = vmax.f32 %v696_v1, 0.0  ;;  %v328_v54 = vadd.s32 224, %v6380_v41  ;;  %v697_v17 = vadd.f32 %v6268_v6, %v658_v53  ;;  %8155 = vst [vmem:[#allocation45_spill] sm:$0xff] %v6872_v38 }
  0x5e   : > { %v6870_v6 = vsel %vm513_vm4, 1.0, %v8135_v25  ;;  %vm515_vm8 = vcmp.le.f32.partialorder %v6837_v61, 14.5  ;;  %v330_v53 = vadd.s32 240, %v6380_v41  ;;  %vm411_vm4 = vcmp.ge.f32.partialorder %v6632_v13, 0.5 }
  0x5f   : > { %5492 = vmatmul.mubr.msk.f32.vlgmr.msra.gmra.mrb[0].mxu1 %vm730_vm1, %v6647_v49  ;;  %5713 = vmatmul.mubr.msk.f32.gmra.mrb[14].mxu0 %vm730_vm1, %v2800_v26  ;;  %v6827_v49 = vld [vmem:[%s8014_s3 + $0xc] sm:$0xf]  ;;  %v6831_v26 = vld [vmem:[#allocation2 + $0xb9] sm:$0xff]  ;;  %765 = vst.msk [vmem:[#allocation2 + $0x110] sm:$0xff] %vm730_vm1, %v728_v35  ;;  %8154 = vst [vmem:[#allocation44_spill] sm:$0xff] %v6870_v6  ;;  %vm516_vm9 = vcmp.le.f32.partialorder %v6842_v3, 14.5  ;;  %v7183_v59 = vmul.f32 %v6781_v60, %v6902_v34 }
  0x60   : > { %8151 = vst [vmem:[#allocation41_spill] sm:$0xff] %v6827_v49  ;;  %5494 = vmatprep.mubr.msk.f32.mxu1 %vm730_vm1, %v805_v14  ;;  %5715 = vmatprep.mubr.msk.f32.mxu0 %vm730_vm1, %v2801_v52  ;;  %8152 = vst [vmem:[#allocation42_spill] sm:$0xff] %v6831_v26  ;;  %v357_v14 = vand.u32 15, %v325_v4  ;;  %v327_v52 = vadd.s32 216, %v6380_v41  ;;  %v2804_v5 = vmul.f32 %v6815_v8, %v6831_v26  ;;  %v6877_v4 = vsel %vm514_vm5, 1.0, %v8135_v25  ;;  %v6880_v35 = vld [vmem:[#allocation2 + $0xd1] sm:$0xff] }
  0x61   : > { %5540 = vmatpush3.msk.msra.mxu1 %vm966_vm0, %v6276_v10  ;;  %v2805_v10 = vmul.f32 %v6820_v18, %v6833_v63  ;;  %8156 = vst [vmem:[#allocation46_spill] sm:$0xff] %v6877_v4  ;;  %8157 = vst [vmem:[#allocation47_spill] sm:$0xff] %v6880_v35  ;;  %v360_v1 = vand.u32 15, %v328_v54  ;;  %v6918_v21 = vsel %vm515_vm8, 1.0, %v8135_v25  ;;  %v6920_v54 = vld [vmem:[#allocation2 + $0xd9] sm:$0xff]  ;;  %v362_v63 = vand.u32 15, %v330_v53 }
  0x62   : > { %5589 = vmatprep.subr.msk.mxu1 %vm966_vm0, %v6827_v49  ;;  %v359_v7 = vand.u32 15, %v327_v52  ;;  %v6907_v52 = vsel %vm406_vm7, 1.0, %v8135_v25  ;;  %8158 = vst [vmem:[#allocation48_spill] sm:$0xff] %v6918_v21  ;;  %8159 = vst [vmem:[#allocation49_spill] sm:$0xff] %v6920_v54  ;;  %v2808_v48 = vmul.f32 %v6918_v21, %v6920_v54  ;;  %vm413_vm8 = vcmp.ge.f32.partialorder %v6674_v11, 0.5 }
  0x63   : > { %5495 = vmatmul.mubr.msk.f32.gmra.mrb[2].mxu1 %vm730_vm1, %v806_v58  ;;  %5716 = vmatmul.mubr.msk.f32.gmra.mrb[16].mxu0 %vm730_vm1, %v2802_v47  ;;  %v729_v58 = vmax.f32 %v697_v17, 0.0  ;;  %v329_v47 = vadd.s32 232, %v6380_v41  ;;  %v2806_v17 = vmul.f32 %v6870_v6, %v6872_v38  ;;  %v3213_v49 = vmul.f32 %v6758_v16, %v6922_v24 }
  0x64   : > { %5497 = vmatprep.mubr.msk.f32.mxu1 %vm730_vm1, %v807_v32  ;;  %5718 = vmatprep.mubr.msk.f32.mxu0 %vm730_vm1, %v2803_v37  ;;  %v6883_v32 = vcvt.s32.f32 %v357_v14  ;;  %v811_v37 = vmul.f32 %v6848_v36, %v6860_v20  ;;  %v6900_v14 = vsel %vm405_vm6, 1.0, %v8135_v25  ;;  %vm412_vm6 = vcmp.ge.f32.partialorder %v6636_v23, 0.5 }
  0x65   : > { %766 = vst.msk [vmem:[#allocation2 + $0x118] sm:$0xff] %vm730_vm1, %v729_v58  ;;  %v361_v58 = vand.u32 15, %v329_v47  ;;  %v812_v38 = vmul.f32 %v6900_v14, %v6902_v34  ;;  %v6954_v47 = vsel %vm408_vm11, 1.0, %v8135_v25  ;;  %vm415_vm11 = vcmp.ge.f32.partialorder %v6731_v27, 0.5 }
  0x66   : > { %vm517_vm12 = vcmp.le.f32.partialorder %v6883_v32, 14.5 }
  0x67   : > { %5498 = vmatmul.mubr.msk.f32.gmra.mrb[4].mxu1 %vm730_vm1, %v6753_v43  ;;  %5719 = vmatmul.mubr.msk.f32.gmra.mrb[18].mxu0 %vm730_vm1, %v2804_v5  ;;  %v2807_v43 = vmul.f32 %v6877_v4, %v6880_v35  ;;  %v6927_v5 = vsel %vm516_vm9, 1.0, %v8135_v25  ;;  %v331_v35 = vadd.s32 248, %v6380_v41  ;;  %v6939_v4 = vcvt.s32.f32 %v360_v1  ;;  %v6960_v1 = vld [vmem:[#allocation2 + $0x67] sm:$0xff] }
  0x68   : > { %5500 = vmatprep.mubr.msk.f32.mxu1 %vm730_vm1, %v6795_v57  ;;  %5721 = vmatprep.mubr.msk.f32.mxu0 %vm730_vm1, %v2805_v10  ;;  %8160 = vst [vmem:[#allocation50_spill] sm:$0xff] %v6927_v5  ;;  %v6930_v57 = vld [vmem:[#allocation2 + $0xe1] sm:$0xff]  ;;  %v6933_v10 = vcvt.s32.f32 %v359_v7  ;;  %v813_v7 = vmul.f32 %v6907_v52, %v6922_v24  ;;  %v6951_v41 = vsel %vm407_vm10, 1.0, %v8135_v25  ;;  %v6965_v53 = vsel %vm517_vm12, 1.0, %v8135_v25 }
  0x69   : > { %8161 = vst [vmem:[#allocation51_spill] sm:$0xff] %v6930_v57  ;;  %8162 = vst [vmem:[#allocation52_spill] sm:$0xff] %v6965_v53  ;;  %v363_v54 = vand.u32 15, %v331_v35  ;;  %vm520_vm3 = vcmp.le.f32.partialorder %v6939_v4, 14.5  ;;  %v814_v21 = vmul.f32 %v6951_v41, %v6960_v1  ;;  %v2810_v6 = vmul.f32 %v6965_v53, %v6967_v40  ;;  %v7003_v35 = vld [vmem:[#allocation2 + $0x77] sm:$0xff]  ;;  %v7050_v53 = vld [vmem:[#allocation2 + $0x109] sm:$0xff] }
  0x6a   : > { %vm519_vm2 = vcmp.le.f32.partialorder %v6933_v10, 14.5  ;;  %v7020_v0 = vsel %vm520_vm3, 1.0, %v8135_v25  ;;  %8171 = vst [vmem:[#allocation61_spill] sm:$0xff] %v7050_v53  ;;  %vm414_vm10 = vcmp.ge.f32.partialorder %v6676_v12, 0.5  ;;  %v7075_v12 = vsel %vm413_vm8, 1.0, %v8135_v25 }
  0x6b   : > { %5501 = vmatmul.mubr.msk.f32.gmra.mrb[6].mxu1 %vm730_vm1, %v6806_v33  ;;  %5722 = vmatmul.mubr.msk.f32.gmra.mrb[20].mxu0 %vm730_vm1, %v2806_v17  ;;  %v2809_v33 = vmul.f32 %v6927_v5, %v6930_v57  ;;  %v6969_v17 = vld [vmem:[#allocation2 + $0x6f] sm:$0xff]  ;;  %v6981_v57 = vcvt.s32.f32 %v361_v58  ;;  %v6984_v5 = vcvt.s32.f32 %v362_v63  ;;  %v7006_v58 = vsel %vm519_vm2, 1.0, %v8135_v25  ;;  %8168 = vst [vmem:[#allocation58_spill] sm:$0xff] %v7020_v0 }
  0x6c   : > { %5503 = vmatprep.mubr.msk.f32.mxu1 %vm730_vm1, %v811_v37  ;;  %5724 = vmatprep.mubr.msk.f32.mxu0 %vm730_vm1, %v2807_v43  ;;  %v6976_v37 = vsel %vm518_vm13, 1.0, %v8135_v25  ;;  %v6978_v43 = vld [vmem:[#allocation2 + $0xf1] sm:$0xff]  ;;  %v815_v26 = vmul.f32 %v6954_v47, %v6969_v17  ;;  %8166 = vst [vmem:[#allocation56_spill] sm:$0xff] %v7006_v58  ;;  %v7026_v40 = vcvt.s32.f32 %v363_v54  ;;  %v2784_v8 = vld [vmem:[#allocation2 + $0x119] sm:$0xff]  ;;  %vm416_vm12 = vcmp.ge.f32.partialorder %v6736_v46, 0.5 }
  0x6d   : > { %8164 = vst [vmem:[#allocation54_spill] sm:$0xff] %v6976_v37  ;;  %8165 = vst [vmem:[#allocation55_spill] sm:$0xff] %v6978_v43  ;;  %v2811_v63 = vmul.f32 %v6976_v37, %v6978_v43  ;;  %v7022_v43 = vld [vmem:[#allocation2 + $0x101] sm:$0xff]  ;;  %vm521_vm5 = vcmp.le.f32.partialorder %v6981_v57, 14.5  ;;  %vm522_vm7 = vcmp.le.f32.partialorder %v6984_v5, 14.5  ;;  %v7101_v46 = vsel %vm415_vm11, 1.0, %v8135_v25 }
  0x6e   : > { %8169 = vst [vmem:[#allocation59_spill] sm:$0xff] %v7022_v43  ;;  %v2813_v23 = vmul.f32 %v7020_v0, %v7022_v43  ;;  %v7048_v54 = vsel %vm521_vm5, 1.0, %v8135_v25  ;;  %vm523_vm9 = vcmp.le.f32.partialorder %v7026_v40, 14.5  ;;  %vm417_vm13 = vcmp.ge.f32.partialorder %v6789_v9, 0.5 }
  0x6f   : > { %5504 = vmatmul.mubr.msk.f32.gmra.mrb[8].mxu1 %vm730_vm1, %v812_v38  ;;  %5725 = vmatmul.mubr.msk.f32.gmra.mrb[22].mxu0 %vm730_vm1, %v2808_v48  ;;  %v7001_v38 = vsel %vm409_vm14, 1.0, %v8135_v25  ;;  %v7008_v48 = vld [vmem:[#allocation2 + $0xf9] sm:$0xff]  ;;  %8170 = vst [vmem:[#allocation60_spill] sm:$0xff] %v7048_v54  ;;  %v2814_v0 = vmul.f32 %v7048_v54, %v7050_v53  ;;  %v7083_v53 = vsel %vm414_vm10, 1.0, %v8135_v25  ;;  %vm418_vm14 = vcmp.ge.f32.partialorder %v6791_v42, 0.5 }
  0x70   : > { %5506 = vmatprep.mubr.msk.f32.mxu1 %vm730_vm1, %v813_v7  ;;  %5727 = vmatprep.mubr.msk.f32.mxu0 %vm730_vm1, %v2809_v33  ;;  %8167 = vst [vmem:[#allocation57_spill] sm:$0xff] %v7008_v48  ;;  %v7013_v7 = vsel %vm410_vm15, 1.0, %v8135_v25  ;;  %v7015_v33 = vld [vmem:[#allocation2 + $0x7f] sm:$0xff]  ;;  %v816_v2 = vmul.f32 %v7001_v38, %v7003_v35  ;;  %v2812_v37 = vmul.f32 %v7006_v58, %v7008_v48  ;;  %v7058_v48 = vsel %vm522_vm7, 1.0, %v8135_v25  ;;  %v2783_v58 = vld [vmem:[#allocation2 + $0x111] sm:$0xff] }
  0x71   : > { %v817_v13 = vmul.f32 %v7013_v7, %v7015_v33  ;;  %8172 = vst [vmem:[#allocation62_spill] sm:$0xff] %v7058_v48  ;;  %v2815_v18 = vmul.f32 %v7058_v48, %v2783_v58  ;;  %v3207_v48 = vmul.f32 %v6616_v30, %v6726_v56  ;;  %vm419_vm15 = vcmp.ge.f32.partialorder %v6837_v61, 0.5  ;;  %v7122_v42 = vld [vmem:[#allocation2 + $0xb7] sm:$0xff]  ;;  %v7127_v30 = vld [vmem:[#allocation2 + $0xbf] sm:$0xff] }
  0x72   : > { %v7120_v9 = vsel %vm417_vm13, 1.0, %v8135_v25  ;;  %v7125_v56 = vsel %vm418_vm14, 1.0, %v8135_v25  ;;  %vm420_vm2 = vcmp.ge.f32.partialorder %v6842_v3, 0.5  ;;  %v3212_v54 = vmul.f32 %v6718_v44, %v6902_v34  ;;  %v7154_v3 = vld [vmem:[%s8014_s3 + $0x20] sm:$0xf] }
  0x73   : > { %5507 = vmatmul.mubr.msk.f32.gmra.mrb[10].mxu1 %vm730_vm1, %v814_v21  ;;  %5728 = vmatmul.mubr.msk.f32.gmra.mrb[24].mxu0 %vm730_vm1, %v2810_v6  ;;  %v7043_v21 = vsel %vm411_vm4, 1.0, %v8135_v25  ;;  %v7045_v6 = vld [vmem:[#allocation2 + $0x87] sm:$0xff]  ;;  %vm421_vm3 = vcmp.ge.f32.partialorder %v6883_v32, 0.5  ;;  %vm422_vm4 = vcmp.ge.f32.partialorder %v6888_v62, 0.5  ;;  %vm423_vm5 = vcmp.ge.f32.partialorder %v6933_v10, 0.5  ;;  %v7317_v10 = vld [vmem:[#allocation2 + $0xf7] sm:$0xff] }
  0x74   : > { %5509 = vmatprep.mubr.msk.f32.mxu1 %vm730_vm1, %v815_v26  ;;  %5730 = vmatprep.mubr.msk.f32.mxu0 %vm730_vm1, %v2811_v63  ;;  %v7053_v26 = vsel %vm412_vm6, 1.0, %v8135_v25  ;;  %v7055_v63 = vld [vmem:[#allocation2 + $0x8f] sm:$0xff]  ;;  %v818_v43 = vmul.f32 %v7043_v21, %v7045_v6  ;;  %vm424_vm6 = vcmp.ge.f32.partialorder %v6939_v4, 0.5  ;;  %vm425_vm7 = vcmp.ge.f32.partialorder %v6981_v57, 0.5 }
  0x75   : > { %v819_v11 = vmul.f32 %v7053_v26, %v7055_v63  ;;  %vm426_vm8 = vcmp.ge.f32.partialorder %v6984_v5, 0.5  ;;  %v3217_v57 = vmul.f32 %v6907_v52, %v7015_v33 }
  0x77   : > { %5510 = vmatmul.mubr.msk.f32.gmra.mrb[12].mxu1 %vm730_vm1, %v816_v2  ;;  %5731 = vmatmul.mubr.msk.f32.gmra.mrb[26].mxu0 %vm730_vm1, %v2812_v37  ;;  %v7077_v2 = vld [vmem:[#allocation2 + $0x97] sm:$0xff]  ;;  %v7080_v37 = vsel %vm523_vm9, 1.0, %v8135_v25  ;;  %vm427_vm9 = vcmp.ge.f32.partialorder %v7026_v40, 0.5 }
  0x78   : > { %5512 = vmatprep.mubr.msk.f32.mxu1 %vm730_vm1, %v817_v13  ;;  %5733 = vmatprep.mubr.msk.f32.mxu0 %vm730_vm1, %v2813_v23  ;;  %8173 = vst [vmem:[#allocation63_spill] sm:$0xff] %v7080_v37  ;;  %v7085_v13 = vld [vmem:[#allocation2 + $0x9f] sm:$0xff]  ;;  %v820_v58 = vmul.f32 %v7075_v12, %v7077_v2  ;;  %v2816_v23 = vmul.f32 %v7080_v37, %v2784_v8  ;;  %v7108_v8 = vsel %vm416_vm12, 1.0, %v8135_v25 }
  0x79   : > { %v821_v27 = vmul.f32 %v7083_v53, %v7085_v13  ;;  %v3211_v37 = vmul.f32 %v6713_v29, %v6860_v20  ;;  %v7186_v29 = vld [vmem:[#allocation2 + $0xcf] sm:$0xff]  ;;  %v7223_v34 = vmul.f32 %v7043_v21, %v7077_v2  ;;  %v7262_v32 = vmul.f32 %v7108_v8, %v7127_v30 }
  0x7b   : > { %5513 = vmatmul.mubr.msk.f32.gmra.mrb[14].mxu1 %vm730_vm1, %v818_v43  ;;  %5734 = vmatmul.mubr.msk.f32.gmra.mrb[28].mxu0 %vm730_vm1, %v2814_v0  ;;  %v7103_v43 = vld [vmem:[#allocation2 + $0xa7] sm:$0xff]  ;;  %v7110_v0 = vld [vmem:[#allocation2 + $0xaf] sm:$0xff]  ;;  %8175 = vst [vmem:[#allocation65_spill] sm:$0xff] %v7223_v34  ;;  %v7242_v34 = vld [vmem:[#allocation2 + $0xd7] sm:$0xff] }
  0x7c   : > { %5515 = vmatprep.mubr.msk.f32.mxu1 %vm730_vm1, %v819_v11  ;;  %5736 = vmatprep.mubr.msk.f32.mxu0 %vm730_vm1, %v2815_v18  ;;  %v822_v18 = vmul.f32 %v7101_v46, %v7103_v43  ;;  %v3208_v11 = vmul.f32 %v6621_v31, %v6729_v45  ;;  %v823_v61 = vmul.f32 %v7108_v8, %v7110_v0 }
  0x7d   : > { %v3209_v45 = vmul.f32 %v6694_v22, %v6760_v51  ;;  %v3210_v31 = vmul.f32 %v6699_v50, %v6783_v19  ;;  %v7161_v22 = vsel %vm420_vm2, 1.0, %v8135_v25  ;;  %v7209_v51 = vmul.f32 %v6954_v47, %v7015_v33  ;;  %8180 = vst [vmem:[#allocation70_spill] sm:$0xff] %v7262_v32 }
  0x7e   : > { %v3218_v33 = vmul.f32 %v6951_v41, %v7045_v6 }
  0x7f   : > { %5516 = vmatmul.mubr.msk.f32.gmra.mrb[16].mxu1 %vm730_vm1, %v820_v58  ;;  %5737 = vmatmul.mubr.msk.f32.gmra.mrb[30].mxu0 %vm730_vm1, %v2816_v23  ;;  %v7134_v58 = vsel %vm419_vm15, 1.0, %v8135_v25  ;;  %v7136_v23 = vld [vmem:[#allocation2 + $0xc7] sm:$0xff] }
  0x80   : > { %5518 = vmatprep.mubr.msk.f32.mxu1 %vm730_vm1, %v821_v27  ;;  %5741 = vmatprep.mubr.msk.f32.mxu0 %vm730_vm1, %v3207_v48  ;;  %v824_v27 = vmul.f32 %v7120_v9, %v7122_v42  ;;  %v825_v48 = vmul.f32 %v7125_v56, %v7127_v30  ;;  %v826_v50 = vmul.f32 %v7134_v58, %v7136_v23 }
  0x81   : > { %v7275_v62 = vmul.f32 %v7134_v58, %v7242_v34 }
  0x83   : > { %5519 = vmatmul.mubr.msk.f32.gmra.mrb[18].mxu1 %vm730_vm1, %v822_v18  ;;  %5742 = vmatmul.mubr.msk.f32.vlgmr.msra.gmra.mrb[0].mxu0 %vm730_vm1, %v3208_v11  ;;  %v7175_v18 = vmul.f32 %v6718_v44, %v6783_v19  ;;  %v7179_v11 = vmul.f32 %v6758_v16, %v6860_v20  ;;  %v7197_v44 = vmul.f32 %v6900_v14, %v6960_v1 }
  0x84   : > { %5790 = vmatpush3.msk.msra.mxu0 %vm966_vm0, %v6519_v28  ;;  %5521 = vmatprep.mubr.msk.f32.mxu1 %vm730_vm1, %v823_v61  ;;  %v7193_v28 = vmul.f32 %v6848_v36, %v6922_v24  ;;  %v7201_v16 = vmul.f32 %v6907_v52, %v6969_v17  ;;  %v7213_v19 = vmul.f32 %v7001_v38, %v7045_v6  ;;  %v1519_v6 = vld [vmem:[#allocation2 + $0x11] sm:$0xff] }
  0x85   : > { %5744 = vmatprep.mubr.msk.f32.mxu0 %vm730_vm1, %v3209_v45  ;;  %5839 = vmatprep.subr.msk.mxu0 %vm966_vm0, %v7154_v3  ;;  %v7205_v45 = vmul.f32 %v6951_v41, %v7003_v35  ;;  %v7217_v20 = vmul.f32 %v7013_v7, %v7055_v63  ;;  %v7227_v24 = vmul.f32 %v7053_v26, %v7085_v13 }
  0x86   : > { %v7231_v61 = vmul.f32 %v7075_v12, %v7103_v43 }
  0x87   : > { %8174 = vst [vmem:[#allocation64_spill] sm:$0xff] %v7217_v20  ;;  %5522 = vmatmul.mubr.msk.f32.gmra.mrb[20].mxu1 %vm730_vm1, %v824_v27  ;;  %5745 = vmatmul.mubr.msk.f32.gmra.mrb[2].mxu0 %vm730_vm1, %v3210_v31  ;;  %8176 = vst [vmem:[#allocation66_spill] sm:$0xff] %v7227_v24  ;;  %v827_v27 = vmul.f32 %v7161_v22, %v7186_v29  ;;  %v7240_v31 = vsel %vm421_vm3, 1.0, %v8135_v25  ;;  %v7246_v24 = vmul.f32 %v7083_v53, %v7110_v0  ;;  %v7283_v20 = vld [vmem:[#allocation2 + $0xe7] sm:$0xff] }
  0x88   : > { %8177 = vst [vmem:[#allocation67_spill] sm:$0xff] %v7231_v61  ;;  %5524 = vmatprep.mubr.msk.f32.mxu1 %vm730_vm1, %v825_v48  ;;  %5747 = vmatprep.mubr.msk.f32.mxu0 %vm730_vm1, %v3211_v37  ;;  %v7250_v61 = vmul.f32 %v7101_v46, %v7122_v42  ;;  %v7255_v37 = vsel %vm422_vm4, 1.0, %v8135_v25  ;;  %v7257_v48 = vld [vmem:[#allocation2 + $0xdf] sm:$0xff]  ;;  %v828_v32 = vmul.f32 %v7240_v31, %v7242_v34 }
  0x89   : > { %8178 = vst [vmem:[#allocation68_spill] sm:$0xff] %v7246_v24  ;;  %v7266_v24 = vmul.f32 %v7120_v9, %v7136_v23  ;;  %v7287_v4 = vmul.f32 %v7161_v22, %v7257_v48 }
  0x8a   : > { %8179 = vst [vmem:[#allocation69_spill] sm:$0xff] %v7250_v61  ;;  %v7271_v61 = vmul.f32 %v7125_v56, %v7186_v29 }
  0x8b   : > { %8181 = vst [vmem:[#allocation71_spill] sm:$0xff] %v7266_v24  ;;  %5525 = vmatmul.mubr.msk.f32.gmra.mrb[22].mxu1 %vm730_vm1, %v826_v50  ;;  %5748 = vmatmul.mubr.msk.f32.gmra.mrb[4].mxu0 %vm730_vm1, %v3212_v54  ;;  %v3214_v24 = vmul.f32 %v6781_v60, %v6960_v1  ;;  %8182 = vst [vmem:[#allocation72_spill] sm:$0xff] %v7287_v4  ;;  %v829_v50 = vmul.f32 %v7255_v37, %v7257_v48  ;;  %v7298_v60 = vsel %vm423_vm5, 1.0, %v8135_v25 }
  0x8c   : > { %5527 = vmatprep.mubr.msk.f32.mxu1 %vm730_vm1, %v827_v27  ;;  %5750 = vmatprep.mubr.msk.f32.mxu0 %vm730_vm1, %v3213_v49  ;;  %v3215_v54 = vmul.f32 %v6848_v36, %v6969_v17  ;;  %v7302_v1 = vmul.f32 %v7240_v31, %v7283_v20  ;;  %v7305_v4 = vsel %vm424_vm6, 1.0, %v8135_v25  ;;  %v7307_v27 = vld [vmem:[#allocation2 + $0xef] sm:$0xff]  ;;  %v830_v36 = vmul.f32 %v7298_v60, %v7283_v20 }
  0x8d   : > { %v3216_v49 = vmul.f32 %v6900_v14, %v7003_v35  ;;  %v7321_v17 = vmul.f32 %v7255_v37, %v7307_v27  ;;  %v831_v5 = vmul.f32 %v7305_v4, %v7307_v27  ;;  %v7334_v14 = vmul.f32 %v7298_v60, %v7317_v10 }
  0x8e   : > { %v7337_v35 = vsel %vm426_vm8, 1.0, %v8135_v25 }
  0x8f   : > { %5528 = vmatmul.mubr.msk.f32.gmra.mrb[24].mxu1 %vm730_vm1, %v828_v32  ;;  %5751 = vmatmul.mubr.msk.f32.gmra.mrb[6].mxu0 %vm730_vm1, %v3214_v24  ;;  %v7330_v24 = vsel %vm425_vm7, 1.0, %v8135_v25  ;;  %8183 = vst [vmem:[#allocation73_spill] sm:$0xff] %v7334_v14  ;;  %v7339_v32 = vld [vmem:[#allocation2 + $0xff] sm:$0xff]  ;;  %v7367_v14 = vld [vmem:[#allocation2 + $0x10f] sm:$0xff] }
  0x90   : > { %5530 = vmatprep.mubr.msk.f32.mxu1 %vm730_vm1, %v829_v50  ;;  %5753 = vmatprep.mubr.msk.f32.mxu0 %vm730_vm1, %v3215_v54  ;;  %v832_v52 = vmul.f32 %v7330_v24, %v7317_v10  ;;  %v7348_v50 = vld [vmem:[#allocation2 + $0x107] sm:$0xff]  ;;  %v7352_v54 = vmul.f32 %v7305_v4, %v7339_v32  ;;  %v833_v40 = vmul.f32 %v7337_v35, %v7339_v32 }
  0x91   : > { %v7365_v41 = vmul.f32 %v7330_v24, %v7348_v50 }
  0x93   : > { %5531 = vmatmul.mubr.msk.f32.gmra.mrb[26].mxu1 %vm730_vm1, %v830_v36  ;;  %5754 = vmatmul.mubr.msk.f32.gmra.mrb[8].mxu0 %vm730_vm1, %v3216_v49  ;;  %v3219_v36 = vmul.f32 %v6954_v47, %v7055_v63  ;;  %v7361_v49 = vsel %vm427_vm9, 1.0, %v8135_v25  ;;  %8184 = vst [vmem:[#allocation74_spill] sm:$0xff] %v7365_v41  ;;  %v3220_v47 = vmul.f32 %v7001_v38, %v7077_v2  ;;  %v7375_v63 = vld [vmem:[#allocation2 + $0x117] sm:$0xff]  ;;  %v1521_v38 = vld [vmem:[#allocation2 + $0x21] sm:$0xff] }
  0x94   : > { %5533 = vmatprep.mubr.msk.f32.mxu1 %vm730_vm1, %v831_v5  ;;  %5756 = vmatprep.mubr.msk.f32.mxu0 %vm730_vm1, %v3217_v57  ;;  %v834_v5 = vmul.f32 %v7361_v49, %v7348_v50  ;;  %v7379_v25 = vmul.f32 %v7337_v35, %v7367_v14  ;;  %v1551_v57 = vmul.f32 %v6445_v39, %v1519_v6  ;;  %v1522_v6 = vld [vmem:[#allocation2 + $0x29] sm:$0xff] }
  0x95   : > { %v7388_v41 = vmul.f32 %v7361_v49, %v7375_v63 }
  0x97   : > { %5534 = vmatmul.mubr.msk.f32.gmra.mrb[28].mxu1 %vm730_vm1, %v832_v52  ;;  %5757 = vmatmul.mubr.msk.f32.gmra.mrb[10].mxu0 %vm730_vm1, %v3218_v33  ;;  %v3221_v52 = vmul.f32 %v7013_v7, %v7085_v13  ;;  %v1520_v33 = vld [vmem:[#allocation2 + $0x19] sm:$0xff]  ;;  %8185 = vst [vmem:[#allocation75_spill] sm:$0xff] %v7388_v41  ;;  %v7400_v41 = vld [vmem:[#allocation2 + $0x31] sm:$0xff] }
  0x98   : > { %5536 = vmatprep.mubr.msk.f32.mxu1 %vm730_vm1, %v833_v40  ;;  %5759 = vmatprep.mubr.msk.f32.mxu0 %vm730_vm1, %v3219_v36  ;;  %v1552_v2 = vmul.f32 %v6469_v55, %v1520_v33  ;;  %v3222_v40 = vmul.f32 %v7043_v21, %v7103_v43  ;;  %v8186_v7 = vld [vmem:[#allocation3_spill] sm:$0xff]  ;;  %v3223_v36 = vmul.f32 %v7053_v26, %v7110_v0  ;;  %v8188_v43 = vld [vmem:[#allocation5_spill] sm:$0xff] }
  0x99   : > { %v1553_v13 = vmul.f32 %v8186_v7, %v1521_v38  ;;  %v3224_v21 = vmul.f32 %v7075_v12, %v7122_v42  ;;  %v3225_v26 = vmul.f32 %v7083_v53, %v7127_v30  ;;  %v7413_v0 = vld [vmem:[#allocation2 + $0x39] sm:$0xff]  ;;  %v7417_v33 = vld [vmem:[#allocation2 + $0x41] sm:$0xff]  ;;  %v7422_v12 = vld [vmem:[%s8014_s3 + $0x10] sm:$0xf]  ;;  %v3226_v42 = vmul.f32 %v7101_v46, %v7136_v23 }
  0x9a   : > { %v8190_v30 = vld [vmem:[#allocation6_spill] sm:$0xff]  ;;  %v8191_v38 = vld [vmem:[#allocation7_spill] sm:$0xff]  ;;  %v8192_v46 = vld [vmem:[#allocation8_spill] sm:$0xff] }
  0x9b   : > { %5537 = vmatmul.mubr.msk.f32.gmra.mrb[30].mxu1 %vm730_vm1, %v834_v5  ;;  %5760 = vmatmul.mubr.msk.f32.gmra.mrb[12].mxu0 %vm730_vm1, %v3220_v47  ;;  %v8187_v5 = vld [vmem:[#allocation4_spill] sm:$0xff]  ;;  %v1556_v53 = vmul.f32 %v8190_v30, %v7413_v0 }
  0x9c   : > { %5541 = vmatprep.mubr.msk.f32.mxu1 %vm730_vm1, %v1551_v57  ;;  %5762 = vmatprep.mubr.msk.f32.mxu0 %vm730_vm1, %v3221_v52  ;;  %v1554_v47 = vmul.f32 %v8187_v5, %v1522_v6  ;;  %v1555_v57 = vmul.f32 %v8188_v43, %v7400_v41  ;;  %v8189_v52 = vld [vmem:[#allocation41_spill] sm:$0xff]  ;;  %v3228_v6 = vmul.f32 %v7120_v9, %v7242_v34  ;;  %v8196_v34 = vld [vmem:[#allocation11_spill] sm:$0xff] }
  0x9d   : > { %v3230_v9 = vmul.f32 %v7134_v58, %v7283_v20  ;;  %v3232_v58 = vmul.f32 %v7240_v31, %v7317_v10  ;;  %v8200_v20 = vld [vmem:[#allocation15_spill] sm:$0xff]  ;;  %v3234_v31 = vmul.f32 %v7298_v60, %v7348_v50  ;;  %v8204_v10 = vld [vmem:[#allocation21_spill] sm:$0xff]  ;;  %v3236_v60 = vmul.f32 %v7330_v24, %v7375_v63  ;;  %v8212_v24 = vld [vmem:[#allocation32_spill] sm:$0xff] }
  0x9e   : > { %v8208_v50 = vld [vmem:[#allocation25_spill] sm:$0xff] }
  0x9f   : > { %5542 = vmatmul.mubr.msk.f32.vlgmr.msra.gmra.mrb[0].mxu1 %vm730_vm1, %v1552_v2  ;;  %5763 = vmatmul.mubr.msk.f32.gmra.mrb[14].mxu0 %vm730_vm1, %v3222_v40  ;;  %v1557_v2 = vmul.f32 %v8191_v38, %v7417_v33  ;;  %v3227_v40 = vmul.f32 %v7108_v8, %v7186_v29  ;;  %v8193_v8 = vld [vmem:[#allocation10_spill] sm:$0xff]  ;;  %v8213_v63 = vld [vmem:[#allocation37_spill] sm:$0xff] }
  0xa0   : > { %5544 = vmatprep.mubr.msk.f32.mxu1 %vm730_vm1, %v1553_v13  ;;  %5765 = vmatprep.mubr.msk.f32.mxu0 %vm730_vm1, %v3223_v36  ;;  %v7438_v13 = vld [vmem:[#allocation2 + $0x49] sm:$0xff]  ;;  %v7440_v36 = vld [vmem:[#allocation2 + $0x51] sm:$0xff] }
  0xa1   : > { %5590 = vmatpush3.msk.msra.mxu1 %vm966_vm0, %v8189_v52  ;;  %v1558_v23 = vmul.f32 %v8192_v46, %v7438_v13  ;;  %v1559_v29 = vmul.f32 %v8193_v8, %v7440_v36  ;;  %v8197_v52 = vld [vmem:[#allocation14_spill] sm:$0xff] }
  0xa2   : > { %5889 = vmatprep.subr.msk.mxu1 %vm966_vm0, %v7422_v12 }
  0xa3   : > { %5545 = vmatmul.mubr.msk.f32.gmra.mrb[2].mxu1 %vm730_vm1, %v1554_v47  ;;  %5766 = vmatmul.mubr.msk.f32.gmra.mrb[16].mxu0 %vm730_vm1, %v3224_v21  ;;  %v3229_v47 = vmul.f32 %v7125_v56, %v7257_v48  ;;  %v8194_v21 = vld [vmem:[#allocation9_spill] sm:$0xff]  ;;  %v3231_v56 = vmul.f32 %v7161_v22, %v7307_v27  ;;  %v3233_v22 = vmul.f32 %v7255_v37, %v7339_v32  ;;  %v3205_v32 = vld [vmem:[#allocation2 + $0x11f] sm:$0xff] }
  0xa4   : > { %5547 = vmatprep.mubr.msk.f32.mxu1 %vm730_vm1, %v1555_v57  ;;  %5768 = vmatprep.mubr.msk.f32.mxu0 %vm730_vm1, %v3225_v26  ;;  %v8195_v57 = vld [vmem:[#allocation12_spill] sm:$0xff]  ;;  %v8198_v48 = vld [vmem:[#allocation13_spill] sm:$0xff]  ;;  %v3235_v37 = vmul.f32 %v7305_v4, %v7367_v14  ;;  %v3237_v4 = vmul.f32 %v7337_v35, %v3205_v32  ;;  %v8214_v35 = vld [vmem:[#allocation35_spill] sm:$0xff] }
  0xa5   : > { %v1560_v26 = vmul.f32 %v8195_v57, %v8194_v21  ;;  %v8202_v27 = vld [vmem:[#allocation17_spill] sm:$0xff]  ;;  %v3206_v14 = vld [vmem:[#allocation2 + $0x127] sm:$0xff]  ;;  %v8218_v32 = vld [vmem:[#allocation42_spill] sm:$0xff] }
  0xa7   : > { %5548 = vmatmul.mubr.msk.f32.gmra.mrb[4].mxu1 %vm730_vm1, %v1556_v53  ;;  %5769 = vmatmul.mubr.msk.f32.gmra.mrb[18].mxu0 %vm730_vm1, %v3226_v42  ;;  %v1561_v53 = vmul.f32 %v8197_v52, %v8196_v34  ;;  %v8199_v42 = vld [vmem:[#allocation16_spill] sm:$0xff] }
  0xa8   : > { %5550 = vmatprep.mubr.msk.f32.mxu1 %vm730_vm1, %v1557_v2  ;;  %5771 = vmatprep.mubr.msk.f32.mxu0 %vm730_vm1, %v3227_v40  ;;  %v1562_v2 = vmul.f32 %v8199_v42, %v8198_v48  ;;  %v8201_v40 = vld [vmem:[#allocation20_spill] sm:$0xff]  ;;  %v8210_v48 = vld [vmem:[#allocation29_spill] sm:$0xff] }
  0xab   : > { %5551 = vmatmul.mubr.msk.f32.gmra.mrb[6].mxu1 %vm730_vm1, %v1558_v23  ;;  %5772 = vmatmul.mubr.msk.f32.gmra.mrb[20].mxu0 %vm730_vm1, %v3228_v6  ;;  %v1563_v23 = vmul.f32 %v8201_v40, %v8200_v20  ;;  %v8203_v6 = vld [vmem:[#allocation22_spill] sm:$0xff]  ;;  %v3238_v20 = vmul.f32 %v7361_v49, %v3206_v14  ;;  %v3601_v14 = vld [vmem:[#allocation2 + $0x50] sm:$0xff] }
  0xac   : > { %5553 = vmatprep.mubr.msk.f32.mxu1 %vm730_vm1, %v1559_v29  ;;  %5774 = vmatprep.mubr.msk.f32.mxu0 %vm730_vm1, %v3229_v47  ;;  %v1564_v29 = vmul.f32 %v8203_v6, %v8202_v27  ;;  %v8205_v47 = vld [vmem:[#allocation24_spill] sm:$0xff]  ;;  %v8215_v27 = vld [vmem:[#allocation39_spill] sm:$0xff]  ;;  %v3598_v49 = vld [vmem:[#allocation2 + $0x38] sm:$0xff] }
  0xad   : > { %v1565_v21 = vmul.f32 %v8205_v47, %v8204_v10  ;;  %v8217_v10 = vld [vmem:[#allocation40_spill] sm:$0xff] }
  0xaf   : > { %5554 = vmatmul.mubr.msk.f32.gmra.mrb[8].mxu1 %vm730_vm1, %v1560_v26  ;;  %5775 = vmatmul.mubr.msk.f32.gmra.mrb[22].mxu0 %vm730_vm1, %v3230_v9  ;;  %v8206_v26 = vld [vmem:[#allocation23_spill] sm:$0xff]  ;;  %v8207_v9 = vld [vmem:[#allocation26_spill] sm:$0xff] }
  0xb0   : > { %5556 = vmatprep.mubr.msk.f32.mxu1 %vm730_vm1, %v1561_v53  ;;  %5777 = vmatprep.mubr.msk.f32.mxu0 %vm730_vm1, %v3231_v56  ;;  %v1566_v34 = vmul.f32 %v8207_v9, %v8206_v26  ;;  %v8209_v53 = vld [vmem:[#allocation30_spill] sm:$0xff]  ;;  %v8219_v26 = vld [vmem:[#allocation44_spill] sm:$0xff] }
  0xb1   : > { %v1567_v56 = vmul.f32 %v8209_v53, %v8208_v50  ;;  %v8220_v50 = vld [vmem:[#allocation43_spill] sm:$0xff] }
  0xb3   : > { %5557 = vmatmul.mubr.msk.f32.gmra.mrb[10].mxu1 %vm730_vm1, %v1562_v2  ;;  %5778 = vmatmul.mubr.msk.f32.gmra.mrb[24].mxu0 %vm730_vm1, %v3232_v58  ;;  %v8211_v2 = vld [vmem:[#allocation36_spill] sm:$0xff] }
  0xb4   : > { %5559 = vmatprep.mubr.msk.f32.mxu1 %vm730_vm1, %v1563_v23  ;;  %5780 = vmatprep.mubr.msk.f32.mxu0 %vm730_vm1, %v3233_v22  ;;  %v1568_v58 = vmul.f32 %v8211_v2, %v8210_v48  ;;  %v1569_v23 = vmul.f32 %v8213_v63, %v8212_v24  ;;  %v3597_v22 = vld [vmem:[#allocation2 + $0x30] sm:$0xff]  ;;  %v8224_v24 = vld [vmem:[#allocation47_spill] sm:$0xff] }
  0xb5   : > { %v8222_v48 = vld [vmem:[#allocation45_spill] sm:$0xff] }
  0xb7   : > { %5560 = vmatmul.mubr.msk.f32.gmra.mrb[12].mxu1 %vm730_vm1, %v1564_v29  ;;  %5781 = vmatmul.mubr.msk.f32.gmra.mrb[26].mxu0 %vm730_vm1, %v3234_v31  ;;  %v1570_v29 = vmul.f32 %v8215_v27, %v8214_v35  ;;  %v8216_v31 = vld [vmem:[#allocation38_spill] sm:$0xff]  ;;  %v3603_v35 = vld [vmem:[#allocation2 + $0x60] sm:$0xff] }
  0xb8   : > { %5562 = vmatprep.mubr.msk.f32.mxu1 %vm730_vm1, %v1565_v21  ;;  %5783 = vmatprep.mubr.msk.f32.mxu0 %vm730_vm1, %v3235_v37  ;;  %v1571_v21 = vmul.f32 %v8217_v10, %v8216_v31  ;;  %v3599_v37 = vld [vmem:[#allocation2 + $0x40] sm:$0xff] }
  0xbb   : > { %5563 = vmatmul.mubr.msk.f32.gmra.mrb[14].mxu1 %vm730_vm1, %v1566_v34  ;;  %5784 = vmatmul.mubr.msk.f32.gmra.mrb[28].mxu0 %vm730_vm1, %v3236_v60  ;;  %v1572_v34 = vmul.f32 %v8219_v26, %v8218_v32  ;;  %v3600_v60 = vld [vmem:[#allocation2 + $0x48] sm:$0xff]  ;;  %v8229_v32 = vld [vmem:[#allocation54_spill] sm:$0xff] }
  0xbc   : > { %5565 = vmatprep.mubr.msk.f32.mxu1 %vm730_vm1, %v1567_v56  ;;  %5786 = vmatprep.mubr.msk.f32.mxu0 %vm730_vm1, %v3237_v4  ;;  %v8221_v56 = vld [vmem:[#allocation46_spill] sm:$0xff] }
  0xbd   : > { %v1573_v4 = vmul.f32 %v8221_v56, %v8220_v50  ;;  %v8230_v50 = vld [vmem:[#allocation53_spill] sm:$0xff] }
  0xbf   : > { %5566 = vmatmul.mubr.msk.f32.gmra.mrb[16].mxu1 %vm730_vm1, %v1568_v58  ;;  %5787 = vmatmul.mubr.msk.f32.gmra.mrb[30].mxu0 %vm730_vm1, %v3238_v20  ;;  %v8223_v58 = vld [vmem:[#allocation48_spill] sm:$0xff] }
  0xc0   : > { %5568 = vmatprep.mubr.msk.f32.mxu1 %vm730_vm1, %v1569_v23  ;;  %5791 = vmatprep.mubr.msk.f32.mxu0 %vm730_vm1, %v3597_v22  ;;  %v1574_v20 = vmul.f32 %v8223_v58, %v8222_v48  ;;  %v8225_v23 = vld [vmem:[#allocation50_spill] sm:$0xff] }
  0xc1   : > { %v1575_v22 = vmul.f32 %v8225_v23, %v8224_v24  ;;  %v3606_v48 = vld [vmem:[#allocation2 + $0x78] sm:$0xff] }
  0xc3   : > { %5569 = vmatmul.mubr.msk.f32.gmra.mrb[18].mxu1 %vm730_vm1, %v1570_v29  ;;  %5792 = vmatmul.mubr.msk.f32.vlgmr.msra.gmra.mrb[0].mxu0 %vm730_vm1, %v3598_v49  ;;  %v8226_v29 = vld [vmem:[#allocation49_spill] sm:$0xff]  ;;  %v8227_v49 = vld [vmem:[#allocation52_spill] sm:$0xff] }
  0xc4   : > { %5840 = vmatpush3.msk.msra.mxu0 %vm966_vm0, %v7154_v3  ;;  %5571 = vmatprep.mubr.msk.f32.mxu1 %vm730_vm1, %v1571_v21  ;;  %v3602_v3 = vld [vmem:[#allocation2 + $0x58] sm:$0xff]  ;;  %v1576_v31 = vmul.f32 %v8227_v49, %v8226_v29  ;;  %v3604_v21 = vld [vmem:[#allocation2 + $0x68] sm:$0xff] }
  0xc5   : > { %5794 = vmatprep.mubr.msk.f32.mxu0 %vm730_vm1, %v3599_v37  ;;  %v8228_v37 = vld [vmem:[#allocation51_spill] sm:$0xff]  ;;  %v8235_v29 = vld [vmem:[#allocation60_spill] sm:$0xff] }
  0xc7   : > { %5572 = vmatmul.mubr.msk.f32.gmra.mrb[20].mxu1 %vm730_vm1, %v1572_v34  ;;  %5795 = vmatmul.mubr.msk.f32.gmra.mrb[2].mxu0 %vm730_vm1, %v3600_v60  ;;  %v1577_v34 = vmul.f32 %v8229_v32, %v8228_v37  ;;  %v3605_v60 = vld [vmem:[#allocation2 + $0x70] sm:$0xff]  ;;  %v8236_v37 = vld [vmem:[#allocation59_spill] sm:$0xff] }
  0xc8   : > { %5574 = vmatprep.mubr.msk.f32.mxu1 %vm730_vm1, %v1573_v4  ;;  %5797 = vmatprep.mubr.msk.f32.mxu0 %vm730_vm1, %v3601_v14  ;;  %v8231_v4 = vld [vmem:[#allocation56_spill] sm:$0xff] }
  0xc9   : > { %v1578_v14 = vmul.f32 %v8231_v4, %v8230_v50  ;;  %v3609_v50 = vld [vmem:[#allocation2 + $0x90] sm:$0xff]  ;;  %v1941_v4 = vld [vmem:[#allocation2 + $0x1f] sm:$0xff] }
  0xcb   : > { %5575 = vmatmul.mubr.msk.f32.gmra.mrb[22].mxu1 %vm730_vm1, %v1574_v20  ;;  %5798 = vmatmul.mubr.msk.f32.gmra.mrb[4].mxu0 %vm730_vm1, %v3602_v3  ;;  %v8232_v20 = vld [vmem:[#allocation55_spill] sm:$0xff]  ;;  %v8233_v3 = vld [vmem:[#allocation58_spill] sm:$0xff] }
  0xcc   : > { %5577 = vmatprep.mubr.msk.f32.mxu1 %vm730_vm1, %v1575_v22  ;;  %5800 = vmatprep.mubr.msk.f32.mxu0 %vm730_vm1, %v3603_v35  ;;  %v1579_v24 = vmul.f32 %v8233_v3, %v8232_v20  ;;  %v3607_v22 = vld [vmem:[#allocation2 + $0x80] sm:$0xff]  ;;  %v8234_v35 = vld [vmem:[#allocation57_spill] sm:$0xff] }
  0xcd   : > { %v8239_v20 = vld [vmem:[#allocation63_spill] sm:$0xff] }
  0xcf   : > { %5578 = vmatmul.mubr.msk.f32.gmra.mrb[24].mxu1 %vm730_vm1, %v1576_v31  ;;  %5801 = vmatmul.mubr.msk.f32.gmra.mrb[6].mxu0 %vm730_vm1, %v3604_v21  ;;  %v1580_v31 = vmul.f32 %v8235_v29, %v8234_v35  ;;  %v3608_v21 = vld [vmem:[#allocation2 + $0x88] sm:$0xff]  ;;  %v8240_v35 = vld [vmem:[#allocation18_spill] sm:$0xff]  ;;  %v7567_v29 = vld [vmem:[#allocation2 + $0xa0] sm:$0xff] }
  0xd0   : > { %5580 = vmatprep.mubr.msk.f32.mxu1 %vm730_vm1, %v1577_v34  ;;  %5803 = vmatprep.mubr.msk.f32.mxu0 %vm730_vm1, %v3605_v60  ;;  %v8237_v34 = vld [vmem:[#allocation62_spill] sm:$0xff] }
  0xd1   : > { %v1581_v60 = vmul.f32 %v8237_v34, %v8236_v37  ;;  %v8241_v37 = vld [vmem:[#allocation31_spill] sm:$0xff] }
  0xd3   : > { %5581 = vmatmul.mubr.msk.f32.gmra.mrb[26].mxu1 %vm730_vm1, %v1578_v14  ;;  %5804 = vmatmul.mubr.msk.f32.gmra.mrb[8].mxu0 %vm730_vm1, %v3606_v48  ;;  %v8238_v14 = vld [vmem:[#allocation61_spill] sm:$0xff] }
  0xd4   : > { %5583 = vmatprep.mubr.msk.f32.mxu1 %vm730_vm1, %v1579_v24  ;;  %5806 = vmatprep.mubr.msk.f32.mxu0 %vm730_vm1, %v3607_v22  ;;  %v1582_v48 = vmul.f32 %v8239_v20, %v8238_v14  ;;  %v3610_v24 = vld [vmem:[#allocation2 + $0x98] sm:$0xff]  ;;  %v1973_v22 = vmul.f32 %v8240_v35, %v1941_v4  ;;  %v7580_v4 = vld [vmem:[#allocation2 + $0xb0] sm:$0xff] }
  0xd7   : > { %5584 = vmatmul.mubr.msk.f32.gmra.mrb[28].mxu1 %vm730_vm1, %v1580_v31  ;;  %5807 = vmatmul.mubr.msk.f32.gmra.mrb[10].mxu0 %vm730_vm1, %v3608_v21  ;;  %v8242_v31 = vld [vmem:[#allocation19_spill] sm:$0xff]  ;;  %v7576_v21 = vld [vmem:[#allocation2 + $0xa8] sm:$0xff] }
  0xd8   : > { %5586 = vmatprep.mubr.msk.f32.mxu1 %vm730_vm1, %v1581_v60  ;;  %5809 = vmatprep.mubr.msk.f32.mxu0 %vm730_vm1, %v3609_v50  ;;  %v1974_v34 = vmul.f32 %v8242_v31, %v8241_v37  ;;  %v8243_v60 = vld [vmem:[#allocation33_spill] sm:$0xff]  ;;  %v8244_v50 = vld [vmem:[#allocation27_spill] sm:$0xff] }
  0xd9   : > { %v1975_v14 = vmul.f32 %v8244_v50, %v8243_v60  ;;  %v7594_v37 = vld [vmem:[#allocation2 + $0xc0] sm:$0xff]  ;;  %v7605_v31 = vld [vmem:[#allocation2 + $0xd0] sm:$0xff] }
  0xda   : > { %v3627_v60 = vld [vmem:[#allocation2 + $0x120] sm:$0xff]  ;;  %v8248_v50 = vld [vmem:[#allocation65_spill] sm:$0xff] }
  0xdb   : > { %5587 = vmatmul.mubr.msk.f32.gmra.mrb[30].mxu1 %vm730_vm1, %v1582_v48  ;;  %5810 = vmatmul.mubr.msk.f32.gmra.mrb[12].mxu0 %vm730_vm1, %v3610_v24  ;;  %v8245_v48 = vld [vmem:[#allocation34_spill] sm:$0xff]  ;;  %v8246_v24 = vld [vmem:[#allocation28_spill] sm:$0xff] }
  0xdc   : > { %5591 = vmatprep.mubr.msk.f32.mxu1 %vm730_vm1, %v1973_v22  ;;  %5812 = vmatprep.mubr.msk.f32.mxu0 %vm730_vm1, %v7567_v29  ;;  %v1976_v35 = vmul.f32 %v8246_v24, %v8245_v48  ;;  %v7590_v22 = vld [vmem:[#allocation2 + $0xb8] sm:$0xff]  ;;  %v4019_v48 = vmul.f32 %v6445_v39, %v7400_v41  ;;  %v8250_v24 = vld [vmem:[#allocation67_spill] sm:$0xff]  ;;  %v4022_v39 = vmul.f32 %v8187_v5, %v7438_v13 }
  0xdd   : > { %v8253_v41 = vld [vmem:[#allocation70_spill] sm:$0xff] }
  0xde   : > { %v3995_v13 = vld [vmem:[#allocation2 + $0x71] sm:$0xff] }
  0xdf   : > { %5592 = vmatmul.mubr.msk.f32.vlgmr.msra.gmra.mrb[0].mxu1 %vm730_vm1, %v1974_v34  ;;  %5813 = vmatmul.mubr.msk.f32.gmra.mrb[14].mxu0 %vm730_vm1, %v7576_v21  ;;  %v7603_v34 = vld [vmem:[#allocation2 + $0xc8] sm:$0xff] }
  0xe0   : > { %5594 = vmatprep.mubr.msk.f32.mxu1 %vm730_vm1, %v1975_v14  ;;  %5815 = vmatprep.mubr.msk.f32.mxu0 %vm730_vm1, %v7580_v4  ;;  %v8249_v14 = vld [vmem:[#allocation66_spill] sm:$0xff] }
  0xe1   : > { %5890 = vmatpush3.msk.msra.mxu1 %vm966_vm0, %v7422_v12  ;;  %v7617_v12 = vld [vmem:[#allocation2 + $0xe0] sm:$0xff]  ;;  %vm4549_vm0 = vcmask 24576  }
  0xe3   : > { %5595 = vmatmul.mubr.msk.f32.gmra.mrb[2].mxu1 %vm730_vm1, %v1976_v35  ;;  %5816 = vmatmul.mubr.msk.f32.gmra.mrb[16].mxu0 %vm730_vm1, %v7590_v22  ;;  %v4020_v35 = vmul.f32 %v6469_v55, %v7413_v0  ;;  %v4023_v55 = vmul.f32 %v8188_v43, %v7440_v36  ;;  %v3992_v0 = vld [vmem:[#allocation2 + $0x59] sm:$0xff]  ;;  %v8255_v36 = vld [vmem:[#allocation72_spill] sm:$0xff] }
  0xe4   : > { %5597 = vmatprep.mubr.msk.f32.mxu1 %vm730_vm1, %v7167_v15  ;;  %5818 = vmatprep.mubr.msk.f32.mxu0 %vm730_vm1, %v7594_v37  ;;  %v7615_v15 = vld [vmem:[#allocation2 + $0xd8] sm:$0xff] }
  0xe7   : > { %5598 = vmatmul.mubr.msk.f32.gmra.mrb[4].mxu1 %vm730_vm1, %v7175_v18  ;;  %5819 = vmatmul.mubr.msk.f32.gmra.mrb[18].mxu0 %vm730_vm1, %v7603_v34  ;;  %v7627_v18 = vld [vmem:[#allocation2 + $0xe8] sm:$0xff] }
  0xe8   : > { %5600 = vmatprep.mubr.msk.f32.mxu1 %vm730_vm1, %v7179_v11  ;;  %5821 = vmatprep.mubr.msk.f32.mxu0 %vm730_vm1, %v7605_v31  ;;  %v7629_v11 = vld [vmem:[#allocation2 + $0xf0] sm:$0xff] }
  0xeb   : > { %5601 = vmatmul.mubr.msk.f32.gmra.mrb[6].mxu1 %vm730_vm1, %v7183_v59  ;;  %5822 = vmatmul.mubr.msk.f32.gmra.mrb[20].mxu0 %vm730_vm1, %v7615_v15  ;;  %v7639_v59 = vld [vmem:[#allocation2 + $0xf8] sm:$0xff] }
  0xec   : > { %5603 = vmatprep.mubr.msk.f32.mxu1 %vm730_vm1, %v7193_v28  ;;  %5824 = vmatprep.mubr.msk.f32.mxu0 %vm730_vm1, %v7617_v12  ;;  %v7641_v28 = vld [vmem:[#allocation2 + $0x100] sm:$0xff] }
  0xef   : > { %5604 = vmatmul.mubr.msk.f32.gmra.mrb[8].mxu1 %vm730_vm1, %v7197_v44  ;;  %5825 = vmatmul.mubr.msk.f32.gmra.mrb[22].mxu0 %vm730_vm1, %v7627_v18  ;;  %v7651_v44 = vld [vmem:[#allocation2 + $0x108] sm:$0xff] }
  0xf0   : > { %5606 = vmatprep.mubr.msk.f32.mxu1 %vm730_vm1, %v7201_v16  ;;  %5827 = vmatprep.mubr.msk.f32.mxu0 %vm730_vm1, %v7629_v11  ;;  %v7653_v16 = vld [vmem:[#allocation2 + $0x110] sm:$0xff] }
  0xf3   : > { %5607 = vmatmul.mubr.msk.f32.gmra.mrb[10].mxu1 %vm730_vm1, %v7205_v45  ;;  %5828 = vmatmul.mubr.msk.f32.gmra.mrb[24].mxu0 %vm730_vm1, %v7639_v59  ;;  %v8247_v45 = vld [vmem:[#allocation64_spill] sm:$0xff] }
  0xf4   : > { %5609 = vmatprep.mubr.msk.f32.mxu1 %vm730_vm1, %v7209_v51  ;;  %5830 = vmatprep.mubr.msk.f32.mxu0 %vm730_vm1, %v7641_v28  ;;  %v7663_v51 = vld [vmem:[#allocation2 + $0x118] sm:$0xff] }
  0xf7   : > { %5610 = vmatmul.mubr.msk.f32.gmra.mrb[12].mxu1 %vm730_vm1, %v7213_v19  ;;  %5831 = vmatmul.mubr.msk.f32.gmra.mrb[26].mxu0 %vm730_vm1, %v7651_v44  ;;  %v3628_v19 = vld [vmem:[#allocation2 + $0x128] sm:$0xff] }
  0xf8   : > { %5612 = vmatprep.mubr.msk.f32.mxu1 %vm730_vm1, %v8247_v45  ;;  %5833 = vmatprep.mubr.msk.f32.mxu0 %vm730_vm1, %v7653_v16  ;;  %v8251_v45 = vld [vmem:[#allocation68_spill] sm:$0xff] }
  0xfb   : > { %5613 = vmatmul.mubr.msk.f32.gmra.mrb[14].mxu1 %vm730_vm1, %v8248_v50  ;;  %5834 = vmatmul.mubr.msk.f32.gmra.mrb[28].mxu0 %vm730_vm1, %v7663_v51  ;;  %v8252_v50 = vld [vmem:[#allocation69_spill] sm:$0xff] }
  0xfc   : > { %5615 = vmatprep.mubr.msk.f32.mxu1 %vm730_vm1, %v8249_v14  ;;  %5836 = vmatprep.mubr.msk.f32.mxu0 %vm730_vm1, %v3627_v60  ;;  %v4021_v60 = vmul.f32 %v8186_v7, %v7417_v33  ;;  %v3993_v14 = vld [vmem:[#allocation2 + $0x61] sm:$0xff]  ;;  %v4024_v7 = vmul.f32 %v8190_v30, %v3992_v0  ;;  %v3994_v33 = vld [vmem:[#allocation2 + $0x69] sm:$0xff]  ;;  %v3996_v30 = vld [vmem:[#allocation2 + $0x79] sm:$0xff] }
  0xfd   : > { %v4025_v5 = vmul.f32 %v8191_v38, %v3993_v14  ;;  %v4026_v43 = vmul.f32 %v8192_v46, %v3994_v33  ;;  %v3998_v46 = vld [vmem:[#allocation2 + $0x89] sm:$0xff]  ;;  %v8261_v0 = vld [vmem:[#allocation62_spill] sm:$0xff] }
  0xfe   : > { %v4018_v14 = vld [vmem:[#allocation2 + $0x129] sm:$0xff] }
  0xff   : > { %5616 = vmatmul.mubr.msk.f32.gmra.mrb[16].mxu1 %vm730_vm1, %v8250_v24  ;;  %5837 = vmatmul.mubr.msk.f32.gmra.mrb[30].mxu0 %vm730_vm1, %v3628_v19  ;;  %v8254_v19 = vld [vmem:[#allocation71_spill] sm:$0xff]  ;;  %v3999_v24 = vld [vmem:[#allocation2 + $0x91] sm:$0xff] }
 0x100   : > { %5618 = vmatprep.mubr.msk.f32.mxu1 %vm730_vm1, %v8251_v45  ;;  %5841 = vmatprep.mubr.msk.f32.mxu0 %vm730_vm1, %v4019_v48  ;;  %v3997_v48 = vld [vmem:[#allocation2 + $0x81] sm:$0xff]  ;;  %v8257_v45 = vld [vmem:[#allocation74_spill] sm:$0xff] }
 0x101   : > { %v4029_v38 = vmul.f32 %v8197_v52, %v3997_v48 }
 0x103   : > { %5619 = vmatmul.mubr.msk.f32.gmra.mrb[18].mxu1 %vm730_vm1, %v8252_v50  ;;  %5842 = vmatmul.mubr.msk.f32.vlgmr.msra.gmra.mrb[0].mxu0 %vm730_vm1, %v4020_v35  ;;  %v8256_v35 = vld [vmem:[#allocation73_spill] sm:$0xff]  ;;  %v8258_v50 = vld [vmem:[#allocation75_spill] sm:$0xff] }
 0x104   : > { %5621 = vmatprep.mubr.msk.f32.mxu1 %vm730_vm1, %v8253_v41  ;;  %5844 = vmatprep.mubr.msk.f32.mxu0 %vm730_vm1, %v4021_v60  ;;  %v4003_v60 = vld [vmem:[#allocation2 + $0xb1] sm:$0xff] }
 0x105   : > { %v4007_v41 = vld [vmem:[#allocation2 + $0xd1] sm:$0xff] }
 0x107   : > { %5622 = vmatmul.mubr.msk.f32.gmra.mrb[20].mxu1 %vm730_vm1, %v8254_v19  ;;  %5845 = vmatmul.mubr.msk.f32.gmra.mrb[2].mxu0 %vm730_vm1, %v4022_v39  ;;  %v4005_v39 = vld [vmem:[#allocation2 + $0xc1] sm:$0xff] }
 0x108   : > { %5624 = vmatprep.mubr.msk.f32.mxu1 %vm730_vm1, %v7271_v61  ;;  %5847 = vmatprep.mubr.msk.f32.mxu0 %vm730_vm1, %v4023_v55  ;;  %v4027_v61 = vmul.f32 %v8193_v8, %v3995_v13  ;;  %v4000_v8 = vld [vmem:[#allocation2 + $0x99] sm:$0xff]  ;;  %v4017_v55 = vld [vmem:[#allocation2 + $0x121] sm:$0xff] }
 0x109   : > { %v4032_v52 = vmul.f32 %v8203_v6, %v4000_v8  ;;  %v4004_v6 = vld [vmem:[#allocation2 + $0xb9] sm:$0xff] }
 0x10b   : > { %5625 = vmatmul.mubr.msk.f32.gmra.mrb[22].mxu1 %vm730_vm1, %v7275_v62  ;;  %5848 = vmatmul.mubr.msk.f32.gmra.mrb[4].mxu0 %vm730_vm1, %v4024_v7  ;;  %v4028_v62 = vmul.f32 %v8195_v57, %v3996_v30  ;;  %v4001_v57 = vld [vmem:[#allocation2 + $0xa1] sm:$0xff] }
 0x10c   : > { %5627 = vmatprep.mubr.msk.f32.mxu1 %vm730_vm1, %v8255_v36  ;;  %5850 = vmatprep.mubr.msk.f32.mxu0 %vm730_vm1, %v4025_v5 }
 0x10f   : > { %5628 = vmatmul.mubr.msk.f32.gmra.mrb[24].mxu1 %vm730_vm1, %v7302_v1  ;;  %5851 = vmatmul.mubr.msk.f32.gmra.mrb[6].mxu0 %vm730_vm1, %v4026_v43  ;;  %v4030_v1 = vmul.f32 %v8199_v42, %v3998_v46  ;;  %v4002_v42 = vld [vmem:[#allocation2 + $0xa9] sm:$0xff] }
 0x110   : > { %5630 = vmatprep.mubr.msk.f32.mxu1 %vm730_vm1, %v7321_v17  ;;  %5853 = vmatprep.mubr.msk.f32.mxu0 %vm730_vm1, %v4027_v61  ;;  %v4031_v17 = vmul.f32 %v8201_v40, %v3999_v24  ;;  %v4034_v40 = vmul.f32 %v8207_v9, %v4002_v42  ;;  %v4037_v9 = vmul.f32 %v8213_v63, %v4005_v39  ;;  %v7823_v24 = vld [vmem:[%s8015_s4] ss:$0 sm:$0xff] }
 0x113   : > { %5631 = vmatmul.mubr.msk.f32.gmra.mrb[26].mxu1 %vm730_vm1, %v8256_v35  ;;  %5854 = vmatmul.mubr.msk.f32.gmra.mrb[8].mxu0 %vm730_vm1, %v4028_v62 }
 0x114   : > { %5633 = vmatprep.mubr.msk.f32.mxu1 %vm730_vm1, %v7352_v54  ;;  %5856 = vmatprep.mubr.msk.f32.mxu0 %vm730_vm1, %v4029_v38  ;;  %v4033_v54 = vmul.f32 %v8205_v47, %v4001_v57  ;;  %v4036_v47 = vmul.f32 %v8211_v2, %v4004_v6  ;;  %v4039_v2 = vmul.f32 %v8217_v10, %v4007_v41 }
 0x117   : > { %5634 = vmatmul.mubr.msk.f32.gmra.mrb[28].mxu1 %vm730_vm1, %v8257_v45  ;;  %5857 = vmatmul.mubr.msk.f32.gmra.mrb[10].mxu0 %vm730_vm1, %v4030_v1 }
 0x118   : > { %5636 = vmatprep.mubr.msk.f32.mxu1 %vm730_vm1, %v7379_v25  ;;  %5859 = vmatprep.mubr.msk.f32.mxu0 %vm730_vm1, %v4031_v17  ;;  %v4035_v25 = vmul.f32 %v8209_v53, %v4003_v60 }
 0x11b   : > { %5637 = vmatmul.mubr.msk.f32.gmra.mrb[30].mxu1 %vm730_vm1, %v8258_v50  ;;  %5860 = vmatmul.mubr.msk.f32.gmra.mrb[12].mxu0 %vm730_vm1, %v4032_v52 }
 0x11c   : > { %5665 = vmatprep.mubr.msk.f32.mxu1 %vm730_vm1, %v7567_v29  ;;  %5862 = vmatprep.mubr.msk.f32.mxu0 %vm730_vm1, %v4033_v54  ;;  %v4006_v29 = vld [vmem:[#allocation2 + $0xc9] sm:$0xff] }
 0x11d   : > { %v4038_v53 = vmul.f32 %v8215_v27, %v4006_v29 }
 0x11f   : > { %5666 = vmatmul.mubr.msk.f32.vlgmr.msra.gmra.mrb[16].mxu1 %vm730_vm1, %v7576_v21  ;;  %5863 = vmatmul.mubr.msk.f32.gmra.mrb[14].mxu0 %vm730_vm1, %v4034_v40  ;;  %v4008_v21 = vld [vmem:[#allocation2 + $0xd9] sm:$0xff] }
 0x120   : > { %5668 = vmatprep.mubr.msk.f32.mxu1 %vm730_vm1, %v7580_v4  ;;  %5865 = vmatprep.mubr.msk.f32.mxu0 %vm730_vm1, %v4035_v25  ;;  %v4009_v4 = vld [vmem:[#allocation2 + $0xe1] sm:$0xff]  ;;  %v4040_v63 = vmul.f32 %v8219_v26, %v4008_v21 }
 0x121   : > { %v4041_v27 = vmul.f32 %v8221_v56, %v4009_v4 }
 0x123   : > { %5669 = vmatmul.mubr.msk.f32.gmra.mrb[18].mxu1 %vm730_vm1, %v7590_v22  ;;  %5866 = vmatmul.mubr.msk.f32.gmra.mrb[16].mxu0 %vm730_vm1, %v4036_v47  ;;  %v4010_v22 = vld [vmem:[#allocation2 + $0xe9] sm:$0xff] }
 0x124   : > { %5671 = vmatprep.mubr.msk.f32.mxu1 %vm730_vm1, %v7594_v37  ;;  %5868 = vmatprep.mubr.msk.f32.mxu0 %vm730_vm1, %v4037_v9  ;;  %v4011_v37 = vld [vmem:[#allocation2 + $0xf1] sm:$0xff]  ;;  %v4042_v10 = vmul.f32 %v8223_v58, %v4010_v22 }
 0x125   : > { %v4043_v26 = vmul.f32 %v8225_v23, %v4011_v37  ;;  %v8259_v23 = vld [vmem:[#allocation56_spill] sm:$0xff] }
 0x127   : > { %5672 = vmatmul.mubr.msk.f32.gmra.mrb[20].mxu1 %vm730_vm1, %v7603_v34  ;;  %5869 = vmatmul.mubr.msk.f32.gmra.mrb[18].mxu0 %vm730_vm1, %v4038_v53  ;;  %v4012_v34 = vld [vmem:[#allocation2 + $0xf9] sm:$0xff] }
 0x128   : > { %5674 = vmatprep.mubr.msk.f32.mxu1 %vm730_vm1, %v7605_v31  ;;  %5871 = vmatprep.mubr.msk.f32.mxu0 %vm730_vm1, %v4039_v2  ;;  %v4013_v31 = vld [vmem:[#allocation2 + $0x101] sm:$0xff]  ;;  %v4044_v56 = vmul.f32 %v8227_v49, %v4012_v34 }
 0x129   : > { %v4045_v58 = vmul.f32 %v8229_v32, %v4013_v31  ;;  %v8260_v32 = vld [vmem:[#allocation60_spill] sm:$0xff] }
 0x12b   : > { %5675 = vmatmul.mubr.msk.f32.gmra.mrb[22].mxu1 %vm730_vm1, %v7615_v15  ;;  %5872 = vmatmul.mubr.msk.f32.gmra.mrb[20].mxu0 %vm730_vm1, %v4040_v63  ;;  %v4014_v15 = vld [vmem:[#allocation2 + $0x109] sm:$0xff] }
 0x12c   : > { %5677 = vmatprep.mubr.msk.f32.mxu1 %vm730_vm1, %v7617_v12  ;;  %5874 = vmatprep.mubr.msk.f32.mxu0 %vm730_vm1, %v4041_v27  ;;  %v4015_v12 = vld [vmem:[#allocation2 + $0x111] sm:$0xff] }
 0x12d   : > { %v4047_v49 = vmul.f32 %v8233_v3, %v4015_v12  ;;  %v4050_v3 = vmul.f32 %v8239_v20, %v4018_v14 }
 0x12f   : > { %5678 = vmatmul.mubr.msk.f32.gmra.mrb[24].mxu1 %vm730_vm1, %v7627_v18  ;;  %5875 = vmatmul.mubr.msk.f32.gmra.mrb[22].mxu0 %vm730_vm1, %v4042_v10  ;;  %v4046_v18 = vmul.f32 %v8259_v23, %v4014_v15 }
 0x130   : > { %5680 = vmatprep.mubr.msk.f32.mxu1 %vm730_vm1, %v7629_v11  ;;  %5877 = vmatprep.mubr.msk.f32.mxu0 %vm730_vm1, %v4043_v26  ;;  %v4016_v11 = vld [vmem:[#allocation2 + $0x119] sm:$0xff] }
 0x133   : > { %5681 = vmatmul.mubr.msk.f32.gmra.mrb[26].mxu1 %vm730_vm1, %v7639_v59  ;;  %5878 = vmatmul.mubr.msk.f32.gmra.mrb[24].mxu0 %vm730_vm1, %v4044_v56  ;;  %v4048_v59 = vmul.f32 %v8260_v32, %v4016_v11 }
 0x134   : > { %5683 = vmatprep.mubr.msk.f32.mxu1 %vm730_vm1, %v7641_v28  ;;  %5880 = vmatprep.mubr.msk.f32.mxu0 %vm730_vm1, %v4045_v58  ;;  %v4049_v28 = vmul.f32 %v8261_v0, %v4017_v55 }
 0x137   : > { %5684 = vmatmul.mubr.msk.f32.gmra.mrb[28].mxu1 %vm730_vm1, %v7651_v44  ;;  %5881 = vmatmul.mubr.msk.f32.gmra.mrb[26].mxu0 %vm730_vm1, %v4046_v18 }
 0x138   : > { %5686 = vmatprep.mubr.msk.f32.mxu1 %vm730_vm1, %v7653_v16  ;;  %5883 = vmatprep.mubr.msk.f32.mxu0 %vm730_vm1, %v4047_v49 }
 0x13b   : > { %5687 = vmatmul.mubr.msk.f32.gmra.mrb[30].mxu1 %vm730_vm1, %v7663_v51  ;;  %5884 = vmatmul.mubr.msk.f32.gmra.mrb[28].mxu0 %vm730_vm1, %v4048_v59 }
 0x13c   : > { %5886 = vmatprep.mubr.msk.f32.mxu0 %vm730_vm1, %v4049_v28 }
 0x13f   : > { %5887 = vmatmul.mubr.msk.f32.gmra.mrb[30].mxu0 %vm730_vm1, %v4050_v3 }
 0x1b2   : > { %v5593_v44 = vpop.f32.mrb[0].mxu1 }
 0x1b3   : > { %v2172_v19 = vpop.f32.mrb[1].mxu1 }
 0x1b6   : > { %v5596_v7 = vpop.f32.mrb[2].mxu1 }
 0x1b7   : > { %v2182_v16 = vpop.f32.mrb[3].mxu1 }
 0x1ba   : > { %v5599_v5 = vpop.f32.mrb[4].mxu1 }
 0x1bb   : > { %v2192_v33 = vpop.f32.mrb[5].mxu1 }
 0x1be   : > { %v5602_v13 = vpop.f32.mrb[6].mxu1 }
 0x1bf   : > { %v2202_v43 = vpop.f32.mrb[7].mxu1 }
 0x1c2   : > { %v7804_v36 = vpop.f32.mrb[8].mxu1 }
 0x1c3   : > { %v7806_v51 = vpop.f32.mrb[9].mxu1 }
 0x1c6   : > { %v7808_v61 = vpop.f32.mrb[10].mxu1 }
 0x1c7   : > { %v7810_v20 = vpop.f32.mrb[11].mxu1 }
 0x1ca   : > { %v7812_v30 = vpop.f32.mrb[12].mxu1 }
 0x1cb   : > { %v7814_v48 = vpop.f32.mrb[13].mxu1 }
 0x1ce   : > { %v7816_v62 = vpop.f32.mrb[14].mxu1 }
 0x1cf   : > { %v7818_v38 = vpop.f32.mrb[15].mxu1 }
 0x1d6   : > { %v5843_v46 = vpop.f32.mrb[0].mxu0 }
 0x1d7   : > { %v5891_v35 = vadd.f32 %v5843_v46, %v5593_v44  ;;  %v4218_v1 = vpop.f32.mrb[1].mxu0 }
 0x1d8   : > { %v5892_v17 = vadd.f32 %v4218_v1, %v2172_v19 }
 0x1d9   : > { %v4417_v8 = vadd.f32 %v5891_v35, %v7823_v24 }
 0x1da   : > { %v4416_v57 = vadd.f32 %v5892_v17, %v7823_v24  ;;  %v5846_v45 = vpop.f32.mrb[2].mxu0 }
 0x1db   : > { %4449 = vst.msk [vmem:[%s7830_s17 + $0x8] sm:$0xff] %vm730_vm1, %v4417_v8  ;;  %v4481_v52 = vsel %vm730_vm1, %v4417_v8, 0.0  ;;  %v4552_v54 = vmul.f32 %v4417_v8, %v4417_v8  ;;  %v5893_v42 = vadd.f32 %v5846_v45, %v5596_v7  ;;  %v4228_v60 = vpop.f32.mrb[3].mxu0 }
 0x1dc   : > { %4448 = vst.msk [vmem:[%s7830_s17] sm:$0xff] %vm730_vm1, %v4416_v57  ;;  %v4480_v50 = vsel %vm730_vm1, %v4416_v57, 0.0  ;;  %v4551_v40 = vmul.f32 %v4416_v57, %v4416_v57  ;;  %v5894_v25 = vadd.f32 %v4228_v60, %v2182_v16 }
 0x1dd   : > { %v4584_v6 = vsel %vm730_vm1, %v4552_v54, 0.0  ;;  %v4482_v39 = vadd.f32 %v4481_v52, %v4480_v50  ;;  %v4419_v47 = vadd.f32 %v5893_v42, %v7823_v24 }
 0x1de   : > { %v4583_v9 = vsel %vm730_vm1, %v4551_v40, 0.0  ;;  %v4418_v29 = vadd.f32 %v5894_v25, %v7823_v24  ;;  %v5849_v41 = vpop.f32.mrb[4].mxu0 }
 0x1df   : > { %v4585_v53 = vadd.f32 %v4584_v6, %v4583_v9  ;;  %4451 = vst.msk [vmem:[%s7830_s17 + $0x18] sm:$0xff] %vm730_vm1, %v4419_v47  ;;  %v4554_v2 = vmul.f32 %v4419_v47, %v4419_v47  ;;  %v5895_v21 = vadd.f32 %v5849_v41, %v5599_v5  ;;  %v4238_v4 = vpop.f32.mrb[5].mxu0  ;;  %v4485_v26 = vsel %vm730_vm1, %v4419_v47, 0.0 }
 0x1e0   : > { %4450 = vst.msk [vmem:[%s7830_s17 + $0x10] sm:$0xff] %vm730_vm1, %v4418_v29  ;;  %v4483_v63 = vsel %vm730_vm1, %v4418_v29, 0.0  ;;  %v4553_v27 = vmul.f32 %v4418_v29, %v4418_v29  ;;  %v5896_v22 = vadd.f32 %v4238_v4, %v2192_v33 }
 0x1e1   : > { %v4484_v37 = vadd.f32 %v4483_v63, %v4482_v39  ;;  %v4421_v10 = vadd.f32 %v5895_v21, %v7823_v24  ;;  %v4588_v58 = vsel %vm730_vm1, %v4554_v2, 0.0 }
 0x1e2   : > { %v4586_v34 = vsel %vm730_vm1, %v4553_v27, 0.0  ;;  %v4420_v31 = vadd.f32 %v5896_v22, %v7823_v24  ;;  %v5852_v56 = vpop.f32.mrb[6].mxu0 }
 0x1e3   : > { %v4587_v15 = vadd.f32 %v4586_v34, %v4585_v53  ;;  %4453 = vst.msk [vmem:[%s7830_s17 + $0x28] sm:$0xff] %vm730_vm1, %v4421_v10  ;;  %v4556_v12 = vmul.f32 %v4421_v10, %v4421_v10  ;;  %v4486_v23 = vadd.f32 %v4485_v26, %v4484_v37  ;;  %v4248_v18 = vpop.f32.mrb[7].mxu0  ;;  %v5897_v55 = vadd.f32 %v5852_v56, %v5602_v13 }
 0x1e4   : > { %4452 = vst.msk [vmem:[%s7830_s17 + $0x20] sm:$0xff] %vm730_vm1, %v4420_v31  ;;  %v4487_v49 = vsel %vm730_vm1, %v4420_v31, 0.0  ;;  %v4555_v11 = vmul.f32 %v4420_v31, %v4420_v31  ;;  %v5898_v32 = vadd.f32 %v4248_v18, %v2202_v43  ;;  %v4489_v28 = vsel %vm730_vm1, %v4421_v10, 0.0 }
 0x1e5   : > { %v4488_v59 = vadd.f32 %v4487_v49, %v4486_v23  ;;  %v4589_v0 = vadd.f32 %v4588_v58, %v4587_v15  ;;  %v4423_v3 = vadd.f32 %v5897_v55, %v7823_v24  ;;  %v4592_v13 = vsel %vm730_vm1, %v4556_v12, 0.0 }
 0x1e6   : > { %v4590_v14 = vsel %vm730_vm1, %v4555_v11, 0.0  ;;  %v4422_v44 = vadd.f32 %v5898_v32, %v7823_v24  ;;  %v5855_v19 = vpop.f32.mrb[8].mxu0 }
 0x1e7   : > { %v4591_v7 = vadd.f32 %v4590_v14, %v4589_v0  ;;  %v4490_v16 = vadd.f32 %v4489_v28, %v4488_v59  ;;  %v5899_v5 = vadd.f32 %v5855_v19, %v7804_v36  ;;  %v4258_v33 = vpop.f32.mrb[9].mxu0  ;;  %4455 = vst.msk [vmem:[%s7830_s17 + $0x38] sm:$0xff] %vm730_vm1, %v4423_v3  ;;  %v4558_v43 = vmul.f32 %v4423_v3, %v4423_v3 }
 0x1e8   : > { %4454 = vst.msk [vmem:[%s7830_s17 + $0x30] sm:$0xff] %vm730_vm1, %v4422_v44  ;;  %v4491_v46 = vsel %vm730_vm1, %v4422_v44, 0.0  ;;  %v4557_v35 = vmul.f32 %v4422_v44, %v4422_v44  ;;  %v5900_v57 = vadd.f32 %v4258_v33, %v7806_v51  ;;  %v4493_v52 = vsel %vm730_vm1, %v4423_v3, 0.0 }
 0x1e9   : > { %v4492_v1 = vadd.f32 %v4491_v46, %v4490_v16  ;;  %v4593_v17 = vadd.f32 %v4592_v13, %v4591_v7  ;;  %v4425_v8 = vadd.f32 %v5899_v5, %v7823_v24  ;;  %v4596_v54 = vsel %vm730_vm1, %v4558_v43, 0.0 }
 0x1ea   : > { %v4594_v36 = vsel %vm730_vm1, %v4557_v35, 0.0  ;;  %v5858_v45 = vpop.f32.mrb[10].mxu0  ;;  %v4424_v60 = vadd.f32 %v5900_v57, %v7823_v24 }
 0x1eb   : > { %v4595_v42 = vadd.f32 %v4594_v36, %v4593_v17  ;;  %4457 = vst.msk [vmem:[%s7830_s17 + $0x48] sm:$0xff] %vm730_vm1, %v4425_v8  ;;  %v4268_v50 = vpop.f32.mrb[11].mxu0  ;;  %v4560_v40 = vmul.f32 %v4425_v8, %v4425_v8  ;;  %v4494_v25 = vadd.f32 %v4493_v52, %v4492_v1  ;;  %v5901_v6 = vadd.f32 %v5858_v45, %v7808_v61 }
 0x1ec   : > { %v5902_v51 = vadd.f32 %v4268_v50, %v7810_v20  ;;  %4456 = vst.msk [vmem:[%s7830_s17 + $0x40] sm:$0xff] %vm730_vm1, %v4424_v60  ;;  %v4495_v39 = vsel %vm730_vm1, %v4424_v60, 0.0  ;;  %v4559_v47 = vmul.f32 %v4424_v60, %v4424_v60  ;;  %v4497_v21 = vsel %vm730_vm1, %v4425_v8, 0.0 }
 0x1ed   : > { %v4597_v9 = vadd.f32 %v4596_v54, %v4595_v42  ;;  %v4496_v29 = vadd.f32 %v4495_v39, %v4494_v25  ;;  %v4427_v41 = vadd.f32 %v5901_v6, %v7823_v24  ;;  %v4600_v63 = vsel %vm730_vm1, %v4560_v40, 0.0 }
 0x1ee   : > { %v4426_v53 = vadd.f32 %v5902_v51, %v7823_v24  ;;  %v5861_v2 = vpop.f32.mrb[12].mxu0  ;;  %v4598_v61 = vsel %vm730_vm1, %v4559_v47, 0.0 }
 0x1ef   : > { %v5903_v4 = vadd.f32 %v5861_v2, %v7812_v30  ;;  %v4278_v20 = vpop.f32.mrb[13].mxu0  ;;  %v4599_v27 = vadd.f32 %v4598_v61, %v4597_v9  ;;  %4459 = vst.msk [vmem:[%s7830_s17 + $0x58] sm:$0xff] %vm730_vm1, %v4427_v41  ;;  %v4562_v22 = vmul.f32 %v4427_v41, %v4427_v41  ;;  %v4498_v37 = vadd.f32 %v4497_v21, %v4496_v29 }
 0x1f0   : > { %4458 = vst.msk [vmem:[%s7830_s17 + $0x50] sm:$0xff] %vm730_vm1, %v4426_v53  ;;  %v4499_v10 = vsel %vm730_vm1, %v4426_v53, 0.0  ;;  %v4561_v26 = vmul.f32 %v4426_v53, %v4426_v53  ;;  %v5904_v31 = vadd.f32 %v4278_v20, %v7814_v48  ;;  %v4501_v12 = vsel %vm730_vm1, %v4427_v41, 0.0 }
 0x1f1   : > { %v4429_v34 = vadd.f32 %v5903_v4, %v7823_v24  ;;  %v4500_v56 = vadd.f32 %v4499_v10, %v4498_v37  ;;  %v4601_v30 = vadd.f32 %v4600_v63, %v4599_v27  ;;  %v4604_v28 = vsel %vm730_vm1, %v4562_v22, 0.0 }
 0x1f2   : > { %v5667_v58 = vpop.f32.mrb[16].mxu1  ;;  %v5864_v15 = vpop.f32.mrb[14].mxu0  ;;  %v4602_v23 = vsel %vm730_vm1, %v4561_v26, 0.0  ;;  %v4428_v49 = vadd.f32 %v5904_v31, %v7823_v24 }
 0x1f3   : > { %4461 = vst.msk [vmem:[%s7830_s17 + $0x68] sm:$0xff] %vm730_vm1, %v4429_v34  ;;  %v4564_v18 = vmul.f32 %v4429_v34, %v4429_v34  ;;  %v2642_v11 = vpop.f32.mrb[17].mxu1  ;;  %v4288_v55 = vpop.f32.mrb[15].mxu0  ;;  %v4603_v32 = vadd.f32 %v4602_v23, %v4601_v30  ;;  %v4502_v59 = vadd.f32 %v4501_v12, %v4500_v56  ;;  %v5905_v48 = vadd.f32 %v5864_v15, %v7816_v62 }
 0x1f4   : > { %v5906_v0 = vadd.f32 %v4288_v55, %v7818_v38  ;;  %4460 = vst.msk [vmem:[%s7830_s17 + $0x60] sm:$0xff] %vm730_vm1, %v4428_v49  ;;  %v4503_v14 = vsel %vm730_vm1, %v4428_v49, 0.0  ;;  %v4563_v3 = vmul.f32 %v4428_v49, %v4428_v49  ;;  %v4505_v62 = vsel %vm730_vm1, %v4429_v34, 0.0 }
 0x1f5   : > { %v4504_v44 = vadd.f32 %v4503_v14, %v4502_v59  ;;  %v4605_v19 = vadd.f32 %v4604_v28, %v4603_v32  ;;  %v4431_v7 = vadd.f32 %v5905_v48, %v7823_v24  ;;  %v4608_v35 = vsel %vm730_vm1, %v4564_v18, 0.0 }
 0x1f6   : > { %v4430_v16 = vadd.f32 %v5906_v0, %v7823_v24  ;;  %v5670_v5 = vpop.f32.mrb[18].mxu1  ;;  %v5867_v33 = vpop.f32.mrb[16].mxu0  ;;  %v4606_v38 = vsel %vm730_vm1, %v4563_v3, 0.0 }
 0x1f7   : > { %v5907_v13 = vadd.f32 %v5867_v33, %v5667_v58  ;;  %v2652_v43 = vpop.f32.mrb[19].mxu1  ;;  %v4298_v46 = vpop.f32.mrb[17].mxu0  ;;  %v4607_v1 = vadd.f32 %v4606_v38, %v4605_v19  ;;  %4463 = vst.msk [vmem:[%s7830_s17 + $0x78] sm:$0xff] %vm730_vm1, %v4431_v7  ;;  %v4566_v17 = vmul.f32 %v4431_v7, %v4431_v7  ;;  %v4506_v8 = vadd.f32 %v4505_v62, %v4504_v44 }
 0x1f8   : > { %4462 = vst.msk [vmem:[%s7830_s17 + $0x70] sm:$0xff] %vm730_vm1, %v4430_v16  ;;  %v4507_v57 = vsel %vm730_vm1, %v4430_v16, 0.0  ;;  %v4565_v36 = vmul.f32 %v4430_v16, %v4430_v16  ;;  %v5908_v52 = vadd.f32 %v4298_v46, %v2642_v11  ;;  %v4509_v40 = vsel %vm730_vm1, %v4431_v7, 0.0 }
 0x1f9   : > { %v4433_v45 = vadd.f32 %v5907_v13, %v7823_v24  ;;  %v4508_v54 = vadd.f32 %v4507_v57, %v4506_v8  ;;  %v4609_v42 = vadd.f32 %v4608_v35, %v4607_v1  ;;  %v4612_v2 = vsel %vm730_vm1, %v4566_v17, 0.0 }
 0x1fa   : > { %v5673_v60 = vpop.f32.mrb[20].mxu1  ;;  %v5870_v50 = vpop.f32.mrb[18].mxu0  ;;  %v4610_v25 = vsel %vm730_vm1, %v4565_v36, 0.0  ;;  %v4432_v51 = vadd.f32 %v5908_v52, %v7823_v24 }
 0x1fb   : > { %4465 = vst.msk [vmem:[%s7830_s17 + $0x88] sm:$0xff] %vm730_vm1, %v4433_v45  ;;  %v4568_v6 = vmul.f32 %v4433_v45, %v4433_v45  ;;  %v2662_v39 = vpop.f32.mrb[21].mxu1  ;;  %v4308_v47 = vpop.f32.mrb[19].mxu0  ;;  %v4611_v9 = vadd.f32 %v4610_v25, %v4609_v42  ;;  %v4510_v29 = vadd.f32 %v4509_v40, %v4508_v54  ;;  %v5909_v41 = vadd.f32 %v5870_v50, %v5670_v5 }
 0x1fc   : > { %v5910_v53 = vadd.f32 %v4308_v47, %v2652_v43  ;;  %4464 = vst.msk [vmem:[%s7830_s17 + $0x80] sm:$0xff] %vm730_vm1, %v4432_v51  ;;  %v4511_v21 = vsel %vm730_vm1, %v4432_v51, 0.0  ;;  %v4567_v61 = vmul.f32 %v4432_v51, %v4432_v51  ;;  %v4513_v10 = vsel %vm730_vm1, %v4433_v45, 0.0 }
 0x1fd   : > { %v4512_v4 = vadd.f32 %v4511_v21, %v4510_v29  ;;  %v4613_v20 = vadd.f32 %v4612_v2, %v4611_v9  ;;  %v4435_v63 = vadd.f32 %v5909_v41, %v7823_v24  ;;  %v4616_v30 = vsel %vm730_vm1, %v4568_v6, 0.0 }
 0x1fe   : > { %v4434_v27 = vadd.f32 %v5910_v53, %v7823_v24  ;;  %v5676_v22 = vpop.f32.mrb[22].mxu1  ;;  %v5873_v37 = vpop.f32.mrb[20].mxu0  ;;  %v4614_v26 = vsel %vm730_vm1, %v4567_v61, 0.0 }
 0x1ff   : > { %v5911_v34 = vadd.f32 %v5873_v37, %v5673_v60  ;;  %v2672_v31 = vpop.f32.mrb[23].mxu1  ;;  %v4318_v56 = vpop.f32.mrb[21].mxu0  ;;  %v4615_v58 = vadd.f32 %v4614_v26, %v4613_v20  ;;  %4467 = vst.msk [vmem:[%s7830_s17 + $0x98] sm:$0xff] %vm730_vm1, %v4435_v63  ;;  %v4570_v15 = vmul.f32 %v4435_v63, %v4435_v63  ;;  %v4514_v12 = vadd.f32 %v4513_v10, %v4512_v4 }
 0x200   : > { %4466 = vst.msk [vmem:[%s7830_s17 + $0x90] sm:$0xff] %vm730_vm1, %v4434_v27  ;;  %v4515_v23 = vsel %vm730_vm1, %v4434_v27, 0.0  ;;  %v4569_v18 = vmul.f32 %v4434_v27, %v4434_v27  ;;  %v5912_v11 = vadd.f32 %v4318_v56, %v2662_v39  ;;  %v4517_v0 = vsel %vm730_vm1, %v4435_v63, 0.0 }
 0x201   : > { %v4437_v49 = vadd.f32 %v5911_v34, %v7823_v24  ;;  %v4516_v55 = vadd.f32 %v4515_v23, %v4514_v12  ;;  %v4617_v32 = vadd.f32 %v4616_v30, %v4615_v58  ;;  %v4620_v62 = vsel %vm730_vm1, %v4570_v15, 0.0 }
 0x202   : > { %v5679_v59 = vpop.f32.mrb[24].mxu1  ;;  %v5876_v48 = vpop.f32.mrb[22].mxu0  ;;  %v4618_v28 = vsel %vm730_vm1, %v4569_v18, 0.0  ;;  %v4436_v3 = vadd.f32 %v5912_v11, %v7823_v24 }
 0x203   : > { %4469 = vst.msk [vmem:[%s7830_s17 + $0xa8] sm:$0xff] %vm730_vm1, %v4437_v49  ;;  %v4572_v14 = vmul.f32 %v4437_v49, %v4437_v49  ;;  %v2682_v44 = vpop.f32.mrb[25].mxu1  ;;  %v4328_v19 = vpop.f32.mrb[23].mxu0  ;;  %v4619_v7 = vadd.f32 %v4618_v28, %v4617_v32  ;;  %v4518_v16 = vadd.f32 %v4517_v0, %v4516_v55  ;;  %v5913_v5 = vadd.f32 %v5876_v48, %v5676_v22 }
 0x204   : > { %v5914_v33 = vadd.f32 %v4328_v19, %v2672_v31  ;;  %4468 = vst.msk [vmem:[%s7830_s17 + $0xa0] sm:$0xff] %vm730_vm1, %v4436_v3  ;;  %v4519_v38 = vsel %vm730_vm1, %v4436_v3, 0.0  ;;  %v4571_v13 = vmul.f32 %v4436_v3, %v4436_v3  ;;  %v4521_v57 = vsel %vm730_vm1, %v4437_v49, 0.0 }
 0x205   : > { %v4520_v43 = vadd.f32 %v4519_v38, %v4518_v16  ;;  %v4621_v46 = vadd.f32 %v4620_v62, %v4619_v7  ;;  %v4439_v35 = vadd.f32 %v5913_v5, %v7823_v24  ;;  %v4624_v42 = vsel %vm730_vm1, %v4572_v14, 0.0 }
 0x206   : > { %v4438_v1 = vadd.f32 %v5914_v33, %v7823_v24  ;;  %v5682_v17 = vpop.f32.mrb[26].mxu1  ;;  %v5879_v8 = vpop.f32.mrb[24].mxu0  ;;  %v4622_v36 = vsel %vm730_vm1, %v4571_v13, 0.0 }
 0x207   : > { %v5915_v45 = vadd.f32 %v5879_v8, %v5679_v59  ;;  %v2692_v52 = vpop.f32.mrb[27].mxu1  ;;  %v4338_v54 = vpop.f32.mrb[25].mxu0  ;;  %v4623_v60 = vadd.f32 %v4622_v36, %v4621_v46  ;;  %4471 = vst.msk [vmem:[%s7830_s17 + $0xb8] sm:$0xff] %vm730_vm1, %v4439_v35  ;;  %v4574_v50 = vmul.f32 %v4439_v35, %v4439_v35  ;;  %v4522_v40 = vadd.f32 %v4521_v57, %v4520_v43 }
 0x208   : > { %4470 = vst.msk [vmem:[%s7830_s17 + $0xb0] sm:$0xff] %vm730_vm1, %v4438_v1  ;;  %v4523_v25 = vsel %vm730_vm1, %v4438_v1, 0.0  ;;  %v4573_v6 = vmul.f32 %v4438_v1, %v4438_v1  ;;  %v5916_v39 = vadd.f32 %v4338_v54, %v2682_v44  ;;  %v4525_v53 = vsel %vm730_vm1, %v4439_v35, 0.0 }
 0x209   : > { %v4441_v51 = vadd.f32 %v5915_v45, %v7823_v24  ;;  %v4524_v47 = vadd.f32 %v4523_v25, %v4522_v40  ;;  %v4625_v9 = vadd.f32 %v4624_v42, %v4623_v60  ;;  %v4628_v10 = vsel %vm730_vm1, %v4574_v50, 0.0 }
 0x20a   : > { %v5685_v29 = vpop.f32.mrb[28].mxu1  ;;  %v5882_v41 = vpop.f32.mrb[26].mxu0  ;;  %v4626_v2 = vsel %vm730_vm1, %v4573_v6, 0.0  ;;  %v4440_v61 = vadd.f32 %v5916_v39, %v7823_v24 }
 0x20b   : > { %4473 = vst.msk [vmem:[%s7830_s17 + $0xc8] sm:$0xff] %vm730_vm1, %v4441_v51  ;;  %v4576_v21 = vmul.f32 %v4441_v51, %v4441_v51  ;;  %v2702_v4 = vpop.f32.mrb[29].mxu1  ;;  %v4348_v20 = vpop.f32.mrb[27].mxu0  ;;  %v4627_v63 = vadd.f32 %v4626_v2, %v4625_v9  ;;  %v4526_v27 = vadd.f32 %v4525_v53, %v4524_v47  ;;  %v5917_v22 = vadd.f32 %v5882_v41, %v5682_v17 }
 0x20c   : > { %v5918_v37 = vadd.f32 %v4348_v20, %v2692_v52  ;;  %4472 = vst.msk [vmem:[%s7830_s17 + $0xc0] sm:$0xff] %vm730_vm1, %v4440_v61  ;;  %v4527_v26 = vsel %vm730_vm1, %v4440_v61, 0.0  ;;  %v4575_v34 = vmul.f32 %v4440_v61, %v4440_v61  ;;  %v4529_v23 = vsel %vm730_vm1, %v4441_v51, 0.0 }
 0x20d   : > { %v4528_v31 = vadd.f32 %v4527_v26, %v4526_v27  ;;  %v4629_v56 = vadd.f32 %v4628_v10, %v4627_v63  ;;  %v4443_v30 = vadd.f32 %v5917_v22, %v7823_v24  ;;  %v4632_v32 = vsel %vm730_vm1, %v4576_v21, 0.0 }
 0x20e   : > { %v4442_v58 = vadd.f32 %v5918_v37, %v7823_v24  ;;  %v5688_v15 = vpop.f32.mrb[30].mxu1  ;;  %v5885_v12 = vpop.f32.mrb[28].mxu0  ;;  %v4630_v18 = vsel %vm730_vm1, %v4575_v34, 0.0 }
 0x20f   : > { %v5919_v49 = vadd.f32 %v5885_v12, %v5685_v29  ;;  %v2712_v11 = vpop.f32.mrb[31].mxu1  ;;  %v4358_v55 = vpop.f32.mrb[29].mxu0  ;;  %v4631_v59 = vadd.f32 %v4630_v18, %v4629_v56  ;;  %4475 = vst.msk [vmem:[%s7830_s17 + $0xd8] sm:$0xff] %vm730_vm1, %v4443_v30  ;;  %v4578_v48 = vmul.f32 %v4443_v30, %v4443_v30  ;;  %v4530_v0 = vadd.f32 %v4529_v23, %v4528_v31 }
 0x210   : > { %4474 = vst.msk [vmem:[%s7830_s17 + $0xd0] sm:$0xff] %vm730_vm1, %v4442_v58  ;;  %v4531_v28 = vsel %vm730_vm1, %v4442_v58, 0.0  ;;  %v4577_v14 = vmul.f32 %v4442_v58, %v4442_v58  ;;  %v5920_v44 = vadd.f32 %v4358_v55, %v2702_v4  ;;  %v4533_v5 = vsel %vm730_vm1, %v4443_v30, 0.0 }
 0x211   : > { %v4445_v3 = vadd.f32 %v5919_v49, %v7823_v24  ;;  %v4532_v19 = vadd.f32 %v4531_v28, %v4530_v0  ;;  %v4633_v7 = vadd.f32 %v4632_v32, %v4631_v59  ;;  %v4636_v1 = vsel %vm730_vm1, %v4578_v48, 0.0 }
 0x212   : > { %v5888_v16 = vpop.f32.mrb[30].mxu0  ;;  %v4634_v33 = vsel %vm730_vm1, %v4577_v14, 0.0  ;;  %v4444_v62 = vadd.f32 %v5920_v44, %v7823_v24 }
 0x213   : > { %4477 = vst.msk [vmem:[%s7830_s17 + $0xe8] sm:$0xff] %vm730_vm1, %v4445_v3  ;;  %v4368_v38 = vpop.f32.mrb[31].mxu0  ;;  %v4635_v13 = vadd.f32 %v4634_v33, %v4633_v7  ;;  %v4534_v43 = vadd.f32 %v4533_v5, %v4532_v19  ;;  %v5921_v46 = vadd.f32 %v5888_v16, %v5688_v15  ;;  %v4580_v17 = vmul.f32 %v4445_v3, %v4445_v3 }
 0x214   : > { %v5922_v35 = vadd.f32 %v4368_v38, %v2712_v11  ;;  %4476 = vst.msk [vmem:[%s7830_s17 + $0xe0] sm:$0xff] %vm730_vm1, %v4444_v62  ;;  %v4535_v8 = vsel %vm730_vm1, %v4444_v62, 0.0  ;;  %v4579_v57 = vmul.f32 %v4444_v62, %v4444_v62  ;;  %v4537_v42 = vsel %vm730_vm1, %v4445_v3, 0.0 }
 0x215   : > { %v4536_v36 = vadd.f32 %v4535_v8, %v4534_v43  ;;  %v4637_v45 = vadd.f32 %v4636_v1, %v4635_v13  ;;  %v4447_v52 = vadd.f32 %v5921_v46, %v7823_v24  ;;  %v4640_v25 = vsel %vm730_vm1, %v4580_v17, 0.0 }
 0x216   : > { %v4446_v54 = vadd.f32 %v5922_v35, %v7823_v24  ;;  %v4638_v60 = vsel %vm730_vm1, %v4579_v57, 0.0 }
 0x217   : > { %v4639_v50 = vadd.f32 %v4638_v60, %v4637_v45  ;;  %4479 = vst.msk [vmem:[%s7830_s17 + $0xf8] sm:$0xff] %vm730_vm1, %v4447_v52  ;;  %v4538_v40 = vadd.f32 %v4537_v42, %v4536_v36  ;;  %v4582_v6 = vmul.f32 %v4447_v52, %v4447_v52  ;;  %v4541_v9 = vsel %vm730_vm1, %v4447_v52, 0.0 }
 0x218   : > { %4478 = vst.msk [vmem:[%s7830_s17 + $0xf0] sm:$0xff] %vm730_vm1, %v4446_v54  ;;  %v4539_v51 = vsel %vm730_vm1, %v4446_v54, 0.0  ;;  %v4581_v39 = vmul.f32 %v4446_v54, %v4446_v54 }
 0x219   : > { %v4540_v47 = vadd.f32 %v4539_v51, %v4538_v40  ;;  %v4641_v24 = vadd.f32 %v4640_v25, %v4639_v50  ;;  %v4644_v2 = vsel %vm730_vm1, %v4582_v6, 0.0 }
 0x21a   : > { %v4642_v29 = vsel %vm730_vm1, %v4581_v39, 0.0 }
 0x21b   : > { %v4542_v41 = vadd.f32 %v4541_v9, %v4540_v47  ;;  %v4643_v53 = vadd.f32 %v4642_v29, %v4641_v24 }
 0x21d   : > { %v4543_v21 = vrot.slane %v4542_v41, 4  ;;  %v4645_v61 = vadd.f32 %v4644_v2, %v4643_v53 }
 0x21f   : > { %v4544_v4 = vadd.f32 %v4543_v21, %v4542_v41  ;;  %v4646_v20 = vrot.slane %v4645_v61, 4 }
 0x221   : > { %v4545_v63 = vrot.slane %v4544_v4, 2  ;;  %v4647_v27 = vadd.f32 %v4646_v20, %v4645_v61 }
 0x223   : > { %v4546_v22 = vadd.f32 %v4545_v63, %v4544_v4  ;;  %v4648_v37 = vrot.slane %v4647_v27, 2 }
 0x225   : > { %v4547_v10 = vrot.slane %v4546_v22, 1  ;;  %v4649_v26 = vadd.f32 %v4648_v37, %v4647_v27 }
 0x227   : > { %v4548_v34 = vadd.f32 %v4547_v10, %v4546_v22  ;;  %v4650_v31 = vrot.slane %v4649_v26, 1 }
 0x229   : > { %4550 = vst.msk [vmem:[%s295_s18] sm:$0x1] %vm4549_vm0, %v4548_v34  ;;  %v4651_v56 = vadd.f32 %v4650_v31, %v4649_v26 }
 0x22b   : > { %4652 = vst.msk [vmem:[%s298_s21] sm:$0x1] %vm4549_vm0, %v4651_v56 }
 0x22c PF: > { %s18_s24 = sadd.s32 1, %s6163_s24  }
 0x22d   : > { %p15_p5 = scmp.ge.s32.totalorder %s18_s24, 4  }
 0x22f   :  { %17 = sbr.rel (!%p15_p5) target bundleno = 1 (0x1), region = 102 }

</bundles_post_ra>
